<compile_context>
chip_gen: v6e
topology: v6e:2x2x1
jax: 0.10.0
libtpu: 0.0.40
codegen_flags: <defaults>
</compile_context>

<pallas_src>
import jax
import jax.numpy as jnp
from jax import lax
from jax.experimental import pallas as pl
from jax.experimental.pallas import tpu as pltpu

H1, H2 = 250, 100      # PyTorch hidden widths
H1P, H2P = 256, 128    # lane-padded widths
TILE_ROWS = 256        # flattened (batch*seq) rows per grid step


def _round_up(x, m):
    return (x + m - 1) // m * m


def dssm_kernel(epi_ref, mhc_ref,
                w1a, b1a, w2a, b2a, w3a, b3a,
                w1b, b1b, w2b, b2b, w3b, b3b,
                cos_ref):
    """One grid step = TILE_ROWS flattened rows, feature-major layout.

    epi_ref / mhc_ref : (D, TR)        input features (rows along lanes)
    w*                : (H_out, H_in)  transposed, zero-padded weights (resident)
    b*                : (H_out, 1)     zero-padded biases
    cos_ref           : (1, TR)        per-row cosine similarity (lane-dense)
    """

    def tower(x, w1, b1, w2, b2, w3, b3):
        h = jnp.dot(w1[...], x, preferred_element_type=jnp.float32) + b1[...]
        h = jnp.maximum(h, 0.0)
        h = jnp.dot(w2[...], h, preferred_element_type=jnp.float32) + b2[...]
        h = jnp.maximum(h, 0.0)
        h = jnp.dot(w3[...], h, preferred_element_type=jnp.float32) + b3[...]
        h = jnp.maximum(h, 0.0)
        return h                                      # (OUT_P, TR)

    e = tower(epi_ref[...], w1a, b1a, w2a, b2a, w3a, b3a)
    m = tower(mhc_ref[...], w1b, b1b, w2b, b2b, w3b, b3b)

    eps2 = jnp.float32(1e-16)                         # (torch eps = 1e-8) ** 2
    dot = jnp.sum(e * m, axis=0, keepdims=True)       # (1, TR) sublane reductions
    ne2 = jnp.sum(e * e, axis=0, keepdims=True)
    nm2 = jnp.sum(m * m, axis=0, keepdims=True)
    denom2 = jnp.maximum(ne2, eps2) * jnp.maximum(nm2, eps2)
    cos_ref[...] = dot * lax.rsqrt(denom2)            # EUP rsqrt; no sqrt+div on VALU


def _pad_transpose_linear(w, b, in_pad, out_pad):
    """(in, out) weight, (1, out) bias -> ((out_pad, in_pad) W^T, (out_pad, 1) b)."""
    fi, fo = w.shape
    wp = jnp.zeros((in_pad, out_pad), jnp.float32).at[:fi, :fo].set(w)
    bp = jnp.zeros((out_pad, 1), jnp.float32).at[:fo, 0].set(b.reshape(-1))
    return wp.T, bp


def dssm_forward(epi, mhc, params):
    """epi, mhc: (B, S, D) float32.  Returns (B,) float32 = sigmoid(sum_s cosine)."""
    B, S, D = epi.shape
    (w1a, b1a, w2a, b2a, w3a, b3a,
     w1b, b1b, w2b, b2b, w3b, b3b) = params
    out_dim = w3a.shape[1]
    out_p = _round_up(out_dim, 128)

    # Zero-pad hidden widths to lane multiples and transpose to (out, in).
    w1at, b1ap = _pad_transpose_linear(w1a, b1a, D, H1P)
    w2at, b2ap = _pad_transpose_linear(w2a, b2a, H1P, H2P)
    w3at, b3ap = _pad_transpose_linear(w3a, b3a, H2P, out_p)
    w1bt, b1bp = _pad_transpose_linear(w1b, b1b, D, H1P)
    w2bt, b2bp = _pad_transpose_linear(w2b, b2b, H1P, H2P)
    w3bt, b3bp = _pad_transpose_linear(w3b, b3b, H2P, out_p)
    padded = (w1at, b1ap, w2at, b2ap, w3at, b3ap,
              w1bt, b1bp, w2bt, b2bp, w3bt, b3bp)

    # Flatten rows, transpose to feature-major, pad rows to a tile multiple.
    R = B * S
    TR = TILE_ROWS
    R_pad = _round_up(R, TR)

    def prep(x):
        xt = x.reshape(R, D).astype(jnp.float32).T            # (D, R)
        return jnp.zeros((D, R_pad), jnp.float32).at[:, :R].set(xt)

    epi_t, mhc_t = prep(epi), prep(mhc)

    row_spec = pl.BlockSpec((D, TR), lambda i: (0, i))
    param_specs = [pl.BlockSpec(p.shape, lambda i: (0, 0)) for p in padded]

    flops = 4 * R_pad * (D * H1P + H1P * H2P + H2P * out_p)   # 2 towers * 2 flop/MAC
    bytes_accessed = (2 * D * R_pad + R_pad) * 4 + sum(int(p.size) for p in padded) * 4

    cos = pl.pallas_call(
        dssm_kernel,
        out_shape=jax.ShapeDtypeStruct((1, R_pad), jnp.float32),
        grid_spec=pltpu.PrefetchScalarGridSpec(
            num_scalar_prefetch=0,
            grid=(R_pad // TR,),
            in_specs=[row_spec, row_spec] + param_specs,
            out_specs=pl.BlockSpec((1, TR), lambda i: (0, i)),
        ),
        compiler_params=pltpu.CompilerParams(
            dimension_semantics=("parallel",)),               # 2-TC sharding on v7x
        cost_estimate=pl.CostEstimate(
            flops=flops, transcendentals=R_pad, bytes_accessed=bytes_accessed),
    )(epi_t, mhc_t, *padded)

    # Tiny epilogue in XLA: per-batch sum over S and sigmoid.
    return jax.nn.sigmoid(jnp.sum(cos[0, :R].reshape(B, S), axis=1))


def init_linear(key, fan_in, fan_out):
    """PyTorch nn.Linear default init: U(-1/sqrt(fan_in), 1/sqrt(fan_in))."""
    kw, kb = jax.random.split(key)
    bound = 1.0 / jnp.sqrt(jnp.float32(fan_in))
    w = jax.random.uniform(kw, (fan_in, fan_out), jnp.float32, -bound, bound)
    b = jax.random.uniform(kb, (1, fan_out), jnp.float32, -bound, bound)
    return w, b


def make_params(key, input_dim, output_dim):
    keys = jax.random.split(key, 6)
    w1a, b1a = init_linear(keys[0], input_dim, H1)
    w2a, b2a = init_linear(keys[1], H1, H2)
    w3a, b3a = init_linear(keys[2], H2, output_dim)
    w1b, b1b = init_linear(keys[3], input_dim, H1)
    w2b, b2b = init_linear(keys[4], H1, H2)
    w3b, b3b = init_linear(keys[5], H2, output_dim)
    return (w1a, b1a, w2a, b2a, w3a, b3a,
            w1b, b1b, w2b, b2b, w3b, b3b)


def dssm_reference(epi, mhc, params):
    (w1a, b1a, w2a, b2a, w3a, b3a,
     w1b, b1b, w2b, b2b, w3b, b3b) = params

    def tower(x, w1, b1, w2, b2, w3, b3):
        h = jax.nn.relu(x @ w1 + b1)
        h = jax.nn.relu(h @ w2 + b2)
        h = jax.nn.relu(h @ w3 + b3)
        return h

    e = tower(epi, w1a, b1a, w2a, b2a, w3a, b3a)
    m = tower(mhc, w1b, b1b, w2b, b2b, w3b, b3b)
    eps = 1e-8
    dot = jnp.sum(e * m, axis=2)
    ne = jnp.sqrt(jnp.sum(e * e, axis=2))
    nm = jnp.sqrt(jnp.sum(m * m, axis=2))
    cos = dot / (jnp.maximum(ne, eps) * jnp.maximum(nm, eps))
    return jax.nn.sigmoid(jnp.sum(cos, axis=1))


if __name__ == "__main__":
    B, S, INPUT_DIM, OUTPUT_DIM = 2, 8, 32, 32

    key = jax.random.PRNGKey(0)
    k_epi, k_mhc, k_params = jax.random.split(key, 3)
    epi = jax.random.normal(k_epi, (B, S, INPUT_DIM), jnp.float32)
    mhc = jax.random.normal(k_mhc, (B, S, INPUT_DIM), jnp.float32)
    params = make_params(k_params, INPUT_DIM, OUTPUT_DIM)

    out = dssm_forward(epi, mhc, params)
    jax.block_until_ready(out)

    ref = dssm_reference(epi, mhc, params)
    assert out.shape == (B,)
    assert jnp.allclose(out, ref, atol=1e-4, rtol=1e-4), (out, ref)

    print("KERNEL_OK")
</pallas_src>

<mosaic_0001>
module attributes {stable_mosaic.version = 11 : i64} {
  func.func @dssm_kernel(%arg0: i32, %arg1: memref<32x256xf32, #tpu.memory_space<vmem>>, %arg2: memref<32x256xf32, #tpu.memory_space<vmem>>, %arg3: memref<256x32xf32, #tpu.memory_space<vmem>>, %arg4: memref<256x1xf32, #tpu.memory_space<vmem>>, %arg5: memref<128x256xf32, #tpu.memory_space<vmem>>, %arg6: memref<128x1xf32, #tpu.memory_space<vmem>>, %arg7: memref<128x128xf32, #tpu.memory_space<vmem>>, %arg8: memref<128x1xf32, #tpu.memory_space<vmem>>, %arg9: memref<256x32xf32, #tpu.memory_space<vmem>>, %arg10: memref<256x1xf32, #tpu.memory_space<vmem>>, %arg11: memref<128x256xf32, #tpu.memory_space<vmem>>, %arg12: memref<128x1xf32, #tpu.memory_space<vmem>>, %arg13: memref<128x128xf32, #tpu.memory_space<vmem>>, %arg14: memref<128x1xf32, #tpu.memory_space<vmem>>, %arg15: memref<1x256xf32, #tpu.memory_space<vmem>>) attributes {dimension_semantics = [#tpu.dimension_semantics<parallel>], iteration_bounds = array<i64: 1>, scalar_prefetch = 0 : i64, scratch_operands = 0 : i64, tpu.core_type = #tpu.core_type<tc>, window_params = [{transform_indices = @transform_0, window_bounds = array<i64: 32, 256>}, {transform_indices = @transform_1, window_bounds = array<i64: 32, 256>}, {pipeline_mode = #tpu.pipeline_mode<synchronous>, transform_indices = @transform_2, window_bounds = array<i64: 256, 32>}, {pipeline_mode = #tpu.pipeline_mode<synchronous>, transform_indices = @transform_3, window_bounds = array<i64: 256, 1>}, {pipeline_mode = #tpu.pipeline_mode<synchronous>, transform_indices = @transform_4, window_bounds = array<i64: 128, 256>}, {pipeline_mode = #tpu.pipeline_mode<synchronous>, transform_indices = @transform_5, window_bounds = array<i64: 128, 1>}, {pipeline_mode = #tpu.pipeline_mode<synchronous>, transform_indices = @transform_6, window_bounds = array<i64: 128, 128>}, {pipeline_mode = #tpu.pipeline_mode<synchronous>, transform_indices = @transform_7, window_bounds = array<i64: 128, 1>}, {pipeline_mode = #tpu.pipeline_mode<synchronous>, transform_indices = @transform_8, window_bounds = array<i64: 256, 32>}, {pipeline_mode = #tpu.pipeline_mode<synchronous>, transform_indices = @transform_9, window_bounds = array<i64: 256, 1>}, {pipeline_mode = #tpu.pipeline_mode<synchronous>, transform_indices = @transform_10, window_bounds = array<i64: 128, 256>}, {pipeline_mode = #tpu.pipeline_mode<synchronous>, transform_indices = @transform_11, window_bounds = array<i64: 128, 1>}, {pipeline_mode = #tpu.pipeline_mode<synchronous>, transform_indices = @transform_12, window_bounds = array<i64: 128, 128>}, {pipeline_mode = #tpu.pipeline_mode<synchronous>, transform_indices = @transform_13, window_bounds = array<i64: 128, 1>}, {transform_indices = @transform_14, window_bounds = array<i64: 1, 256>}]} {
    %c0 = arith.constant 0 : index
    %c0_0 = arith.constant 0 : index
    %0 = vector.load %arg1[%c0, %c0_0] : memref<32x256xf32, #tpu.memory_space<vmem>>, vector<32x256xf32>
    %c0_1 = arith.constant 0 : index
    %c0_2 = arith.constant 0 : index
    %1 = vector.load %arg3[%c0_1, %c0_2] : memref<256x32xf32, #tpu.memory_space<vmem>>, vector<256x32xf32>
    %cst = arith.constant dense<0.000000e+00> : vector<256x256xf32>
    %2 = tpu.matmul %1, %0, %cst {dimension_numbers = #tpu.dot_dimension_numbers<[1], [0], [0], [1], [0, 0, 1, 1], [], []>} : vector<256x32xf32>, vector<32x256xf32>, vector<256x256xf32> -> vector<256x256xf32>
    %c0_3 = arith.constant 0 : index
    %c0_4 = arith.constant 0 : index
    %3 = vector.load %arg4[%c0_3, %c0_4] : memref<256x1xf32, #tpu.memory_space<vmem>>, vector<256x1xf32>
    %4 = vector.broadcast %3 : vector<256x1xf32> to vector<256x256xf32>
    %5 = arith.addf %2, %4 : vector<256x256xf32>
    %cst_5 = arith.constant 0.000000e+00 : f32
    %6 = vector.broadcast %cst_5 : f32 to vector<256x256xf32>
    %7 = arith.maximumf %5, %6 : vector<256x256xf32>
    %c0_6 = arith.constant 0 : index
    %c0_7 = arith.constant 0 : index
    %8 = vector.load %arg5[%c0_6, %c0_7] : memref<128x256xf32, #tpu.memory_space<vmem>>, vector<128x256xf32>
    %cst_8 = arith.constant dense<0.000000e+00> : vector<128x256xf32>
    %9 = tpu.matmul %8, %7, %cst_8 {dimension_numbers = #tpu.dot_dimension_numbers<[1], [0], [0], [1], [0, 0, 1, 1], [], []>} : vector<128x256xf32>, vector<256x256xf32>, vector<128x256xf32> -> vector<128x256xf32>
    %c0_9 = arith.constant 0 : index
    %c0_10 = arith.constant 0 : index
    %10 = vector.load %arg6[%c0_9, %c0_10] : memref<128x1xf32, #tpu.memory_space<vmem>>, vector<128x1xf32>
    %11 = vector.broadcast %10 : vector<128x1xf32> to vector<128x256xf32>
    %12 = arith.addf %9, %11 : vector<128x256xf32>
    %cst_11 = arith.constant 0.000000e+00 : f32
    %13 = vector.broadcast %cst_11 : f32 to vector<128x256xf32>
    %14 = arith.maximumf %12, %13 : vector<128x256xf32>
    %c0_12 = arith.constant 0 : index
    %c0_13 = arith.constant 0 : index
    %15 = vector.load %arg7[%c0_12, %c0_13] : memref<128x128xf32, #tpu.memory_space<vmem>>, vector<128x128xf32>
    %cst_14 = arith.constant dense<0.000000e+00> : vector<128x256xf32>
    %16 = tpu.matmul %15, %14, %cst_14 {dimension_numbers = #tpu.dot_dimension_numbers<[1], [0], [0], [1], [0, 0, 1, 1], [], []>} : vector<128x128xf32>, vector<128x256xf32>, vector<128x256xf32> -> vector<128x256xf32>
    %c0_15 = arith.constant 0 : index
    %c0_16 = arith.constant 0 : index
    %17 = vector.load %arg8[%c0_15, %c0_16] : memref<128x1xf32, #tpu.memory_space<vmem>>, vector<128x1xf32>
    %18 = vector.broadcast %17 : vector<128x1xf32> to vector<128x256xf32>
    %19 = arith.addf %16, %18 : vector<128x256xf32>
    %cst_17 = arith.constant 0.000000e+00 : f32
    %20 = vector.broadcast %cst_17 : f32 to vector<128x256xf32>
    %21 = arith.maximumf %19, %20 : vector<128x256xf32>
    %c0_18 = arith.constant 0 : index
    %c0_19 = arith.constant 0 : index
    %22 = vector.load %arg2[%c0_18, %c0_19] : memref<32x256xf32, #tpu.memory_space<vmem>>, vector<32x256xf32>
    %c0_20 = arith.constant 0 : index
    %c0_21 = arith.constant 0 : index
    %23 = vector.load %arg9[%c0_20, %c0_21] : memref<256x32xf32, #tpu.memory_space<vmem>>, vector<256x32xf32>
    %cst_22 = arith.constant dense<0.000000e+00> : vector<256x256xf32>
    %24 = tpu.matmul %23, %22, %cst_22 {dimension_numbers = #tpu.dot_dimension_numbers<[1], [0], [0], [1], [0, 0, 1, 1], [], []>} : vector<256x32xf32>, vector<32x256xf32>, vector<256x256xf32> -> vector<256x256xf32>
    %c0_23 = arith.constant 0 : index
    %c0_24 = arith.constant 0 : index
    %25 = vector.load %arg10[%c0_23, %c0_24] : memref<256x1xf32, #tpu.memory_space<vmem>>, vector<256x1xf32>
    %26 = vector.broadcast %25 : vector<256x1xf32> to vector<256x256xf32>
    %27 = arith.addf %24, %26 : vector<256x256xf32>
    %cst_25 = arith.constant 0.000000e+00 : f32
    %28 = vector.broadcast %cst_25 : f32 to vector<256x256xf32>
    %29 = arith.maximumf %27, %28 : vector<256x256xf32>
    %c0_26 = arith.constant 0 : index
    %c0_27 = arith.constant 0 : index
    %30 = vector.load %arg11[%c0_26, %c0_27] : memref<128x256xf32, #tpu.memory_space<vmem>>, vector<128x256xf32>
    %cst_28 = arith.constant dense<0.000000e+00> : vector<128x256xf32>
    %31 = tpu.matmul %30, %29, %cst_28 {dimension_numbers = #tpu.dot_dimension_numbers<[1], [0], [0], [1], [0, 0, 1, 1], [], []>} : vector<128x256xf32>, vector<256x256xf32>, vector<128x256xf32> -> vector<128x256xf32>
    %c0_29 = arith.constant 0 : index
    %c0_30 = arith.constant 0 : index
    %32 = vector.load %arg12[%c0_29, %c0_30] : memref<128x1xf32, #tpu.memory_space<vmem>>, vector<128x1xf32>
    %33 = vector.broadcast %32 : vector<128x1xf32> to vector<128x256xf32>
    %34 = arith.addf %31, %33 : vector<128x256xf32>
    %cst_31 = arith.constant 0.000000e+00 : f32
    %35 = vector.broadcast %cst_31 : f32 to vector<128x256xf32>
    %36 = arith.maximumf %34, %35 : vector<128x256xf32>
    %c0_32 = arith.constant 0 : index
    %c0_33 = arith.constant 0 : index
    %37 = vector.load %arg13[%c0_32, %c0_33] : memref<128x128xf32, #tpu.memory_space<vmem>>, vector<128x128xf32>
    %cst_34 = arith.constant dense<0.000000e+00> : vector<128x256xf32>
    %38 = tpu.matmul %37, %36, %cst_34 {dimension_numbers = #tpu.dot_dimension_numbers<[1], [0], [0], [1], [0, 0, 1, 1], [], []>} : vector<128x128xf32>, vector<128x256xf32>, vector<128x256xf32> -> vector<128x256xf32>
    %c0_35 = arith.constant 0 : index
    %c0_36 = arith.constant 0 : index
    %39 = vector.load %arg14[%c0_35, %c0_36] : memref<128x1xf32, #tpu.memory_space<vmem>>, vector<128x1xf32>
    %40 = vector.broadcast %39 : vector<128x1xf32> to vector<128x256xf32>
    %41 = arith.addf %38, %40 : vector<128x256xf32>
    %cst_37 = arith.constant 0.000000e+00 : f32
    %42 = vector.broadcast %cst_37 : f32 to vector<128x256xf32>
    %43 = arith.maximumf %41, %42 : vector<128x256xf32>
    %44 = arith.mulf %21, %43 : vector<128x256xf32>
    %cst_38 = arith.constant dense<0.000000e+00> : vector<256xf32>
    %45 = vector.multi_reduction <add>, %44, %cst_38 [0] : vector<128x256xf32> to vector<256xf32>
    %46 = vector.shape_cast %45 : vector<256xf32> to vector<1x256xf32>
    %47 = arith.mulf %21, %21 : vector<128x256xf32>
    %cst_39 = arith.constant dense<0.000000e+00> : vector<256xf32>
    %48 = vector.multi_reduction <add>, %47, %cst_39 [0] : vector<128x256xf32> to vector<256xf32>
    %49 = vector.shape_cast %48 : vector<256xf32> to vector<1x256xf32>
    %50 = arith.mulf %43, %43 : vector<128x256xf32>
    %cst_40 = arith.constant dense<0.000000e+00> : vector<256xf32>
    %51 = vector.multi_reduction <add>, %50, %cst_40 [0] : vector<128x256xf32> to vector<256xf32>
    %52 = vector.shape_cast %51 : vector<256xf32> to vector<1x256xf32>
    %cst_41 = arith.constant 1.000000e-16 : f32
    %53 = vector.broadcast %cst_41 : f32 to vector<1x256xf32>
    %54 = arith.maximumf %49, %53 : vector<1x256xf32>
    %cst_42 = arith.constant 1.000000e-16 : f32
    %55 = vector.broadcast %cst_42 : f32 to vector<1x256xf32>
    %56 = arith.maximumf %52, %55 : vector<1x256xf32>
    %57 = arith.mulf %54, %56 : vector<1x256xf32>
    %58 = math.rsqrt %57 : vector<1x256xf32>
    %59 = arith.mulf %46, %58 : vector<1x256xf32>
    %c0_43 = arith.constant 0 : index
    %c0_44 = arith.constant 0 : index
    %60 = vector.load %arg15[%c0_43, %c0_44] : memref<1x256xf32, #tpu.memory_space<vmem>>, vector<1x256xf32>
    tpu.vector_store %arg15[%c0_43, %c0_44], %59 {strides = array<i32>} : memref<1x256xf32, #tpu.memory_space<vmem>>, vector<1x256xf32>,
    return
  }
  func.func @transform_0(%arg0: i32) -> (i32, i32) {
    %c0_i32 = arith.constant 0 : i32
    %c0_i32_0 = arith.constant 0 : i32
    return %c0_i32, %arg0 : i32, i32
  }
  func.func @transform_1(%arg0: i32) -> (i32, i32) {
    %c0_i32 = arith.constant 0 : i32
    %c0_i32_0 = arith.constant 0 : i32
    return %c0_i32, %arg0 : i32, i32
  }
  func.func @transform_2(%arg0: i32) -> (i32, i32) {
    %c0_i32 = arith.constant 0 : i32
    %c0_i32_0 = arith.constant 0 : i32
    %c0_i32_1 = arith.constant 0 : i32
    return %c0_i32, %c0_i32_0 : i32, i32
  }
  func.func @transform_3(%arg0: i32) -> (i32, i32) {
    %c0_i32 = arith.constant 0 : i32
    %c0_i32_0 = arith.constant 0 : i32
    %c0_i32_1 = arith.constant 0 : i32
    return %c0_i32, %c0_i32_0 : i32, i32
  }
  func.func @transform_4(%arg0: i32) -> (i32, i32) {
    %c0_i32 = arith.constant 0 : i32
    %c0_i32_0 = arith.constant 0 : i32
    %c0_i32_1 = arith.constant 0 : i32
    return %c0_i32, %c0_i32_0 : i32, i32
  }
  func.func @transform_5(%arg0: i32) -> (i32, i32) {
    %c0_i32 = arith.constant 0 : i32
    %c0_i32_0 = arith.constant 0 : i32
    %c0_i32_1 = arith.constant 0 : i32
    return %c0_i32, %c0_i32_0 : i32, i32
  }
  func.func @transform_6(%arg0: i32) -> (i32, i32) {
    %c0_i32 = arith.constant 0 : i32
    %c0_i32_0 = arith.constant 0 : i32
    %c0_i32_1 = arith.constant 0 : i32
    return %c0_i32, %c0_i32_0 : i32, i32
  }
  func.func @transform_7(%arg0: i32) -> (i32, i32) {
    %c0_i32 = arith.constant 0 : i32
    %c0_i32_0 = arith.constant 0 : i32
    %c0_i32_1 = arith.constant 0 : i32
    return %c0_i32, %c0_i32_0 : i32, i32
  }
  func.func @transform_8(%arg0: i32) -> (i32, i32) {
    %c0_i32 = arith.constant 0 : i32
    %c0_i32_0 = arith.constant 0 : i32
    %c0_i32_1 = arith.constant 0 : i32
    return %c0_i32, %c0_i32_0 : i32, i32
  }
  func.func @transform_9(%arg0: i32) -> (i32, i32) {
    %c0_i32 = arith.constant 0 : i32
    %c0_i32_0 = arith.constant 0 : i32
    %c0_i32_1 = arith.constant 0 : i32
    return %c0_i32, %c0_i32_0 : i32, i32
  }
  func.func @transform_10(%arg0: i32) -> (i32, i32) {
    %c0_i32 = arith.constant 0 : i32
    %c0_i32_0 = arith.constant 0 : i32
    %c0_i32_1 = arith.constant 0 : i32
    return %c0_i32, %c0_i32_0 : i32, i32
  }
  func.func @transform_11(%arg0: i32) -> (i32, i32) {
    %c0_i32 = arith.constant 0 : i32
    %c0_i32_0 = arith.constant 0 : i32
    %c0_i32_1 = arith.constant 0 : i32
    return %c0_i32, %c0_i32_0 : i32, i32
  }
  func.func @transform_12(%arg0: i32) -> (i32, i32) {
    %c0_i32 = arith.constant 0 : i32
    %c0_i32_0 = arith.constant 0 : i32
    %c0_i32_1 = arith.constant 0 : i32
    return %c0_i32, %c0_i32_0 : i32, i32
  }
  func.func @transform_13(%arg0: i32) -> (i32, i32) {
    %c0_i32 = arith.constant 0 : i32
    %c0_i32_0 = arith.constant 0 : i32
    %c0_i32_1 = arith.constant 0 : i32
    return %c0_i32, %c0_i32_0 : i32, i32
  }
  func.func @transform_14(%arg0: i32) -> (i32, i32) {
    %c0_i32 = arith.constant 0 : i32
    %c0_i32_0 = arith.constant 0 : i32
    return %c0_i32, %arg0 : i32, i32
  }
}

</mosaic_0001>

<bundles_post_ra>
// kernel: tpu_custom_call.1
= control target key start
LH: loop header
LB: loop body
LE: loop exit
PB: predicated region body
PF: predicated region fallthrough
CT: control target
= control target key end

     0   :  { %v3028_v3 = vmov 0   ;;  %v4929_v11 = vmov 0.0   ;;  %vm280_vm0 = vcmask 261120   ;;  %s4914_s0 = inlined_call_operand.vmem [shape: f32[32,256], index: 0, kind: input, shape index: {}]   ;;  %s4915_s1 = inlined_call_operand.vmem [shape: f32[32,256], index: 1, kind: input, shape index: {}]   ;;  %s4916_s2 = inlined_call_operand.vmem [shape: f32[256,32], index: 2, kind: input, shape index: {}]   ;;  %s4917_s3 = inlined_call_operand.vmem [shape: f32[256,1], index: 3, kind: input, shape index: {}]   ;;  %s4918_s4 = inlined_call_operand.vmem [shape: f32[128,256], index: 4, kind: input, shape index: {}]   ;;  %s4919_s5 = inlined_call_operand.vmem [shape: f32[128,1], index: 5, kind: input, shape index: {}]   ;;  %s4920_s6 = inlined_call_operand.vmem [shape: f32[128,128], index: 6, kind: input, shape index: {}]   ;;  %s4921_s7 = inlined_call_operand.vmem [shape: f32[128,1], index: 7, kind: input, shape index: {}]   ;;  %s4922_s8 = inlined_call_operand.vmem [shape: f32[256,32], index: 8, kind: input, shape index: {}]   ;;  %s4923_s9 = inlined_call_operand.vmem [shape: f32[256,1], index: 9, kind: input, shape index: {}]   ;;  %s4924_s10 = inlined_call_operand.vmem [shape: f32[128,256], index: 10, kind: input, shape index: {}]   ;;  %s4925_s11 = inlined_call_operand.vmem [shape: f32[128,1], index: 11, kind: input, shape index: {}]   ;;  %s4926_s12 = inlined_call_operand.vmem [shape: f32[128,128], index: 12, kind: input, shape index: {}]   ;;  %s4927_s13 = inlined_call_operand.vmem [shape: f32[128,1], index: 13, kind: input, shape index: {}]   ;;  %s4928_s14 = inlined_call_operand.hbm [shape: f32[1,256], index: 14, kind: output, shape index: {}]  }
   0x1   :  { %v55_v0 = vld [vmem:[%s4914_s0 + $0x38] sm:$0xff]  ;;  %v101_v2 = vld [vmem:[%s4917_s3 + $0x68] sm:$0xff]  ;;  %3001 = vset.pattern.permute.xlu1 %v3028_v3  ;;  %3000 = vset.pattern.permute.xlu0 %v3028_v3  ;;  %v54_v4 = vld [vmem:[%s4914_s0 + $0x30] sm:$0xff] }
   0x2   :  { %v103_v1 = vld [vmem:[%s4917_s3 + $0x78] sm:$0xff]  ;;  %v53_v5 = vld [vmem:[%s4914_s0 + $0x28] sm:$0xff]  ;;  %401 = vmatprep.subr.mxu0 %v55_v0  ;;  %v52_v6 = vld [vmem:[%s4914_s0 + $0x20] sm:$0xff]  ;;  %187 = vperm.xlu1 %3001, %v101_v2  }
   0x3   :  { %197 = vperm.xlu0 %3000, %v103_v1   ;;  %402 = vmatpush1.msra.mxu0 %v54_v4  ;;  %v51_v7 = vld [vmem:[%s4914_s0 + $0x18] sm:$0xff]  ;;  %v102_v8 = vld [vmem:[%s4917_s3 + $0x70] sm:$0xff]  ;;  %v100_v9 = vld [vmem:[%s4917_s3 + $0x60] sm:$0xff] }
   0x4   :  { %403 = vmatprep.subr.mxu0 %v53_v5  ;;  %v50_v10 = vld [vmem:[%s4914_s0 + $0x10] sm:$0xff]  ;;  %441 = vmatprep.mubr.f32.mxu0 %v4929_v11  ;;  %v49_v12 = vld [vmem:[%s4914_s0 + $0x8] sm:$0xff]  ;;  %v48_v13 = vld [vmem:[%s4914_s0] sm:$0xff] }
   0x5   :  { %404 = vmatpush1.msra.mxu0 %v52_v6  ;;  %v56_v14 = vld [vmem:[%s4916_s2] sm:$0xff]  ;;  %v99_v15 = vld [vmem:[%s4917_s3 + $0x58] sm:$0xff]  ;;  %v98_v16 = vld [vmem:[%s4917_s3 + $0x50] sm:$0xff] }
   0x6   :  { %405 = vmatprep.subr.mxu0 %v51_v7  ;;  %182 = vperm.xlu1 %3001, %v100_v9   ;;  %v57_v17 = vld [vmem:[%s4916_s2 + $0x8] sm:$0xff]  ;;  %v96_v19 = vld [vmem:[%s4917_s3 + $0x40] sm:$0xff]  ;;  %v58_v20 = vld [vmem:[%s4916_s2 + $0x10] sm:$0xff] }
   0x7   :  { %192 = vperm.xlu0 %3000, %v102_v8   ;;  %406 = vmatpush1.msra.mxu0 %v50_v10  ;;  %v97_v18 = vld [vmem:[%s4917_s3 + $0x48] sm:$0xff]  ;;  %v95_v21 = vld [vmem:[%s4917_s3 + $0x38] sm:$0xff]  ;;  %v94_v22 = vld [vmem:[%s4917_s3 + $0x30] sm:$0xff] }
   0x8   :  { %407 = vmatprep.subr.mxu0 %v49_v12  ;;  %v59_v23 = vld [vmem:[%s4916_s2 + $0x18] sm:$0xff]  ;;  %v93_v24 = vld [vmem:[%s4917_s3 + $0x28] sm:$0xff]  ;;  %v92_v25 = vld [vmem:[%s4917_s3 + $0x20] sm:$0xff] }
   0x9   :  { %408 = vmatpush1.msra.mxu0 %v48_v13  ;;  %v60_v26 = vld [vmem:[%s4916_s2 + $0x20] sm:$0xff]  ;;  %v91_v27 = vld [vmem:[%s4917_s3 + $0x18] sm:$0xff]  ;;  %v90_v28 = vld [vmem:[%s4917_s3 + $0x10] sm:$0xff] }
   0xa   :  { %2868 = vmatmul.mubr.msk.f32.vlgmr.msra.gmra.mxu0 %vm280_vm0, %v56_v14  ;;  %172 = vperm.xlu1 %3001, %v98_v16   ;;  %v61_v29 = vld [vmem:[%s4916_s2 + $0x28] sm:$0xff]  ;;  %v88_v31 = vld [vmem:[%s4917_s3] sm:$0xff]  ;;  %v62_v32 = vld [vmem:[%s4916_s2 + $0x30] sm:$0xff] }
   0xb   :  { %177 = vperm.xlu0 %3000, %v99_v15   ;;  %447 = vmatprep.mubr.f32.mxu0 %v4929_v11  ;;  %v89_v30 = vld [vmem:[%s4917_s3 + $0x8] sm:$0xff]  ;;  %v119_v33 = vld [vmem:[%s4917_s3 + $0xf8] sm:$0xff]  ;;  %v118_v34 = vld [vmem:[%s4917_s3 + $0xf0] sm:$0xff] }
   0xc   :  { %v63_v35 = vld [vmem:[%s4916_s2 + $0x38] sm:$0xff]  ;;  %v117_v36 = vld [vmem:[%s4917_s3 + $0xe8] sm:$0xff]  ;;  %v116_v37 = vld [vmem:[%s4917_s3 + $0xe0] sm:$0xff] }
   0xd   :  { %v64_v38 = vld [vmem:[%s4916_s2 + $0x40] sm:$0xff]  ;;  %v115_v39 = vld [vmem:[%s4917_s3 + $0xd8] sm:$0xff]  ;;  %v114_v40 = vld [vmem:[%s4917_s3 + $0xd0] sm:$0xff] }
   0xe   :  { %2869 = vmatmul.mubr.msk.f32.gmra.mxu0 %vm280_vm0, %v57_v17  ;;  %162 = vperm.xlu1 %3001, %v96_v19  }
   0xf   :  { %167 = vperm.xlu0 %3000, %v97_v18   ;;  %453 = vmatprep.mubr.f32.mxu0 %v4929_v11 }
  0x12   :  { %2870 = vmatmul.mubr.msk.f32.gmra.mxu0 %vm280_vm0, %v58_v20  ;;  %152 = vperm.xlu1 %3001, %v94_v22  }
  0x13   :  { %157 = vperm.xlu0 %3000, %v95_v21   ;;  %459 = vmatprep.mubr.f32.mxu0 %v4929_v11 }
  0x16   :  { %2871 = vmatmul.mubr.msk.f32.gmra.mxu0 %vm280_vm0, %v59_v23  ;;  %142 = vperm.xlu1 %3001, %v92_v25  }
  0x17   :  { %147 = vperm.xlu0 %3000, %v93_v24   ;;  %465 = vmatprep.mubr.f32.mxu0 %v4929_v11 }
  0x1a   :  { %2872 = vmatmul.mubr.msk.f32.gmra.mxu0 %vm280_vm0, %v60_v26  ;;  %132 = vperm.xlu1 %3001, %v90_v28  }
  0x1b   :  { %137 = vperm.xlu0 %3000, %v91_v27   ;;  %471 = vmatprep.mubr.f32.mxu0 %v4929_v11 }
  0x1e   :  { %2873 = vmatmul.mubr.msk.f32.gmra.mxu0 %vm280_vm0, %v61_v29  ;;  %122 = vperm.xlu1 %3001, %v88_v31  }
  0x1f   :  { %127 = vperm.xlu0 %3000, %v89_v30   ;;  %477 = vmatprep.mubr.f32.mxu0 %v4929_v11 }
  0x22   :  { %2874 = vmatmul.mubr.msk.f32.gmra.mxu0 %vm280_vm0, %v62_v32  ;;  %272 = vperm.xlu1 %3001, %v118_v34  }
  0x23   :  { %277 = vperm.xlu0 %3000, %v119_v33   ;;  %483 = vmatprep.mubr.f32.mxu0 %v4929_v11 }
  0x26   :  { %2875 = vmatmul.mubr.msk.f32.gmra.mxu0 %vm280_vm0, %v63_v35  ;;  %262 = vperm.xlu1 %3001, %v116_v37  }
  0x27   :  { %267 = vperm.xlu0 %3000, %v117_v36   ;;  %489 = vmatprep.mubr.f32.mxu0 %v4929_v11 }
  0x28   :  { %19 = vsyncpa [#allocation3], 0  ;;  %v65_v41 = vld [vmem:[%s4916_s2 + $0x48] sm:$0xff]  ;;  %v112_v43 = vld [vmem:[%s4917_s3 + $0xc0] sm:$0xff] }
  0x29   :  { %v113_v42 = vld [vmem:[%s4917_s3 + $0xc8] sm:$0xff]  ;;  %v66_v44 = vld [vmem:[%s4916_s2 + $0x50] sm:$0xff]  ;;  %v111_v45 = vld [vmem:[%s4917_s3 + $0xb8] sm:$0xff] }
  0x2a   :  { %2876 = vmatmul.mubr.msk.f32.gmra.mxu0 %vm280_vm0, %v64_v38  ;;  %252 = vperm.xlu1 %3001, %v114_v40   ;;  %v110_v46 = vld [vmem:[%s4917_s3 + $0xb0] sm:$0xff]  ;;  %v67_v47 = vld [vmem:[%s4916_s2 + $0x58] sm:$0xff]  ;;  %v109_v48 = vld [vmem:[%s4917_s3 + $0xa8] sm:$0xff] }
  0x2b   :  { %257 = vperm.xlu0 %3000, %v115_v39   ;;  %495 = vmatprep.mubr.f32.mxu0 %v4929_v11  ;;  %v108_v49 = vld [vmem:[%s4917_s3 + $0xa0] sm:$0xff]  ;;  %v107_v51 = vld [vmem:[%s4917_s3 + $0x98] sm:$0xff]  ;;  %v106_v52 = vld [vmem:[%s4917_s3 + $0x90] sm:$0xff] }
  0x2c   :  { %v68_v50 = vld [vmem:[%s4916_s2 + $0x60] sm:$0xff]  ;;  %v69_v53 = vld [vmem:[%s4916_s2 + $0x68] sm:$0xff]  ;;  %v70_v56 = vld [vmem:[%s4916_s2 + $0x70] sm:$0xff] }
  0x2d   :  { %v105_v54 = vld [vmem:[%s4917_s3 + $0x88] sm:$0xff]  ;;  %v104_v55 = vld [vmem:[%s4917_s3 + $0x80] sm:$0xff]  ;;  %v745_v57 = vld [vmem:[%s4919_s5 + $0x78] sm:$0xff] }
  0x2e   :  { %2877 = vmatmul.mubr.msk.f32.gmra.mxu0 %vm280_vm0, %v65_v41  ;;  %242 = vperm.xlu1 %3001, %v112_v43   ;;  %v744_v58 = vld [vmem:[%s4919_s5 + $0x70] sm:$0xff]  ;;  %v71_v59 = vld [vmem:[%s4916_s2 + $0x78] sm:$0xff]  ;;  %v743_v60 = vld [vmem:[%s4919_s5 + $0x68] sm:$0xff] }
  0x2f   :  { %247 = vperm.xlu0 %3000, %v113_v42   ;;  %501 = vmatprep.mubr.f32.mxu0 %v4929_v11  ;;  %v742_v61 = vld [vmem:[%s4919_s5 + $0x60] sm:$0xff]  ;;  %v741_v63 = vld [vmem:[%s4919_s5 + $0x58] sm:$0xff]  ;;  %v740_v0 = vld [vmem:[%s4919_s5 + $0x50] sm:$0xff] }
  0x30   :  { %v72_v62 = vld [vmem:[%s4916_s2 + $0x80] sm:$0xff]  ;;  %v73_v1 = vld [vmem:[%s4916_s2 + $0x88] sm:$0xff]  ;;  %v74_v4 = vld [vmem:[%s4916_s2 + $0x90] sm:$0xff] }
  0x31   :  { %v739_v2 = vld [vmem:[%s4919_s5 + $0x48] sm:$0xff]  ;;  %v738_v3 = vld [vmem:[%s4919_s5 + $0x40] sm:$0xff]  ;;  %v737_v5 = vld [vmem:[%s4919_s5 + $0x38] sm:$0xff] }
  0x32   :  { %2878 = vmatmul.mubr.msk.f32.gmra.mxu0 %vm280_vm0, %v66_v44  ;;  %232 = vperm.xlu1 %3001, %v110_v46   ;;  %v736_v6 = vld [vmem:[%s4919_s5 + $0x30] sm:$0xff]  ;;  %v75_v7 = vld [vmem:[%s4916_s2 + $0x98] sm:$0xff]  ;;  %v735_v8 = vld [vmem:[%s4919_s5 + $0x28] sm:$0xff] }
  0x33   :  { %237 = vperm.xlu0 %3000, %v111_v45   ;;  %507 = vmatprep.mubr.f32.mxu0 %v4929_v11  ;;  %v734_v9 = vld [vmem:[%s4919_s5 + $0x20] sm:$0xff]  ;;  %v733_v12 = vld [vmem:[%s4919_s5 + $0x18] sm:$0xff]  ;;  %v732_v13 = vld [vmem:[%s4919_s5 + $0x10] sm:$0xff] }
  0x34   :  { %v76_v10 = vld [vmem:[%s4916_s2 + $0xa0] sm:$0xff]  ;;  %v77_v14 = vld [vmem:[%s4916_s2 + $0xa8] sm:$0xff]  ;;  %v78_v17 = vld [vmem:[%s4916_s2 + $0xb0] sm:$0xff] }
  0x35   :  { %v731_v15 = vld [vmem:[%s4919_s5 + $0x8] sm:$0xff]  ;;  %v730_v16 = vld [vmem:[%s4919_s5] sm:$0xff]  ;;  %v1379_v18 = vld [vmem:[%s4923_s9 + $0x78] sm:$0xff] }
  0x36   :  { %2879 = vmatmul.mubr.msk.f32.gmra.mxu0 %vm280_vm0, %v67_v47  ;;  %222 = vperm.xlu1 %3001, %v108_v49   ;;  %v1378_v19 = vld [vmem:[%s4923_s9 + $0x70] sm:$0xff]  ;;  %v79_v20 = vld [vmem:[%s4916_s2 + $0xb8] sm:$0xff]  ;;  %v1377_v21 = vld [vmem:[%s4923_s9 + $0x68] sm:$0xff] }
  0x37   :  { %227 = vperm.xlu0 %3000, %v109_v48   ;;  %513 = vmatprep.mubr.f32.mxu0 %v4929_v11  ;;  %v1376_v22 = vld [vmem:[%s4923_s9 + $0x60] sm:$0xff]  ;;  %v1375_v24 = vld [vmem:[%s4923_s9 + $0x58] sm:$0xff]  ;;  %v1374_v25 = vld [vmem:[%s4923_s9 + $0x50] sm:$0xff] }
  0x38   :  { %v80_v23 = vld [vmem:[%s4916_s2 + $0xc0] sm:$0xff]  ;;  %v81_v26 = vld [vmem:[%s4916_s2 + $0xc8] sm:$0xff]  ;;  %v82_v29 = vld [vmem:[%s4916_s2 + $0xd0] sm:$0xff] }
  0x39   :  { %v1373_v27 = vld [vmem:[%s4923_s9 + $0x48] sm:$0xff]  ;;  %v1372_v28 = vld [vmem:[%s4923_s9 + $0x40] sm:$0xff]  ;;  %v1371_v30 = vld [vmem:[%s4923_s9 + $0x38] sm:$0xff] }
  0x3a   :  { %2880 = vmatmul.mubr.msk.f32.gmra.mxu0 %vm280_vm0, %v68_v50  ;;  %212 = vperm.xlu1 %3001, %v106_v52   ;;  %v1370_v31 = vld [vmem:[%s4923_s9 + $0x30] sm:$0xff]  ;;  %v83_v32 = vld [vmem:[%s4916_s2 + $0xd8] sm:$0xff]  ;;  %v1369_v33 = vld [vmem:[%s4923_s9 + $0x28] sm:$0xff] }
  0x3b   :  { %217 = vperm.xlu0 %3000, %v107_v51   ;;  %519 = vmatprep.mubr.f32.mxu0 %v4929_v11  ;;  %v1368_v34 = vld [vmem:[%s4923_s9 + $0x20] sm:$0xff]  ;;  %v1367_v36 = vld [vmem:[%s4923_s9 + $0x18] sm:$0xff]  ;;  %v1366_v37 = vld [vmem:[%s4923_s9 + $0x10] sm:$0xff] }
  0x3c   :  { %v84_v35 = vld [vmem:[%s4916_s2 + $0xe0] sm:$0xff]  ;;  %v85_v38 = vld [vmem:[%s4916_s2 + $0xe8] sm:$0xff]  ;;  %v86_v41 = vld [vmem:[%s4916_s2 + $0xf0] sm:$0xff] }
  0x3d   :  { %v1365_v39 = vld [vmem:[%s4923_s9 + $0x8] sm:$0xff]  ;;  %v1364_v40 = vld [vmem:[%s4923_s9] sm:$0xff]  ;;  %v1395_v42 = vld [vmem:[%s4923_s9 + $0xf8] sm:$0xff] }
  0x3e   :  { %2881 = vmatmul.mubr.msk.f32.gmra.mxu0 %vm280_vm0, %v69_v53  ;;  %202 = vperm.xlu1 %3001, %v104_v55   ;;  %v1394_v43 = vld [vmem:[%s4923_s9 + $0xf0] sm:$0xff]  ;;  %v87_v44 = vld [vmem:[%s4916_s2 + $0xf8] sm:$0xff]  ;;  %v1393_v45 = vld [vmem:[%s4923_s9 + $0xe8] sm:$0xff] }
  0x3f   :  { %207 = vperm.xlu0 %3000, %v105_v54   ;;  %525 = vmatprep.mubr.f32.mxu0 %v4929_v11  ;;  %v1392_v46 = vld [vmem:[%s4923_s9 + $0xe0] sm:$0xff]  ;;  %v1391_v47 = vld [vmem:[%s4923_s9 + $0xd8] sm:$0xff]  ;;  %v1390_v48 = vld [vmem:[%s4923_s9 + $0xd0] sm:$0xff] }
  0x40   :  { %v1389_v49 = vld [vmem:[%s4923_s9 + $0xc8] sm:$0xff]  ;;  %v1388_v50 = vld [vmem:[%s4923_s9 + $0xc0] sm:$0xff]  ;;  %v1387_v51 = vld [vmem:[%s4923_s9 + $0xb8] sm:$0xff] }
  0x41   :  { %v1386_v52 = vld [vmem:[%s4923_s9 + $0xb0] sm:$0xff]  ;;  %v1385_v53 = vld [vmem:[%s4923_s9 + $0xa8] sm:$0xff]  ;;  %v1384_v54 = vld [vmem:[%s4923_s9 + $0xa0] sm:$0xff] }
  0x42   :  { %2882 = vmatmul.mubr.msk.f32.gmra.mxu0 %vm280_vm0, %v70_v56  ;;  %818 = vperm.xlu1 %3001, %v744_v58   ;;  %v1383_v55 = vld [vmem:[%s4923_s9 + $0x98] sm:$0xff]  ;;  %v1382_v56 = vld [vmem:[%s4923_s9 + $0x90] sm:$0xff]  ;;  %v1380_v58 = vld [vmem:[%s4923_s9 + $0x80] sm:$0xff] }
  0x43   :  { %823 = vperm.xlu0 %3000, %v745_v57   ;;  %531 = vmatprep.mubr.f32.mxu0 %v4929_v11  ;;  %v1381_v57 = vld [vmem:[%s4923_s9 + $0x88] sm:$0xff] }
  0x46   :  { %2883 = vmatmul.mubr.msk.f32.gmra.mxu0 %vm280_vm0, %v71_v59  ;;  %808 = vperm.xlu1 %3001, %v742_v61   ;;  %v2020_v59 = vld [vmem:[%s4925_s11 + $0x78] sm:$0xff]  ;;  %v2018_v61 = vld [vmem:[%s4925_s11 + $0x68] sm:$0xff] }
  0x47   :  { %813 = vperm.xlu0 %3000, %v743_v60   ;;  %537 = vmatprep.mubr.f32.mxu0 %v4929_v11  ;;  %v2019_v60 = vld [vmem:[%s4925_s11 + $0x70] sm:$0xff] }
  0x4a   :  { %2884 = vmatmul.mubr.msk.f32.gmra.mxu0 %vm280_vm0, %v72_v62  ;;  %798 = vperm.xlu1 %3001, %v740_v0   ;;  %v2017_v62 = vld [vmem:[%s4925_s11 + $0x60] sm:$0xff]  ;;  %v2015_v0 = vld [vmem:[%s4925_s11 + $0x50] sm:$0xff] }
  0x4b   :  { %803 = vperm.xlu0 %3000, %v741_v63   ;;  %543 = vmatprep.mubr.f32.mxu0 %v4929_v11  ;;  %v2016_v63 = vld [vmem:[%s4925_s11 + $0x58] sm:$0xff] }
  0x4e   :  { %2885 = vmatmul.mubr.msk.f32.gmra.mxu0 %vm280_vm0, %v73_v1  ;;  %788 = vperm.xlu1 %3001, %v738_v3   ;;  %v2014_v3 = vld [vmem:[%s4925_s11 + $0x48] sm:$0xff] }
  0x4f   :  { %793 = vperm.xlu0 %3000, %v739_v2   ;;  %549 = vmatprep.mubr.f32.mxu0 %v4929_v11 }
  0x52   :  { %2886 = vmatmul.mubr.msk.f32.gmra.mxu0 %vm280_vm0, %v74_v4  ;;  %778 = vperm.xlu1 %3001, %v736_v6   ;;  %v2013_v4 = vld [vmem:[%s4925_s11 + $0x40] sm:$0xff] }
  0x53   :  { %783 = vperm.xlu0 %3000, %v737_v5   ;;  %555 = vmatprep.mubr.f32.mxu0 %v4929_v11  ;;  %v2012_v5 = vld [vmem:[%s4925_s11 + $0x38] sm:$0xff] }
  0x56   :  { %2887 = vmatmul.mubr.msk.f32.gmra.mxu0 %vm280_vm0, %v75_v7  ;;  %768 = vperm.xlu1 %3001, %v734_v9   ;;  %v2011_v7 = vld [vmem:[%s4925_s11 + $0x30] sm:$0xff]  ;;  %v2010_v9 = vld [vmem:[%s4925_s11 + $0x28] sm:$0xff] }
  0x57   :  { %773 = vperm.xlu0 %3000, %v735_v8   ;;  %561 = vmatprep.mubr.f32.mxu0 %v4929_v11 }
  0x5a   :  { %2888 = vmatmul.mubr.msk.f32.gmra.mxu0 %vm280_vm0, %v76_v10  ;;  %758 = vperm.xlu1 %3001, %v732_v13   ;;  %v2009_v10 = vld [vmem:[%s4925_s11 + $0x20] sm:$0xff] }
  0x5b   :  { %763 = vperm.xlu0 %3000, %v733_v12   ;;  %567 = vmatprep.mubr.f32.mxu0 %v4929_v11 }
  0x5e   :  { %2889 = vmatmul.mubr.msk.f32.gmra.mxu0 %vm280_vm0, %v77_v14  ;;  %748 = vperm.xlu1 %3001, %v730_v16   ;;  %v2008_v14 = vld [vmem:[%s4925_s11 + $0x18] sm:$0xff]  ;;  %v2006_v16 = vld [vmem:[%s4925_s11 + $0x8] sm:$0xff] }
  0x5f   :  { %753 = vperm.xlu0 %3000, %v731_v15   ;;  %573 = vmatprep.mubr.f32.mxu0 %v4929_v11  ;;  %v2007_v15 = vld [vmem:[%s4925_s11 + $0x10] sm:$0xff] }
  0x62   :  { %2890 = vmatmul.mubr.msk.f32.gmra.mxu0 %vm280_vm0, %v78_v17  ;;  %1468 = vperm.xlu1 %3001, %v1378_v19  }
  0x63   :  { %1473 = vperm.xlu0 %3000, %v1379_v18   ;;  %579 = vmatprep.mubr.f32.mxu0 %v4929_v11  ;;  %v2005_v18 = vld [vmem:[%s4925_s11] sm:$0xff] }
  0x66   :  { %2891 = vmatmul.mubr.msk.f32.gmra.mxu0 %vm280_vm0, %v79_v20  ;;  %1458 = vperm.xlu1 %3001, %v1376_v22   ;;  %v1035_v20 = vld [vmem:[%s4921_s7] sm:$0xff] }
  0x67   :  { %1463 = vperm.xlu0 %3000, %v1377_v21   ;;  %585 = vmatprep.mubr.f32.mxu0 %v4929_v11  ;;  %v1036_v21 = vld [vmem:[%s4921_s7 + $0x8] sm:$0xff] }
  0x6a   :  { %2892 = vmatmul.mubr.msk.f32.gmra.mxu0 %vm280_vm0, %v80_v23  ;;  %1448 = vperm.xlu1 %3001, %v1374_v25   ;;  %v2311_v25 = vld [vmem:[%s4927_s13 + $0x8] sm:$0xff] }
  0x6b   :  { %1453 = vperm.xlu0 %3000, %v1375_v24   ;;  %591 = vmatprep.mubr.f32.mxu0 %v4929_v11  ;;  %v2310_v24 = vld [vmem:[%s4927_s13] sm:$0xff] }
  0x6e   :  { %2893 = vmatmul.mubr.msk.f32.gmra.mxu0 %vm280_vm0, %v81_v26  ;;  %1438 = vperm.xlu1 %3001, %v1372_v28   ;;  %v1037_v26 = vld [vmem:[%s4921_s7 + $0x10] sm:$0xff] }
  0x6f   :  { %1443 = vperm.xlu0 %3000, %v1373_v27   ;;  %597 = vmatprep.mubr.f32.mxu0 %v4929_v11  ;;  %v2312_v28 = vld [vmem:[%s4927_s13 + $0x10] sm:$0xff] }
  0x72   :  { %2894 = vmatmul.mubr.msk.f32.gmra.mxu0 %vm280_vm0, %v82_v29  ;;  %1428 = vperm.xlu1 %3001, %v1370_v31   ;;  %v1038_v31 = vld [vmem:[%s4921_s7 + $0x18] sm:$0xff] }
  0x73   :  { %1433 = vperm.xlu0 %3000, %v1371_v30   ;;  %603 = vmatprep.mubr.f32.mxu0 %v4929_v11 }
  0x76   :  { %2895 = vmatmul.mubr.msk.f32.gmra.mxu0 %vm280_vm0, %v83_v32  ;;  %1418 = vperm.xlu1 %3001, %v1368_v34  }
  0x77   :  { %1423 = vperm.xlu0 %3000, %v1369_v33   ;;  %609 = vmatprep.mubr.f32.mxu0 %v4929_v11  ;;  %v2313_v33 = vld [vmem:[%s4927_s13 + $0x18] sm:$0xff] }
  0x7a   :  { %2896 = vmatmul.mubr.msk.f32.gmra.mxu0 %vm280_vm0, %v84_v35  ;;  %1408 = vperm.xlu1 %3001, %v1366_v37   ;;  %v1039_v37 = vld [vmem:[%s4921_s7 + $0x20] sm:$0xff] }
  0x7b   :  { %1413 = vperm.xlu0 %3000, %v1367_v36   ;;  %615 = vmatprep.mubr.f32.mxu0 %v4929_v11 }
  0x7d   :  { %v3551_v2 = vpop.permute.xlu1 %187 }
  0x7e   :  { %2897 = vmatmul.mubr.msk.f32.gmra.mxu0 %vm280_vm0, %v85_v38  ;;  %1398 = vperm.xlu1 %3001, %v1364_v40   ;;  %v3549_v1 = vpop.permute.xlu0 %197 }
  0x7f   :  { %1403 = vperm.xlu0 %3000, %v1365_v39   ;;  %621 = vmatprep.mubr.f32.mxu0 %v4929_v11  ;;  %v2314_v39 = vld [vmem:[%s4927_s13 + $0x20] sm:$0xff] }
  0x81   :  { %v3567_v8 = vpop.permute.xlu1 %182 }
  0x82   :  { %2898 = vmatmul.mubr.msk.f32.gmra.mxu0 %vm280_vm0, %v86_v41  ;;  %1548 = vperm.xlu1 %3001, %v1394_v43   ;;  %v3562_v6 = vpop.permute.xlu0 %192  ;;  %v1040_v41 = vld [vmem:[%s4921_s7 + $0x28] sm:$0xff] }
  0x83   :  { %1553 = vperm.xlu0 %3000, %v1395_v42   ;;  %627 = vmatprep.mubr.f32.mxu0 %v4929_v11 }
  0x85   :  { %v3577_v13 = vpop.permute.xlu1 %172 }
  0x86   :  { %2899 = vmatmul.mubr.msk.f32.gmra.mxu0 %vm280_vm0, %v87_v44  ;;  %1538 = vperm.xlu1 %3001, %v1392_v46   ;;  %v3575_v12 = vpop.permute.xlu0 %177  ;;  %v2315_v44 = vld [vmem:[%s4927_s13 + $0x28] sm:$0xff] }
  0x87   :  { %1543 = vperm.xlu0 %3000, %v1393_v45  }
  0x89   :  { %v3593_v19 = vpop.permute.xlu1 %162 }
  0x8a   :  { %1528 = vperm.xlu1 %3001, %v1390_v48   ;;  %v3588_v17 = vpop.permute.xlu0 %167 }
  0x8b   :  { %1533 = vperm.xlu0 %3000, %v1391_v47   ;;  %v1041_v47 = vld [vmem:[%s4921_s7 + $0x30] sm:$0xff] }
  0x8d   :  { %v3603_v23 = vpop.permute.xlu1 %152 }
  0x8e   :  { %1518 = vperm.xlu1 %3001, %v1388_v50   ;;  %v3601_v22 = vpop.permute.xlu0 %157 }
  0x8f   :  { %1523 = vperm.xlu0 %3000, %v1389_v49   ;;  %v2316_v49 = vld [vmem:[%s4927_s13 + $0x30] sm:$0xff] }
  0x91   :  { %v3619_v29 = vpop.permute.xlu1 %142 }
  0x92   :  { %1508 = vperm.xlu1 %3001, %v1386_v52   ;;  %v3614_v27 = vpop.permute.xlu0 %147 }
  0x93   :  { %1513 = vperm.xlu0 %3000, %v1387_v51  }
  0x95   :  { %v3635_v36 = vpop.permute.xlu1 %132 }
  0x96   :  { %1498 = vperm.xlu1 %3001, %v1384_v54   ;;  %v3631_v34 = vpop.permute.xlu0 %137 }
  0x97   :  { %1503 = vperm.xlu0 %3000, %v1385_v53   ;;  %v1042_v53 = vld [vmem:[%s4921_s7 + $0x38] sm:$0xff] }
  0x99   :  { %v3657_v45 = vpop.permute.xlu1 %122 }
  0x9a   :  { %1488 = vperm.xlu1 %3001, %v1382_v56   ;;  %v3650_v42 = vpop.permute.xlu0 %127 }
  0x9b   :  { %1493 = vperm.xlu0 %3000, %v1383_v55   ;;  %v2317_v55 = vld [vmem:[%s4927_s13 + $0x38] sm:$0xff] }
  0x9d   :  { %v3673_v52 = vpop.permute.xlu1 %272 }
  0x9e   :  { %1478 = vperm.xlu1 %3001, %v1380_v58   ;;  %v3669_v50 = vpop.permute.xlu0 %277 }
  0x9f   :  { %1483 = vperm.xlu0 %3000, %v1381_v57   ;;  %v1043_v57 = vld [vmem:[%s4921_s7 + $0x40] sm:$0xff] }
  0xa2   :  { %2093 = vperm.xlu1 %3001, %v2019_v60   ;;  %v3688_v58 = vpop.permute.xlu0 %267  ;;  %v2318_v60 = vld [vmem:[%s4927_s13 + $0x40] sm:$0xff] }
  0xa3   :  { %2098 = vperm.xlu0 %3000, %v2020_v59  }
  0xa6   :  { %2083 = vperm.xlu1 %3001, %v2017_v62  }
  0xa7   :  { %2088 = vperm.xlu0 %3000, %v2018_v61   ;;  %v3695_v61 = vpop.permute.xlu1 %262 }
  0xaa   :  { %2073 = vperm.xlu1 %3001, %v2015_v0  }
  0xab   :  { %2078 = vperm.xlu0 %3000, %v2016_v63   ;;  %v1044_v63 = vld [vmem:[%s4921_s7 + $0x48] sm:$0xff] }
  0xae   :  { %2063 = vperm.xlu1 %3001, %v2013_v4   ;;  %v3707_v4 = vpop.permute.xlu0 %257 }
  0xaf   :  { %2068 = vperm.xlu0 %3000, %v2014_v3   ;;  %v2319_v3 = vld [vmem:[%s4927_s13 + $0x48] sm:$0xff] }
  0xb2   :  { %2053 = vperm.xlu1 %3001, %v2011_v7   ;;  %v3711_v7 = vpop.permute.xlu1 %252 }
  0xb3   :  { %2058 = vperm.xlu0 %3000, %v2012_v5   ;;  %4972 = vst [vmem:[#allocation5_spill] sm:$0xff] %v3711_v7 }
  0xb6   :  { %2043 = vperm.xlu1 %3001, %v2009_v10  }
  0xb7   :  { %2048 = vperm.xlu0 %3000, %v2010_v9   ;;  %v1045_v9 = vld [vmem:[%s4921_s7 + $0x50] sm:$0xff] }
  0xba   :  { %2033 = vperm.xlu1 %3001, %v2007_v15  }
  0xbb   :  { %2038 = vperm.xlu0 %3000, %v2008_v14   ;;  %v2320_v14 = vld [vmem:[%s4927_s13 + $0x50] sm:$0xff] }
  0xbe   :  { %2023 = vperm.xlu1 %3001, %v2005_v18   ;;  %v699_v18 = vld [vmem:[%s4918_s4 + $0x8] sm:$0xff] }
  0xbf   :  { %2028 = vperm.xlu0 %3000, %v2006_v16   ;;  %v1046_v16 = vld [vmem:[%s4921_s7 + $0x58] sm:$0xff]  ;;  %890 = vmatprep.mubr.f32.mxu0 %v699_v18 }
  0xc2   :  { %1058 = vperm.xlu1 %3001, %v1036_v21   ;;  %v3732_v21 = vpop.permute.xlu0 %247 }
  0xc3   :  { %1053 = vperm.xlu0 %3000, %v1035_v20   ;;  %v713_v20 = vld [vmem:[%s4918_s4 + $0x78] sm:$0xff]  ;;  %4973 = vst [vmem:[#allocation6_spill] sm:$0xff] %v3732_v21 }
  0xc4   :  { %932 = vmatprep.mubr.f32.mxu1 %v713_v20  ;;  %v2325_v20 = vld [vmem:[%s4927_s13 + $0x78] sm:$0xff] }
  0xc6   :  { %2333 = vperm.xlu1 %3001, %v2311_v25   ;;  %v2321_v25 = vld [vmem:[%s4927_s13 + $0x58] sm:$0xff] }
  0xc7   :  { %2328 = vperm.xlu0 %3000, %v2310_v24  }
  0xca   :  { %v3621_v30 = vpop.f32.mrf.mxu0  ;;  %2338 = vperm.xlu1 %3001, %v2312_v28  }
  0xcb   :  { %1063 = vperm.xlu0 %3000, %v1037_v26   ;;  %v3739_v26 = vpop.permute.xlu1 %242 }
  0xcc   :  { %v3626_v32 = vpop.f32.mrf.mxu0  ;;  %4974 = vst [vmem:[#allocation7_spill] sm:$0xff] %v3739_v26 }
  0xce   :  { %v3633_v35 = vpop.f32.mrf.mxu0  ;;  %2343 = vperm.xlu1 %3001, %v2313_v33  }
  0xcf   :  { %1068 = vperm.xlu0 %3000, %v1038_v31   ;;  %v1047_v31 = vld [vmem:[%s4921_s7 + $0x60] sm:$0xff] }
  0xd0   :  { %v3640_v38 = vpop.f32.mrf.mxu0 }
  0xd2   :  { %v3645_v40 = vpop.f32.mrf.mxu0  ;;  %2348 = vperm.xlu1 %3001, %v2314_v39   ;;  %v3751_v39 = vpop.permute.xlu0 %237 }
  0xd3   :  { %1073 = vperm.xlu0 %3000, %v1039_v37   ;;  %v2322_v37 = vld [vmem:[%s4927_s13 + $0x60] sm:$0xff]  ;;  %4975 = vst [vmem:[#allocation8_spill] sm:$0xff] %v3751_v39 }
  0xd4   :  { %v3652_v43 = vpop.f32.mrf.mxu0 }
  0xd6   :  { %v3659_v46 = vpop.f32.mrf.mxu0  ;;  %2353 = vperm.xlu1 %3001, %v2315_v44   ;;  %v3755_v44 = vpop.permute.xlu1 %232 }
  0xd7   :  { %1078 = vperm.xlu0 %3000, %v1040_v41   ;;  %4976 = vst [vmem:[#allocation9_spill] sm:$0xff] %v3755_v44 }
  0xd8   :  { %v3664_v48 = vpop.f32.mrf.mxu0 }
  0xda   :  { %v3671_v51 = vpop.f32.mrf.mxu0  ;;  %2358 = vperm.xlu1 %3001, %v2316_v49  }
  0xdb   :  { %1083 = vperm.xlu0 %3000, %v1041_v47   ;;  %v1048_v47 = vld [vmem:[%s4921_s7 + $0x68] sm:$0xff] }
  0xdc   :  { %v3678_v54 = vpop.f32.mrf.mxu0 }
  0xde   :  { %v3683_v56 = vpop.f32.mrf.mxu0  ;;  %2363 = vperm.xlu1 %3001, %v2317_v55  }
  0xdf   :  { %1088 = vperm.xlu0 %3000, %v1042_v53   ;;  %v2323_v53 = vld [vmem:[%s4927_s13 + $0x68] sm:$0xff] }
  0xe0   :  { %v3690_v59 = vpop.f32.mrf.mxu0 }
  0xe2   :  { %v3697_v62 = vpop.f32.mrf.mxu0  ;;  %2368 = vperm.xlu1 %3001, %v2318_v60   ;;  %v3766_v60 = vpop.permute.xlu0 %227 }
  0xe3   :  { %1093 = vperm.xlu0 %3000, %v1043_v57   ;;  %v1049_v57 = vld [vmem:[%s4921_s7 + $0x70] sm:$0xff]  ;;  %4977 = vst [vmem:[#allocation10_spill] sm:$0xff] %v3766_v60 }
  0xe4   :  { %v3702_v0 = vpop.f32.mrf.mxu0 }
  0xe6   :  { %v3709_v5 = vpop.f32.mrf.mxu0  ;;  %2373 = vperm.xlu1 %3001, %v2319_v3   ;;  %v2324_v3 = vld [vmem:[%s4927_s13 + $0x70] sm:$0xff] }
  0xe7   :  { %1098 = vperm.xlu0 %3000, %v1044_v63  }
  0xe8   :  { %v3716_v10 = vpop.f32.mrf.mxu0 }
  0xea   :  { %v3721_v15 = vpop.f32.mrf.mxu0  ;;  %2378 = vperm.xlu1 %3001, %v2320_v14  }
  0xeb   :  { %1103 = vperm.xlu0 %3000, %v1045_v9   ;;  %v3771_v9 = vpop.permute.xlu1 %222 }
  0xec   :  { %v3734_v24 = vpop.f32.mrf.mxu0  ;;  %4978 = vst [vmem:[#allocation11_spill] sm:$0xff] %v3771_v9 }
  0xee   :  { %v3741_v28 = vpop.f32.mrf.mxu0  ;;  %2383 = vperm.xlu1 %3001, %v2321_v25   ;;  %v3779_v25 = vpop.permute.xlu0 %217 }
  0xef   :  { %1108 = vperm.xlu0 %3000, %v1046_v16   ;;  %v1050_v16 = vld [vmem:[%s4921_s7 + $0x78] sm:$0xff]  ;;  %4979 = vst [vmem:[#allocation12_spill] sm:$0xff] %v3779_v25 }
  0xf0   :  { %v3746_v33 = vpop.f32.mrf.mxu0 }
  0xf2   :  { %v3753_v41 = vpop.f32.mrf.mxu0  ;;  %2388 = vperm.xlu1 %3001, %v2322_v37   ;;  %v3781_v37 = vpop.permute.xlu1 %212 }
  0xf3   :  { %1113 = vperm.xlu0 %3000, %v1047_v31   ;;  %4980 = vst [vmem:[#allocation13_spill] sm:$0xff] %v3781_v37 }
  0xf4   :  { %v505_v49 = vpop.f32.mrf.mxu0 }
  0xf6   :  { %v509_v55 = vpop.f32.mrf.mxu0  ;;  %2393 = vperm.xlu1 %3001, %v2323_v53  }
  0xf7   :  { %1118 = vperm.xlu0 %3000, %v1048_v47  }
  0xf8   :  { %v511_v63 = vpop.f32.mrf.mxu0 }
  0xfa   :  { %v515_v14 = vpop.f32.mrf.mxu0  ;;  %2398 = vperm.xlu1 %3001, %v2324_v3  }
  0xfb   :  { %1123 = vperm.xlu0 %3000, %v1049_v57  }
  0xfc   :  { %v517_v18 = vpop.f32.mrf.mxu0 }
  0xfd   :  { %v518_v7 = vadd.f32 %v517_v18, %v3567_v8 }
  0xfe   :  { %v521_v31 = vpop.f32.mrf.mxu0  ;;  %2403 = vperm.xlu1 %3001, %v2325_v20  }
  0xff   :  { %1128 = vperm.xlu0 %3000, %v1050_v16   ;;  %v522_v20 = vadd.f32 %v521_v31, %v3551_v2 }
 0x100   :  { %v523_v47 = vpop.f32.mrf.mxu0 }
 0x101   :  { %v524_v16 = vadd.f32 %v523_v47, %v3551_v2  ;;  %v660_v2 = vmax.f32 %v522_v20, 0.0 }
 0x102   :  { %v527_v53 = vpop.f32.mrf.mxu0 }
 0x103   :  { %v528_v39 = vadd.f32 %v527_v53, %v3562_v6 }
 0x104   :  { %v529_v57 = vpop.f32.mrf.mxu0 }
 0x105   :  { %v530_v60 = vadd.f32 %v529_v57, %v3562_v6  ;;  %v516_v57 = vadd.f32 %v515_v14, %v3567_v8  ;;  %v512_v6 = vadd.f32 %v511_v63, %v3575_v12  ;;  %v659_v8 = vmax.f32 %v518_v7, 0.0 }
 0x106   :  { %v533_v3 = vpop.f32.mrf.mxu0 }
 0x107   :  { %v534_v11 = vadd.f32 %v533_v3, %v3549_v1  ;;  %v663_v3 = vmax.f32 %v530_v60, 0.0  ;;  %v506_v60 = vadd.f32 %v505_v49, %v3577_v13  ;;  %v658_v14 = vmax.f32 %v516_v57, 0.0 }
 0x108   :  { %v535_v9 = vpop.f32.mrf.mxu0  ;;  %v498_v49 = vadd.f32 %v3741_v28, %v3588_v17 }
 0x109   :  { %v536_v44 = vadd.f32 %v535_v9, %v3549_v1  ;;  %v664_v37 = vmax.f32 %v534_v11, 0.0  ;;  %v662_v1 = vmax.f32 %v528_v39, 0.0  ;;  %v510_v11 = vadd.f32 %v509_v55, %v3575_v12 }
 0x10a   :  { %v3787_v26 = vpop.f32.mrf.mxu0  ;;  %v504_v39 = vadd.f32 %v3753_v41, %v3577_v13  ;;  %v500_v12 = vadd.f32 %v3746_v33, %v3588_v17  ;;  %v657_v55 = vmax.f32 %v512_v6, 0.0  ;;  %v494_v13 = vadd.f32 %v3734_v24, %v3593_v19 }
 0x10b   :  { %v665_v25 = vmax.f32 %v536_v44, 0.0  ;;  %v661_v44 = vmax.f32 %v524_v16, 0.0  ;;  %v656_v7 = vmax.f32 %v510_v11, 0.0  ;;  %v655_v41 = vmax.f32 %v506_v60, 0.0 }
 0x10c   :  { %v3791_v21 = vpop.f32.mrf.mxu0  ;;  %v492_v33 = vadd.f32 %v3721_v15, %v3593_v19  ;;  %v488_v17 = vadd.f32 %v3716_v10, %v3601_v22  ;;  %v653_v28 = vmax.f32 %v500_v12, 0.0  ;;  %v486_v24 = vadd.f32 %v3709_v5, %v3601_v22 }
 0x10d   :  { %826 = vmatprep.subr.mxu0 %v665_v25  ;;  %2932 = vmatprep.subr.mxu1 %v665_v25  ;;  %v654_v25 = vmax.f32 %v504_v39, 0.0  ;;  %v652_v47 = vmax.f32 %v498_v49, 0.0  ;;  %v482_v19 = vadd.f32 %v3702_v0, %v3603_v23  ;;  %v651_v15 = vmax.f32 %v494_v13, 0.0 }
 0x10e   :  { %v3795_v9 = vpop.f32.mrf.mxu0  ;;  %827 = vmatpush1.msra.mxu0 %v664_v37  ;;  %2964 = vmatpush1.msra.mxu1 %v664_v37  ;;  %v480_v10 = vadd.f32 %v3697_v62, %v3603_v23  ;;  %v650_v16 = vmax.f32 %v492_v33, 0.0  ;;  %v476_v22 = vadd.f32 %v3690_v59, %v3614_v27  ;;  %v649_v5 = vmax.f32 %v488_v17, 0.0 }
 0x10f   :  { %828 = vmatprep.subr.mxu0 %v663_v3  ;;  %2933 = vmatprep.subr.mxu1 %v663_v3  ;;  %v474_v0 = vadd.f32 %v3683_v56, %v3614_v27  ;;  %v648_v3 = vmax.f32 %v486_v24, 0.0  ;;  %v470_v23 = vadd.f32 %v3678_v54, %v3619_v29  ;;  %v647_v62 = vmax.f32 %v482_v19, 0.0 }
 0x110   :  { %v3799_v31 = vpop.f32.mrf.mxu0  ;;  %829 = vmatpush1.msra.mxu0 %v662_v1  ;;  %2965 = vmatpush1.msra.mxu1 %v662_v1  ;;  %v468_v59 = vadd.f32 %v3671_v51, %v3619_v29  ;;  %v646_v1 = vmax.f32 %v480_v10, 0.0  ;;  %v464_v27 = vadd.f32 %v3664_v48, %v3631_v34  ;;  %v645_v56 = vmax.f32 %v476_v22, 0.0 }
 0x111   :  { %830 = vmatprep.subr.mxu0 %v661_v44  ;;  %2934 = vmatprep.subr.mxu1 %v661_v44  ;;  %v462_v54 = vadd.f32 %v3659_v46, %v3631_v34  ;;  %v644_v44 = vmax.f32 %v474_v0, 0.0  ;;  %v458_v29 = vadd.f32 %v3652_v43, %v3635_v36  ;;  %v643_v51 = vmax.f32 %v470_v23, 0.0 }
 0x112   :  { %v3804_v63 = vpop.f32.mrf.mxu0  ;;  %831 = vmatpush1.msra.mxu0 %v660_v2  ;;  %2966 = vmatpush1.msra.mxu1 %v660_v2  ;;  %v456_v48 = vadd.f32 %v3645_v40, %v3635_v36  ;;  %v642_v2 = vmax.f32 %v468_v59, 0.0  ;;  %v452_v34 = vadd.f32 %v3640_v38, %v3650_v42  ;;  %v641_v46 = vmax.f32 %v464_v27, 0.0 }
 0x113   :  { %832 = vmatprep.subr.mxu0 %v659_v8  ;;  %2935 = vmatprep.subr.mxu1 %v659_v8  ;;  %v450_v43 = vadd.f32 %v3633_v35, %v3650_v42  ;;  %v640_v8 = vmax.f32 %v462_v54, 0.0  ;;  %v446_v36 = vadd.f32 %v3626_v32, %v3657_v45  ;;  %v639_v40 = vmax.f32 %v458_v29, 0.0 }
 0x114   :  { %v3810_v18 = vpop.f32.mrf.mxu0  ;;  %833 = vmatpush1.msra.mxu0 %v658_v14  ;;  %2967 = vmatpush1.msra.mxu1 %v658_v14  ;;  %v444_v38 = vadd.f32 %v3621_v30, %v3657_v45  ;;  %v638_v14 = vmax.f32 %v456_v48, 0.0  ;;  %v637_v35 = vmax.f32 %v452_v34, 0.0 }
 0x115   :  { %834 = vmatprep.subr.mxu0 %v657_v55  ;;  %2936 = vmatprep.subr.mxu1 %v657_v55  ;;  %v636_v42 = vmax.f32 %v450_v43, 0.0  ;;  %v635_v32 = vmax.f32 %v446_v36, 0.0  ;;  %v4982_v43 = vld [vmem:[#allocation6_spill] sm:$0xff] }
 0x116   :  { %v3816_v37 = vpop.f32.mrf.mxu0  ;;  %835 = vmatpush1.msra.mxu0 %v656_v7  ;;  %2968 = vmatpush1.msra.mxu1 %v656_v7  ;;  %v634_v49 = vmax.f32 %v444_v38, 0.0  ;;  %v4983_v38 = vld [vmem:[#allocation7_spill] sm:$0xff] }
 0x117   :  { %836 = vmatprep.subr.mxu0 %v655_v41  ;;  %2937 = vmatprep.subr.mxu1 %v655_v41 }
 0x118   :  { %v3822_v53 = vpop.f32.mrf.mxu0  ;;  %837 = vmatpush1.msra.mxu0 %v654_v25  ;;  %2969 = vmatpush1.msra.mxu1 %v654_v25 }
 0x119   :  { %838 = vmatprep.subr.mxu0 %v653_v28  ;;  %2938 = vmatprep.subr.mxu1 %v653_v28 }
 0x11a   :  { %v3828_v20 = vpop.f32.mrf.mxu0  ;;  %839 = vmatpush1.msra.mxu0 %v652_v47  ;;  %2970 = vmatpush1.msra.mxu1 %v652_v47 }
 0x11b   :  { %840 = vmatprep.subr.mxu0 %v651_v15  ;;  %2939 = vmatprep.subr.mxu1 %v651_v15 }
 0x11c   :  { %v3834_v57 = vpop.f32.mrf.mxu0  ;;  %841 = vmatpush1.msra.mxu0 %v650_v16  ;;  %2971 = vmatpush1.msra.mxu1 %v650_v16 }
 0x11d   :  { %842 = vmatprep.subr.mxu0 %v649_v5  ;;  %2940 = vmatprep.subr.mxu1 %v649_v5 }
 0x11e   :  { %v3840_v6 = vpop.f32.mrf.mxu0  ;;  %843 = vmatpush1.msra.mxu0 %v648_v3  ;;  %2972 = vmatpush1.msra.mxu1 %v648_v3 }
 0x11f   :  { %844 = vmatprep.subr.mxu0 %v647_v62  ;;  %2941 = vmatprep.subr.mxu1 %v647_v62 }
 0x120   :  { %v3846_v11 = vpop.f32.mrf.mxu0  ;;  %845 = vmatpush1.msra.mxu0 %v646_v1  ;;  %2973 = vmatpush1.msra.mxu1 %v646_v1 }
 0x121   :  { %846 = vmatprep.subr.mxu0 %v645_v56  ;;  %2942 = vmatprep.subr.mxu1 %v645_v56 }
 0x122   :  { %v3852_v60 = vpop.f32.mrf.mxu0  ;;  %847 = vmatpush1.msra.mxu0 %v644_v44  ;;  %2974 = vmatpush1.msra.mxu1 %v644_v44 }
 0x123   :  { %848 = vmatprep.subr.mxu0 %v643_v51  ;;  %2943 = vmatprep.subr.mxu1 %v643_v51 }
 0x124   :  { %v3858_v39 = vpop.f32.mrf.mxu0  ;;  %849 = vmatpush1.msra.mxu0 %v642_v2  ;;  %2975 = vmatpush1.msra.mxu1 %v642_v2 }
 0x125   :  { %850 = vmatprep.subr.mxu0 %v641_v46  ;;  %2944 = vmatprep.subr.mxu1 %v641_v46 }
 0x126   :  { %v3864_v12 = vpop.f32.mrf.mxu0  ;;  %851 = vmatpush1.msra.mxu0 %v640_v8  ;;  %2976 = vmatpush1.msra.mxu1 %v640_v8 }
 0x127   :  { %852 = vmatprep.subr.mxu0 %v639_v40  ;;  %2945 = vmatprep.subr.mxu1 %v639_v40 }
 0x128   :  { %v3866_v55 = vpop.f32.mrf.mxu0  ;;  %853 = vmatpush1.msra.mxu0 %v638_v14  ;;  %2977 = vmatpush1.msra.mxu1 %v638_v14 }
 0x129   :  { %854 = vmatprep.subr.mxu0 %v637_v35  ;;  %2946 = vmatprep.subr.mxu1 %v637_v35 }
 0x12a   :  { %v3868_v7 = vpop.f32.mrf.mxu0  ;;  %855 = vmatpush1.msra.mxu0 %v636_v42  ;;  %2978 = vmatpush1.msra.mxu1 %v636_v42 }
 0x12b   :  { %856 = vmatprep.subr.mxu0 %v635_v32  ;;  %2947 = vmatprep.subr.mxu1 %v635_v32  ;;  %v588_v42 = vadd.f32 %v3868_v7, %v4983_v38 }
 0x12c   :  { %v589_v30 = vpop.f32.mrf.mxu0  ;;  %857 = vmatpush1.msra.mxu0 %v634_v49  ;;  %2979 = vmatpush1.msra.mxu1 %v634_v49  ;;  %v4984_v49 = vld [vmem:[#allocation8_spill] sm:$0xff] }
 0x12d   :  { %v590_v14 = vadd.f32 %v589_v30, %v4983_v38  ;;  %v4985_v30 = vld [vmem:[#allocation9_spill] sm:$0xff] }
 0x12e   :  { %v593_v45 = vpop.f32.mrf.mxu0  ;;  %v576_v7 = vadd.f32 %v3852_v60, %v4985_v30  ;;  %v719_v38 = vld [vmem:[%s4918_s4 + $0xa8] sm:$0xff] }
 0x130   :  { %v595_v13 = vpop.f32.mrf.mxu0 }
 0x131   :  { %v596_v8 = vadd.f32 %v595_v13, %v4982_v43  ;;  %v584_v13 = vadd.f32 %v3866_v55, %v4984_v49  ;;  %v4986_v55 = vld [vmem:[#allocation10_spill] sm:$0xff] }
 0x132   :  { %v599_v41 = vpop.f32.mrf.mxu0 }
 0x134   :  { %v601_v33 = vpop.f32.mrf.mxu0 }
 0x136   :  { %v605_v25 = vpop.f32.mrf.mxu0 }
 0x138   :  { %v607_v17 = vpop.f32.mrf.mxu0 }
 0x13a   :  { %v611_v28 = vpop.f32.mrf.mxu0 }
 0x13b   :  { %v612_v44 = vadd.f32 %v611_v28, %v3695_v61  ;;  %v682_v28 = vmax.f32 %v588_v42, 0.0  ;;  %v704_v42 = vld [vmem:[%s4918_s4 + $0x30] sm:$0xff] }
 0x13c   :  { %v613_v24 = vpop.f32.mrf.mxu0 }
 0x13d   :  { %v614_v56 = vadd.f32 %v613_v24, %v3695_v61  ;;  %v690_v46 = vmax.f32 %v612_v44, 0.0  ;;  %v572_v24 = vadd.f32 %v3846_v11, %v4986_v55  ;;  %v4988_v11 = vld [vmem:[#allocation12_spill] sm:$0xff] }
 0x13e   :  { %v617_v47 = vpop.f32.mrf.mxu0 }
 0x13f   :  { %v618_v1 = vadd.f32 %v617_v47, %v3688_v58  ;;  %v691_v34 = vmax.f32 %v614_v56, 0.0  ;;  %v681_v47 = vmax.f32 %v584_v13, 0.0  ;;  %v721_v13 = vld [vmem:[%s4918_s4 + $0xb8] sm:$0xff] }
 0x140   :  { %v619_v19 = vpop.f32.mrf.mxu0 }
 0x141   :  { %v620_v62 = vadd.f32 %v619_v19, %v3688_v58  ;;  %v692_v48 = vmax.f32 %v618_v1, 0.0  ;;  %v4981_v58 = vld [vmem:[#allocation5_spill] sm:$0xff] }
 0x142   :  { %v623_v15 = vpop.f32.mrf.mxu0  ;;  %v602_v2 = vadd.f32 %v601_v33, %v4981_v58  ;;  %v600_v61 = vadd.f32 %v599_v41, %v4981_v58  ;;  %v685_v41 = vmax.f32 %v596_v8, 0.0  ;;  %v1330_v58 = vld [vmem:[%s4915_s1 + $0x30] sm:$0xff]  ;;  %v1328_v8 = vld [vmem:[%s4915_s1 + $0x20] sm:$0xff] }
 0x143   :  { %v624_v23 = vadd.f32 %v623_v15, %v3673_v52  ;;  %v693_v51 = vmax.f32 %v620_v62, 0.0 }
 0x144   :  { %v625_v10 = vpop.f32.mrf.mxu0  ;;  %v687_v35 = vmax.f32 %v602_v2, 0.0  ;;  %v686_v32 = vmax.f32 %v600_v61, 0.0  ;;  %v700_v2 = vld [vmem:[%s4918_s4 + $0x10] sm:$0xff]  ;;  %v703_v61 = vld [vmem:[%s4918_s4 + $0x28] sm:$0xff] }
 0x145   :  { %v626_v0 = vadd.f32 %v625_v10, %v3673_v52  ;;  %v694_v29 = vmax.f32 %v624_v23, 0.0  ;;  %v606_v52 = vadd.f32 %v605_v25, %v3707_v4  ;;  %v578_v25 = vadd.f32 %v3858_v39, %v4985_v30  ;;  %v4987_v39 = vld [vmem:[#allocation11_spill] sm:$0xff] }
 0x146   :  { %v629_v16 = vpop.f32.mrf.mxu0  ;;  %v566_v15 = vadd.f32 %v3834_v57, %v4987_v39  ;;  %v564_v60 = vadd.f32 %v3828_v20, %v4987_v39  ;;  %v4989_v57 = vld [vmem:[#allocation13_spill] sm:$0xff]  ;;  %v208_v20 = vpop.permute.xlu0 %207  ;;  %v720_v30 = vld [vmem:[%s4918_s4 + $0xb0] sm:$0xff]  ;;  %v4990_v39 = vmov 0.0  }
 0x147   :  { %v630_v22 = vadd.f32 %v629_v16, %v3669_v50  ;;  %v695_v54 = vmax.f32 %v626_v0, 0.0  ;;  %v688_v40 = vmax.f32 %v606_v52, 0.0  ;;  %v679_v10 = vmax.f32 %v578_v25, 0.0  ;;  %v715_v52 = vld [vmem:[%s4918_s4 + $0x88] sm:$0xff]  ;;  %v709_v25 = vld [vmem:[%s4918_s4 + $0x58] sm:$0xff] }
 0x148   :  { %v631_v5 = vpop.f32.mrf.mxu0  ;;  %v678_v16 = vmax.f32 %v576_v7, 0.0  ;;  %v675_v23 = vmax.f32 %v566_v15, 0.0  ;;  %v552_v62 = vadd.f32 %v3804_v63, %v4989_v57  ;;  %v708_v7 = vld [vmem:[%s4918_s4 + $0x50] sm:$0xff]  ;;  %v726_v15 = vld [vmem:[%s4918_s4 + $0xe0] sm:$0xff] }
 0x149   :  { %v632_v3 = vadd.f32 %v631_v5, %v3669_v50  ;;  %v696_v27 = vmax.f32 %v630_v22, 0.0  ;;  %v608_v50 = vadd.f32 %v607_v17, %v3707_v4  ;;  %v594_v4 = vadd.f32 %v593_v45, %v4982_v43  ;;  %v1329_v43 = vld [vmem:[%s4915_s1 + $0x28] sm:$0xff] }
 0x14a   :  { %v582_v45 = vadd.f32 %v3864_v12, %v4984_v49  ;;  %v683_v17 = vmax.f32 %v590_v14, 0.0  ;;  %v570_v12 = vadd.f32 %v3840_v6, %v4986_v55  ;;  %v560_v22 = vadd.f32 %v3822_v53, %v4988_v11  ;;  %v1327_v14 = vld [vmem:[%s4915_s1 + $0x18] sm:$0xff]  ;;  %v707_v49 = vld [vmem:[%s4918_s4 + $0x48] sm:$0xff] }
 0x14b   :  { %v697_v59 = vmax.f32 %v632_v3, 0.0  ;;  %v689_v36 = vmax.f32 %v608_v50, 0.0  ;;  %v684_v33 = vmax.f32 %v594_v4, 0.0  ;;  %v677_v5 = vmax.f32 %v572_v24, 0.0  ;;  %v716_v4 = vld [vmem:[%s4918_s4 + $0x90] sm:$0xff]  ;;  %v711_v55 = vld [vmem:[%s4918_s4 + $0x68] sm:$0xff] }
 0x14c   :  { %v680_v19 = vmax.f32 %v582_v45, 0.0  ;;  %v558_v6 = vadd.f32 %v3816_v37, %v4988_v11  ;;  %v676_v0 = vmax.f32 %v570_v12, 0.0  ;;  %v554_v3 = vadd.f32 %v3810_v18, %v4989_v57  ;;  %v203_v37 = vpop.permute.xlu1 %202  ;;  %v1324_v45 = vld [vmem:[%s4915_s1] sm:$0xff]  ;;  %v725_v24 = vld [vmem:[%s4918_s4 + $0xd8] sm:$0xff]  ;;  %v724_v12 = vld [vmem:[%s4918_s4 + $0xd0] sm:$0xff] }
 0x14d   :  { %858 = vmatprep.subr.mxu0 %v697_v59  ;;  %2948 = vmatprep.subr.mxu1 %v697_v59  ;;  %v674_v53 = vmax.f32 %v564_v60, 0.0  ;;  %v548_v59 = vadd.f32 %v3799_v31, %v208_v20  ;;  %v673_v1 = vmax.f32 %v560_v22, 0.0  ;;  %v542_v18 = vadd.f32 %v3791_v21, %v203_v37  ;;  %v698_v21 = vld [vmem:[%s4918_s4] sm:$0xff]  ;;  %v729_v60 = vld [vmem:[%s4918_s4 + $0xf8] sm:$0xff]  ;;  %v1333_v11 = vld [vmem:[%s4922_s8 + $0x8] sm:$0xff] }
 0x14e   :  { %859 = vmatpush2.msra.mxu0 %v696_v27  ;;  %2980 = vmatpush2.msra.mxu1 %v696_v27  ;;  %v546_v27 = vadd.f32 %v3795_v9, %v208_v20  ;;  %v672_v56 = vmax.f32 %v558_v6, 0.0  ;;  %v540_v63 = vadd.f32 %v3787_v26, %v203_v37  ;;  %v670_v44 = vmax.f32 %v552_v62, 0.0  ;;  %v712_v26 = vld [vmem:[%s4918_s4 + $0x70] sm:$0xff]  ;;  %v1336_v6 = vld [vmem:[%s4922_s8 + $0x20] sm:$0xff]  ;;  %v1341_v20 = vld [vmem:[%s4922_s8 + $0x48] sm:$0xff] }
 0x14f   :  { %860 = vmatprep.subr.mxu0 %v695_v54  ;;  %2949 = vmatprep.subr.mxu1 %v695_v54  ;;  %v671_v54 = vmax.f32 %v554_v3, 0.0  ;;  %v669_v31 = vmax.f32 %v548_v59, 0.0  ;;  %v667_v9 = vmax.f32 %v542_v18, 0.0  ;;  %v1334_v22 = vld [vmem:[%s4922_s8 + $0x10] sm:$0xff]  ;;  %v1339_v3 = vld [vmem:[%s4922_s8 + $0x38] sm:$0xff]  ;;  %v1344_v59 = vld [vmem:[%s4922_s8 + $0x60] sm:$0xff] }
 0x150   :  { %861 = vmatpush2.msra.mxu0 %v694_v29  ;;  %2981 = vmatpush2.msra.mxu1 %v694_v29  ;;  %v668_v29 = vmax.f32 %v546_v27, 0.0  ;;  %v666_v50 = vmax.f32 %v540_v63, 0.0  ;;  %v1338_v57 = vld [vmem:[%s4922_s8 + $0x30] sm:$0xff]  ;;  %v1347_v27 = vld [vmem:[%s4922_s8 + $0x78] sm:$0xff]  ;;  %v1349_v18 = vld [vmem:[%s4922_s8 + $0x88] sm:$0xff] }
 0x151   :  { %862 = vmatprep.subr.mxu0 %v693_v51  ;;  %2950 = vmatprep.subr.mxu1 %v693_v51  ;;  %v701_v51 = vld [vmem:[%s4918_s4 + $0x18] sm:$0xff]  ;;  %v1342_v62 = vld [vmem:[%s4922_s8 + $0x50] sm:$0xff] }
 0x152   :  { %863 = vmatpush2.msra.mxu0 %v692_v48  ;;  %2982 = vmatpush2.msra.mxu1 %v692_v48  ;;  %v1331_v48 = vld [vmem:[%s4915_s1 + $0x38] sm:$0xff]  ;;  %v1346_v37 = vld [vmem:[%s4922_s8 + $0x70] sm:$0xff] }
 0x153   :  { %864 = vmatprep.subr.mxu0 %v691_v34  ;;  %2951 = vmatprep.subr.mxu1 %v691_v34  ;;  %v714_v34 = vld [vmem:[%s4918_s4 + $0x80] sm:$0xff]  ;;  %v1351_v63 = vld [vmem:[%s4922_s8 + $0x98] sm:$0xff] }
 0x154   :  { %865 = vmatpush2.msra.mxu0 %v690_v46  ;;  %2983 = vmatpush2.msra.mxu1 %v690_v46  ;;  %v717_v46 = vld [vmem:[%s4918_s4 + $0x98] sm:$0xff] }
 0x155   :  { %866 = vmatprep.subr.mxu0 %v689_v36  ;;  %2952 = vmatprep.subr.mxu1 %v689_v36  ;;  %v702_v36 = vld [vmem:[%s4918_s4 + $0x20] sm:$0xff] }
 0x156   :  { %867 = vmatpush2.msra.mxu0 %v688_v40  ;;  %2984 = vmatpush2.msra.mxu1 %v688_v40  ;;  %v705_v40 = vld [vmem:[%s4918_s4 + $0x38] sm:$0xff] }
 0x157   :  { %868 = vmatprep.subr.mxu0 %v687_v35  ;;  %2953 = vmatprep.subr.mxu1 %v687_v35  ;;  %v1326_v35 = vld [vmem:[%s4915_s1 + $0x10] sm:$0xff] }
 0x158   :  { %869 = vmatpush2.msra.mxu0 %v686_v32  ;;  %2985 = vmatpush2.msra.mxu1 %v686_v32  ;;  %v718_v32 = vld [vmem:[%s4918_s4 + $0xa0] sm:$0xff] }
 0x159   :  { %870 = vmatprep.subr.mxu0 %v685_v41  ;;  %2954 = vmatprep.subr.mxu1 %v685_v41  ;;  %v1325_v41 = vld [vmem:[%s4915_s1 + $0x8] sm:$0xff] }
 0x15a   :  { %871 = vmatpush2.msra.mxu0 %v684_v33  ;;  %2986 = vmatpush2.msra.mxu1 %v684_v33  ;;  %v706_v33 = vld [vmem:[%s4918_s4 + $0x40] sm:$0xff] }
 0x15b   :  { %872 = vmatprep.subr.mxu0 %v683_v17  ;;  %2955 = vmatprep.subr.mxu1 %v683_v17  ;;  %v723_v17 = vld [vmem:[%s4918_s4 + $0xc8] sm:$0xff] }
 0x15c   :  { %873 = vmatpush2.msra.mxu0 %v682_v28  ;;  %2987 = vmatpush2.msra.mxu1 %v682_v28  ;;  %v722_v28 = vld [vmem:[%s4918_s4 + $0xc0] sm:$0xff] }
 0x15d   :  { %874 = vmatprep.subr.mxu0 %v681_v47  ;;  %2956 = vmatprep.subr.mxu1 %v681_v47  ;;  %v710_v47 = vld [vmem:[%s4918_s4 + $0x60] sm:$0xff] }
 0x15e   :  { %875 = vmatpush2.msra.mxu0 %v680_v19  ;;  %2988 = vmatpush2.msra.mxu1 %v680_v19  ;;  %v727_v19 = vld [vmem:[%s4918_s4 + $0xe8] sm:$0xff] }
 0x15f   :  { %876 = vmatprep.subr.mxu0 %v679_v10  ;;  %2957 = vmatprep.subr.mxu1 %v679_v10  ;;  %v1332_v10 = vld [vmem:[%s4922_s8] sm:$0xff] }
 0x160   :  { %877 = vmatpush2.msra.mxu0 %v678_v16  ;;  %2989 = vmatpush2.msra.mxu1 %v678_v16  ;;  %v728_v16 = vld [vmem:[%s4918_s4 + $0xf0] sm:$0xff] }
 0x161   :  { %878 = vmatprep.subr.mxu0 %v677_v5  ;;  %2958 = vmatprep.subr.mxu1 %v677_v5  ;;  %v1335_v5 = vld [vmem:[%s4922_s8 + $0x18] sm:$0xff] }
 0x162   :  { %879 = vmatpush2.msra.mxu0 %v676_v0  ;;  %2990 = vmatpush2.msra.mxu1 %v676_v0  ;;  %v1337_v0 = vld [vmem:[%s4922_s8 + $0x28] sm:$0xff] }
 0x163   :  { %880 = vmatprep.subr.mxu0 %v675_v23  ;;  %2959 = vmatprep.subr.mxu1 %v675_v23  ;;  %v1340_v23 = vld [vmem:[%s4922_s8 + $0x40] sm:$0xff] }
 0x164   :  { %881 = vmatpush2.msra.mxu0 %v674_v53  ;;  %2991 = vmatpush2.msra.mxu1 %v674_v53  ;;  %v1343_v53 = vld [vmem:[%s4922_s8 + $0x58] sm:$0xff] }
 0x165   :  { %882 = vmatprep.subr.mxu0 %v673_v1  ;;  %2960 = vmatprep.subr.mxu1 %v673_v1  ;;  %v1345_v1 = vld [vmem:[%s4922_s8 + $0x68] sm:$0xff] }
 0x166   :  { %883 = vmatpush2.msra.mxu0 %v672_v56  ;;  %2992 = vmatpush2.msra.mxu1 %v672_v56  ;;  %v1348_v56 = vld [vmem:[%s4922_s8 + $0x80] sm:$0xff] }
 0x167   :  { %884 = vmatprep.subr.mxu0 %v671_v54  ;;  %2961 = vmatprep.subr.mxu1 %v671_v54  ;;  %v1350_v54 = vld [vmem:[%s4922_s8 + $0x90] sm:$0xff] }
 0x168   :  { %885 = vmatpush2.msra.mxu0 %v670_v44  ;;  %2993 = vmatpush2.msra.mxu1 %v670_v44  ;;  %v1352_v44 = vld [vmem:[%s4922_s8 + $0xa0] sm:$0xff] }
 0x169   :  { %886 = vmatprep.subr.mxu0 %v669_v31  ;;  %2962 = vmatprep.subr.mxu1 %v669_v31  ;;  %v1353_v31 = vld [vmem:[%s4922_s8 + $0xa8] sm:$0xff] }
 0x16a   :  { %887 = vmatpush2.msra.mxu0 %v668_v29  ;;  %2994 = vmatpush2.msra.mxu1 %v668_v29  ;;  %v1354_v29 = vld [vmem:[%s4922_s8 + $0xb0] sm:$0xff] }
 0x16b   :  { %888 = vmatprep.subr.mxu0 %v667_v9  ;;  %2963 = vmatprep.subr.mxu1 %v667_v9  ;;  %v1355_v9 = vld [vmem:[%s4922_s8 + $0xb8] sm:$0xff] }
 0x16c   :  { %889 = vmatpush2.msra.mxu0 %v666_v50  ;;  %2995 = vmatpush2.msra.mxu1 %v666_v50  ;;  %v1356_v50 = vld [vmem:[%s4922_s8 + $0xc0] sm:$0xff] }
 0x16d   :  { %891 = vmatmul.mubr.f32.vlgmr.msra.gmra.mxu0 %v698_v21  ;;  %933 = vmatmul.mubr.f32.vlgmr.msra.gmra.mxu1 %v712_v26  ;;  %v1357_v21 = vld [vmem:[%s4922_s8 + $0xc8] sm:$0xff]  ;;  %v1358_v26 = vld [vmem:[%s4922_s8 + $0xd0] sm:$0xff] }
 0x16e   :  { %896 = vmatprep.mubr.f32.mxu0 %v701_v51  ;;  %938 = vmatprep.mubr.f32.mxu1 %v715_v52  ;;  %v1359_v51 = vld [vmem:[%s4922_s8 + $0xd8] sm:$0xff]  ;;  %v1360_v52 = vld [vmem:[%s4922_s8 + $0xe0] sm:$0xff] }
 0x16f   :  { %1676 = vmatprep.subr.mxu0 %v1331_v48  ;;  %v1361_v48 = vld [vmem:[%s4922_s8 + $0xe8] sm:$0xff] }
 0x170   :  { %1677 = vmatpush1.msra.mxu0 %v1330_v58  ;;  %v1362_v58 = vld [vmem:[%s4922_s8 + $0xf0] sm:$0xff] }
 0x171   :  { %897 = vmatmul.mubr.f32.gmra.mxu0 %v700_v2  ;;  %939 = vmatmul.mubr.f32.gmra.mxu1 %v714_v34  ;;  %v1363_v2 = vld [vmem:[%s4922_s8 + $0xf8] sm:$0xff] }
 0x172   :  { %902 = vmatprep.mubr.f32.mxu0 %v703_v61  ;;  %944 = vmatprep.mubr.f32.mxu1 %v717_v46 }
 0x173   :  { %1678 = vmatprep.subr.mxu0 %v1329_v43 }
 0x174   :  { %1679 = vmatpush1.msra.mxu0 %v1328_v8 }
 0x175   :  { %903 = vmatmul.mubr.f32.gmra.mxu0 %v702_v36  ;;  %945 = vmatmul.mubr.f32.gmra.mxu1 %v716_v4 }
 0x176   :  { %908 = vmatprep.mubr.f32.mxu0 %v705_v40  ;;  %950 = vmatprep.mubr.f32.mxu1 %v719_v38 }
 0x177   :  { %1680 = vmatprep.subr.mxu0 %v1327_v14 }
 0x178   :  { %1681 = vmatpush1.msra.mxu0 %v1326_v35 }
 0x179   :  { %909 = vmatmul.mubr.f32.gmra.mxu0 %v704_v42  ;;  %951 = vmatmul.mubr.f32.gmra.mxu1 %v718_v32 }
 0x17a   :  { %914 = vmatprep.mubr.f32.mxu0 %v707_v49  ;;  %956 = vmatprep.mubr.f32.mxu1 %v721_v13 }
 0x17b   :  { %1682 = vmatprep.subr.mxu0 %v1325_v41 }
 0x17c   :  { %1683 = vmatpush1.msra.mxu0 %v1324_v45 }
 0x17d   :  { %915 = vmatmul.mubr.f32.gmra.mxu0 %v706_v33  ;;  %957 = vmatmul.mubr.f32.gmra.mxu1 %v720_v30  ;;  %v824_v30 = vpop.permute.xlu0 %823 }
 0x17e   :  { %920 = vmatprep.mubr.f32.mxu0 %v709_v25  ;;  %962 = vmatprep.mubr.f32.mxu1 %v723_v17 }
 0x181   :  { %921 = vmatmul.mubr.f32.gmra.mxu0 %v708_v7  ;;  %963 = vmatmul.mubr.f32.gmra.mxu1 %v722_v28  ;;  %v819_v7 = vpop.permute.xlu1 %818 }
 0x182   :  { %926 = vmatprep.mubr.f32.mxu0 %v711_v55  ;;  %968 = vmatprep.mubr.f32.mxu1 %v725_v24 }
 0x185   :  { %927 = vmatmul.mubr.f32.gmra.mxu0 %v710_v47  ;;  %969 = vmatmul.mubr.f32.gmra.mxu1 %v724_v12  ;;  %v814_v12 = vpop.permute.xlu0 %813 }
 0x186   :  { %974 = vmatprep.mubr.f32.mxu1 %v727_v19  ;;  %1716 = vmatprep.mubr.f32.mxu0 %v4990_v39 }
 0x189   :  { %975 = vmatmul.mubr.f32.gmra.mxu1 %v726_v15  ;;  %2900 = vmatmul.mubr.msk.f32.vlgmr.msra.gmra.mxu0 %vm280_vm0, %v1332_v10  ;;  %v809_v10 = vpop.permute.xlu1 %808 }
 0x18a   :  { %980 = vmatprep.mubr.f32.mxu1 %v729_v60  ;;  %1722 = vmatprep.mubr.f32.mxu0 %v4990_v39 }
 0x18d   :  { %981 = vmatmul.mubr.f32.gmra.mxu1 %v728_v16  ;;  %2901 = vmatmul.mubr.msk.f32.gmra.mxu0 %vm280_vm0, %v1333_v11 }
 0x18e   :  { %1728 = vmatprep.mubr.f32.mxu0 %v4990_v39  ;;  %1195 = vmatprep.mubr.f32.mxu1 %v4990_v39 }
 0x191   :  { %2902 = vmatmul.mubr.msk.f32.gmra.mxu0 %vm280_vm0, %v1334_v22 }
 0x192   :  { %1734 = vmatprep.mubr.f32.mxu0 %v4990_v39 }
 0x195   :  { %2903 = vmatmul.mubr.msk.f32.gmra.mxu0 %vm280_vm0, %v1335_v5  ;;  %v804_v5 = vpop.permute.xlu0 %803 }
 0x196   :  { %1740 = vmatprep.mubr.f32.mxu0 %v4990_v39 }
 0x199   :  { %2904 = vmatmul.mubr.msk.f32.gmra.mxu0 %vm280_vm0, %v1336_v6 }
 0x19a   :  { %1746 = vmatprep.mubr.f32.mxu0 %v4990_v39 }
 0x19d   :  { %2905 = vmatmul.mubr.msk.f32.gmra.mxu0 %vm280_vm0, %v1337_v0 }
 0x19e   :  { %1752 = vmatprep.mubr.f32.mxu0 %v4990_v39 }
 0x1a1   :  { %2906 = vmatmul.mubr.msk.f32.gmra.mxu0 %vm280_vm0, %v1338_v57  ;;  %v799_v57 = vpop.permute.xlu1 %798 }
 0x1a2   :  { %1758 = vmatprep.mubr.f32.mxu0 %v4990_v39 }
 0x1a5   :  { %2907 = vmatmul.mubr.msk.f32.gmra.mxu0 %vm280_vm0, %v1339_v3 }
 0x1a6   :  { %1764 = vmatprep.mubr.f32.mxu0 %v4990_v39 }
 0x1a9   :  { %2908 = vmatmul.mubr.msk.f32.gmra.mxu0 %vm280_vm0, %v1340_v23 }
 0x1aa   :  { %1770 = vmatprep.mubr.f32.mxu0 %v4990_v39 }
 0x1ad   :  { %2909 = vmatmul.mubr.msk.f32.gmra.mxu0 %vm280_vm0, %v1341_v20 }
 0x1ae   :  { %1776 = vmatprep.mubr.f32.mxu0 %v4990_v39 }
 0x1b1   :  { %2910 = vmatmul.mubr.msk.f32.gmra.mxu0 %vm280_vm0, %v1342_v62 }
 0x1b2   :  { %1782 = vmatprep.mubr.f32.mxu0 %v4990_v39 }
 0x1b5   :  { %2911 = vmatmul.mubr.msk.f32.gmra.mxu0 %vm280_vm0, %v1343_v53 }
 0x1b6   :  { %1788 = vmatprep.mubr.f32.mxu0 %v4990_v39 }
 0x1b9   :  { %2912 = vmatmul.mubr.msk.f32.gmra.mxu0 %vm280_vm0, %v1344_v59 }
 0x1ba   :  { %1794 = vmatprep.mubr.f32.mxu0 %v4990_v39 }
 0x1bd   :  { %2913 = vmatmul.mubr.msk.f32.gmra.mxu0 %vm280_vm0, %v1345_v1 }
 0x1be   :  { %1800 = vmatprep.mubr.f32.mxu0 %v4990_v39 }
 0x1c1   :  { %2914 = vmatmul.mubr.msk.f32.gmra.mxu0 %vm280_vm0, %v1346_v37  ;;  %v794_v37 = vpop.permute.xlu0 %793 }
 0x1c2   :  { %1806 = vmatprep.mubr.f32.mxu0 %v4990_v39 }
 0x1c5   :  { %2915 = vmatmul.mubr.msk.f32.gmra.mxu0 %vm280_vm0, %v1347_v27 }
 0x1c6   :  { %1812 = vmatprep.mubr.f32.mxu0 %v4990_v39 }
 0x1c9   :  { %2916 = vmatmul.mubr.msk.f32.gmra.mxu0 %vm280_vm0, %v1348_v56 }
 0x1ca   :  { %1818 = vmatprep.mubr.f32.mxu0 %v4990_v39 }
 0x1cd   :  { %2917 = vmatmul.mubr.msk.f32.gmra.mxu0 %vm280_vm0, %v1349_v18 }
 0x1ce   :  { %1824 = vmatprep.mubr.f32.mxu0 %v4990_v39 }
 0x1d1   :  { %2918 = vmatmul.mubr.msk.f32.gmra.mxu0 %vm280_vm0, %v1350_v54 }
 0x1d2   :  { %1830 = vmatprep.mubr.f32.mxu0 %v4990_v39 }
 0x1d5   :  { %2919 = vmatmul.mubr.msk.f32.gmra.mxu0 %vm280_vm0, %v1351_v63  ;;  %v789_v63 = vpop.permute.xlu1 %788 }
 0x1d6   :  { %1836 = vmatprep.mubr.f32.mxu0 %v4990_v39 }
 0x1d9   :  { %2920 = vmatmul.mubr.msk.f32.gmra.mxu0 %vm280_vm0, %v1352_v44 }
 0x1da   :  { %1842 = vmatprep.mubr.f32.mxu0 %v4990_v39 }
 0x1dd   :  { %2921 = vmatmul.mubr.msk.f32.gmra.mxu0 %vm280_vm0, %v1353_v31 }
 0x1de   :  { %1848 = vmatprep.mubr.f32.mxu0 %v4990_v39 }
 0x1e1   :  { %2922 = vmatmul.mubr.msk.f32.gmra.mxu0 %vm280_vm0, %v1354_v29 }
 0x1e2   :  { %1854 = vmatprep.mubr.f32.mxu0 %v4990_v39 }
 0x1e5   :  { %2923 = vmatmul.mubr.msk.f32.gmra.mxu0 %vm280_vm0, %v1355_v9 }
 0x1e6   :  { %1860 = vmatprep.mubr.f32.mxu0 %v4990_v39 }
 0x1e9   :  { %2924 = vmatmul.mubr.msk.f32.gmra.mxu0 %vm280_vm0, %v1356_v50 }
 0x1ea   :  { %1866 = vmatprep.mubr.f32.mxu0 %v4990_v39 }
 0x1ed   :  { %2925 = vmatmul.mubr.msk.f32.gmra.mxu0 %vm280_vm0, %v1357_v21 }
 0x1ee   :  { %1872 = vmatprep.mubr.f32.mxu0 %v4990_v39 }
 0x1f1   :  { %2926 = vmatmul.mubr.msk.f32.gmra.mxu0 %vm280_vm0, %v1358_v26 }
 0x1f2   :  { %1878 = vmatprep.mubr.f32.mxu0 %v4990_v39 }
 0x1f5   :  { %2927 = vmatmul.mubr.msk.f32.gmra.mxu0 %vm280_vm0, %v1359_v51 }
 0x1f6   :  { %1884 = vmatprep.mubr.f32.mxu0 %v4990_v39 }
 0x1f9   :  { %2928 = vmatmul.mubr.msk.f32.gmra.mxu0 %vm280_vm0, %v1360_v52 }
 0x1fa   :  { %1890 = vmatprep.mubr.f32.mxu0 %v4990_v39 }
 0x1fd   :  { %2929 = vmatmul.mubr.msk.f32.gmra.mxu0 %vm280_vm0, %v1361_v48 }
 0x1fe   :  { %1896 = vmatprep.mubr.f32.mxu0 %v4990_v39 }
 0x201   :  { %2930 = vmatmul.mubr.msk.f32.gmra.mxu0 %vm280_vm0, %v1362_v58  ;;  %v784_v58 = vpop.permute.xlu0 %783 }
 0x202   :  { %1902 = vmatprep.mubr.f32.mxu0 %v4990_v39 }
 0x205   :  { %2931 = vmatmul.mubr.msk.f32.gmra.mxu0 %vm280_vm0, %v1363_v2 }
 0x22d   :  { %v4190_v34 = vpop.f32.mrf.mxu0  ;;  %v4192_v61 = vpop.f32.mrf.mxu1 }
 0x22f   :  { %v4194_v46 = vpop.f32.mrf.mxu0  ;;  %v4196_v43 = vpop.f32.mrf.mxu1 }
 0x231   :  { %v4198_v8 = vpop.f32.mrf.mxu0  ;;  %v4200_v36 = vpop.f32.mrf.mxu1 }
 0x233   :  { %v4202_v4 = vpop.f32.mrf.mxu0  ;;  %v4204_v40 = vpop.f32.mrf.mxu1 }
 0x235   :  { %v4206_v38 = vpop.f32.mrf.mxu0  ;;  %v4208_v14 = vpop.f32.mrf.mxu1 }
 0x237   :  { %v4210_v35 = vpop.f32.mrf.mxu0  ;;  %v4212_v42 = vpop.f32.mrf.mxu1 }
 0x239   :  { %v4214_v32 = vpop.f32.mrf.mxu0  ;;  %v952_v49 = vpop.f32.mrf.mxu1 }
 0x23b   :  { %v4216_v13 = vpop.f32.mrf.mxu0  ;;  %v954_v41 = vpop.f32.mrf.mxu1 }
 0x23d   :  { %v4218_v45 = vpop.f32.mrf.mxu0  ;;  %v958_v33 = vpop.f32.mrf.mxu1 }
 0x23e   :  { %v959_v2 = vadd.f32 %v958_v33, %v804_v5 }
 0x23f   :  { %v4220_v25 = vpop.f32.mrf.mxu0  ;;  %v960_v17 = vpop.f32.mrf.mxu1 }
 0x240   :  { %v961_v52 = vadd.f32 %v960_v17, %v804_v5  ;;  %v1009_v33 = vmax.f32 %v959_v2, 0.0 }
 0x241   :  { %v4222_v28 = vpop.f32.mrf.mxu0  ;;  %v964_v55 = vpop.f32.mrf.mxu1 }
 0x242   :  { %v965_v21 = vadd.f32 %v964_v55, %v809_v10  ;;  %v1010_v17 = vmax.f32 %v961_v52, 0.0 }
 0x243   :  { %v4224_v24 = vpop.f32.mrf.mxu0  ;;  %v966_v47 = vpop.f32.mrf.mxu1 }
 0x244   :  { %v967_v9 = vadd.f32 %v966_v47, %v809_v10  ;;  %v779_v47 = vpop.permute.xlu1 %778  ;;  %v949_v10 = vadd.f32 %v4212_v42, %v794_v37  ;;  %v937_v42 = vadd.f32 %v4196_v43, %v784_v58 }
 0x245   :  { %v4226_v19 = vpop.f32.mrf.mxu0  ;;  %v970_v15 = vpop.f32.mrf.mxu1 }
 0x246   :  { %v971_v44 = vadd.f32 %v970_v15, %v814_v12  ;;  %v1012_v15 = vmax.f32 %v967_v9, 0.0  ;;  %v1002_v43 = vmax.f32 %v937_v42, 0.0 }
 0x247   :  { %v4228_v60 = vpop.f32.mrf.mxu0  ;;  %v972_v16 = vpop.f32.mrf.mxu1 }
 0x248   :  { %v973_v18 = vadd.f32 %v972_v16, %v814_v12  ;;  %v955_v12 = vadd.f32 %v954_v41, %v799_v57  ;;  %v953_v16 = vadd.f32 %v952_v49, %v799_v57  ;;  %v943_v41 = vadd.f32 %v4204_v40, %v789_v63 }
 0x249   :  { %v976_v11 = vpop.f32.mrf.mxu1  ;;  %v4230_v22 = vpop.f32.mrf.mxu0  ;;  %v941_v49 = vadd.f32 %v4200_v36, %v789_v63 }
 0x24a   :  { %v977_v27 = vadd.f32 %v976_v11, %v819_v7  ;;  %v1014_v48 = vmax.f32 %v973_v18, 0.0  ;;  %v1011_v11 = vmax.f32 %v965_v21, 0.0  ;;  %v1007_v57 = vmax.f32 %v953_v16, 0.0 }
 0x24b   :  { %v978_v6 = vpop.f32.mrf.mxu1  ;;  %v4232_v0 = vpop.f32.mrf.mxu0  ;;  %v1004_v40 = vmax.f32 %v943_v41, 0.0  ;;  %v931_v18 = vadd.f32 %v4228_v60, %v779_v47  ;;  %v1003_v36 = vmax.f32 %v941_v49, 0.0 }
 0x24c   :  { %v979_v59 = vadd.f32 %v978_v6, %v819_v7  ;;  %v1015_v26 = vmax.f32 %v977_v27, 0.0  ;;  %v947_v6 = vadd.f32 %v4208_v14, %v794_v37  ;;  %v769_v14 = vpop.permute.xlu1 %768 }
 0x24d   :  { %v982_v3 = vpop.f32.mrf.mxu1  ;;  %v4234_v23 = vpop.f32.mrf.mxu0  ;;  %v919_v60 = vadd.f32 %v4220_v25, %v769_v14  ;;  %v1000_v21 = vmax.f32 %v931_v18, 0.0 }
 0x24e   :  { %v983_v20 = vadd.f32 %v982_v3, %v824_v30  ;;  %v1016_v50 = vmax.f32 %v979_v59, 0.0  ;;  %v1008_v3 = vmax.f32 %v955_v12, 0.0  ;;  %v1006_v59 = vmax.f32 %v949_v10, 0.0 }
 0x24f   :  { %v984_v62 = vpop.f32.mrf.mxu1  ;;  %v4236_v53 = vpop.f32.mrf.mxu0  ;;  %v1005_v37 = vmax.f32 %v947_v6, 0.0  ;;  %v996_v12 = vmax.f32 %v919_v60, 0.0 }
 0x250   :  { %v985_v1 = vadd.f32 %v984_v62, %v824_v30  ;;  %v1017_v31 = vmax.f32 %v983_v20, 0.0  ;;  %v1013_v30 = vmax.f32 %v971_v44, 0.0  ;;  %v774_v20 = vpop.permute.xlu0 %773 }
 0x251   :  { %v4238_v56 = vpop.f32.mrf.mxu0  ;;  %v925_v44 = vadd.f32 %v4224_v24, %v774_v20  ;;  %v923_v9 = vadd.f32 %v4222_v28, %v774_v20 }
 0x252   :  { %v1018_v54 = vmax.f32 %v985_v1, 0.0  ;;  %v935_v1 = vadd.f32 %v4192_v61, %v784_v58 }
 0x253   :  { %v4240_v29 = vpop.f32.mrf.mxu0  ;;  %v998_v58 = vmax.f32 %v925_v44, 0.0  ;;  %v997_v2 = vmax.f32 %v923_v9, 0.0 }
 0x254   :  { %1131 = vmatprep.subr.mxu1 %v1018_v54  ;;  %v929_v54 = vadd.f32 %v4226_v19, %v779_v47  ;;  %v1001_v61 = vmax.f32 %v935_v1, 0.0  ;;  %v917_v19 = vadd.f32 %v4218_v45, %v769_v14  ;;  %v1020_v14 = vld [vmem:[%s4920_s6 + $0x8] sm:$0xff] }
 0x255   :  { %1132 = vmatpush1.msra.mxu1 %v1017_v31  ;;  %v4242_v51 = vpop.f32.mrf.mxu0  ;;  %v764_v31 = vpop.permute.xlu0 %763 }
 0x256   :  { %1133 = vmatprep.subr.mxu1 %v1016_v50  ;;  %v999_v52 = vmax.f32 %v929_v54, 0.0  ;;  %v913_v24 = vadd.f32 %v4216_v13, %v764_v31  ;;  %v911_v28 = vadd.f32 %v4214_v32, %v764_v31  ;;  %v995_v47 = vmax.f32 %v917_v19, 0.0  ;;  %v1022_v31 = vld [vmem:[%s4920_s6 + $0x18] sm:$0xff] }
 0x257   :  { %1134 = vmatpush1.msra.mxu1 %v1015_v26  ;;  %v4244_v7 = vpop.f32.mrf.mxu0  ;;  %v759_v26 = vpop.permute.xlu1 %758 }
 0x258   :  { %1135 = vmatprep.subr.mxu1 %v1014_v48  ;;  %v907_v25 = vadd.f32 %v4210_v35, %v759_v26  ;;  %v905_v45 = vadd.f32 %v4206_v38, %v759_v26 }
 0x259   :  { %1136 = vmatpush1.msra.mxu1 %v1013_v30  ;;  %v4246_v55 = vpop.f32.mrf.mxu0 }
 0x25a   :  { %1137 = vmatprep.subr.mxu1 %v1012_v15  ;;  %v754_v15 = vpop.permute.xlu0 %753  ;;  %v991_v41 = vmax.f32 %v905_v45, 0.0 }
 0x25b   :  { %1138 = vmatpush1.msra.mxu1 %v1011_v11  ;;  %v4250_v5 = vpop.f32.mrf.mxu0  ;;  %v901_v13 = vadd.f32 %v4202_v4, %v754_v15  ;;  %v994_v11 = vmax.f32 %v913_v24, 0.0  ;;  %v749_v32 = vpop.permute.xlu1 %748  ;;  %v899_v10 = vadd.f32 %v4198_v8, %v754_v15 }
 0x25c   :  { %1139 = vmatprep.subr.mxu1 %v1010_v17  ;;  %v993_v17 = vmax.f32 %v911_v28, 0.0  ;;  %v895_v35 = vadd.f32 %v4194_v46, %v749_v32  ;;  %v893_v38 = vadd.f32 %v4190_v34, %v749_v32  ;;  %v1019_v34 = vld [vmem:[%s4920_s6] sm:$0xff] }
 0x25d   :  { %1140 = vmatpush1.msra.mxu1 %v1009_v33  ;;  %v4254_v62 = vpop.f32.mrf.mxu0  ;;  %v992_v33 = vmax.f32 %v907_v25, 0.0  ;;  %v990_v4 = vmax.f32 %v901_v13, 0.0  ;;  %v989_v20 = vmax.f32 %v899_v10, 0.0  ;;  %v1025_v13 = vld [vmem:[%s4920_s6 + $0x30] sm:$0xff] }
 0x25e   :  { %1141 = vmatprep.subr.mxu1 %v1008_v3  ;;  %v988_v8 = vmax.f32 %v895_v35, 0.0  ;;  %v1474_v1 = vpop.permute.xlu0 %1473 }
 0x25f   :  { %1142 = vmatpush1.msra.mxu1 %v1007_v57  ;;  %v4258_v27 = vpop.f32.mrf.mxu0  ;;  %v987_v57 = vmax.f32 %v893_v38, 0.0 }
 0x260   :  { %1143 = vmatprep.subr.mxu1 %v1006_v59 }
 0x261   :  { %1144 = vmatpush1.msra.mxu1 %v1005_v37  ;;  %v4262_v63 = vpop.f32.mrf.mxu0 }
 0x262   :  { %1145 = vmatprep.subr.mxu1 %v1004_v40  ;;  %v1469_v40 = vpop.permute.xlu1 %1468 }
 0x263   :  { %1146 = vmatpush1.msra.mxu1 %v1003_v36  ;;  %v4266_v50 = vpop.f32.mrf.mxu0  ;;  %v1021_v36 = vld [vmem:[%s4920_s6 + $0x10] sm:$0xff] }
 0x264   :  { %1147 = vmatprep.subr.mxu1 %v1002_v43  ;;  %v1464_v43 = vpop.permute.xlu0 %1463 }
 0x265   :  { %1148 = vmatpush1.msra.mxu1 %v1001_v61  ;;  %v4270_v48 = vpop.f32.mrf.mxu0 }
 0x266   :  { %1149 = vmatprep.subr.mxu1 %v1000_v21  ;;  %v1459_v61 = vpop.permute.xlu1 %1458  ;;  %v1023_v21 = vld [vmem:[%s4920_s6 + $0x20] sm:$0xff] }
 0x267   :  { %1150 = vmatpush1.msra.mxu1 %v999_v52  ;;  %v4274_v30 = vpop.f32.mrf.mxu0 }
 0x268   :  { %1151 = vmatprep.subr.mxu1 %v998_v58  ;;  %v1454_v26 = vpop.permute.xlu0 %1453  ;;  %v1024_v58 = vld [vmem:[%s4920_s6 + $0x28] sm:$0xff] }
 0x269   :  { %1152 = vmatpush1.msra.mxu1 %v997_v2  ;;  %v4278_v16 = vpop.f32.mrf.mxu0 }
 0x26a   :  { %1153 = vmatprep.subr.mxu1 %v996_v12  ;;  %v1449_v52 = vpop.permute.xlu1 %1448 }
 0x26b   :  { %1154 = vmatpush1.msra.mxu1 %v995_v47  ;;  %v4282_v6 = vpop.f32.mrf.mxu0 }
 0x26c   :  { %1155 = vmatprep.subr.mxu1 %v994_v11  ;;  %v1444_v15 = vpop.permute.xlu0 %1443 }
 0x26d   :  { %1156 = vmatpush1.msra.mxu1 %v993_v17  ;;  %v4286_v3 = vpop.f32.mrf.mxu0 }
 0x26e   :  { %1157 = vmatprep.subr.mxu1 %v992_v33  ;;  %v1439_v10 = vpop.permute.xlu1 %1438 }
 0x26f   :  { %1158 = vmatpush1.msra.mxu1 %v991_v41  ;;  %v4288_v49 = vpop.f32.mrf.mxu0 }
 0x270   :  { %1159 = vmatprep.subr.mxu1 %v990_v4 }
 0x271   :  { %1160 = vmatpush1.msra.mxu1 %v989_v20  ;;  %v4290_v42 = vpop.f32.mrf.mxu0 }
 0x272   :  { %1161 = vmatprep.subr.mxu1 %v988_v8 }
 0x273   :  { %1162 = vmatpush1.msra.mxu1 %v987_v57  ;;  %v4295_v46 = vpop.f32.mrf.mxu0  ;;  %v1026_v57 = vld [vmem:[%s4920_s6 + $0x38] sm:$0xff] }
 0x274   :  { %1196 = vmatmul.mubr.f32.vlgmr.msra.gmra.mxu1 %v1019_v34 }
 0x275   :  { %v1784_v59 = vpop.f32.mrf.mxu0  ;;  %1201 = vmatprep.mubr.f32.mxu1 %v4990_v39 }
 0x277   :  { %v1786_v37 = vpop.f32.mrf.mxu0 }
 0x278   :  { %1202 = vmatmul.mubr.f32.gmra.mxu1 %v1020_v14  ;;  %v1787_v34 = vadd.f32 %v1786_v37, %v1454_v26  ;;  %v1775_v37 = vadd.f32 %v4288_v49, %v1444_v15 }
 0x279   :  { %v1790_v18 = vpop.f32.mrf.mxu0  ;;  %1207 = vmatprep.mubr.f32.mxu1 %v4990_v39 }
 0x27a   :  { %v1791_v4 = vadd.f32 %v1790_v18, %v1459_v61  ;;  %v1781_v18 = vadd.f32 %v4295_v46, %v1449_v52  ;;  %v1773_v46 = vadd.f32 %v4286_v3, %v1444_v15  ;;  %v1028_v3 = vld [vmem:[%s4920_s6 + $0x48] sm:$0xff] }
 0x27b   :  { %v1792_v54 = vpop.f32.mrf.mxu0 }
 0x27c   :  { %1208 = vmatmul.mubr.f32.gmra.mxu1 %v1021_v36  ;;  %v1793_v38 = vadd.f32 %v1792_v54, %v1459_v61  ;;  %v1933_v61 = vmax.f32 %v1791_v4, 0.0 }
 0x27d   :  { %v1796_v44 = vpop.f32.mrf.mxu0  ;;  %1213 = vmatprep.mubr.f32.mxu1 %v4990_v39 }
 0x27e   :  { %v1797_v17 = vadd.f32 %v1796_v44, %v1464_v43  ;;  %v1429_v44 = vpop.permute.xlu1 %1428 }
 0x27f   :  { %v1798_v9 = vpop.f32.mrf.mxu0 }
 0x280   :  { %1214 = vmatmul.mubr.f32.gmra.mxu1 %v1022_v31  ;;  %v1799_v11 = vadd.f32 %v1798_v9, %v1464_v43  ;;  %v1935_v36 = vmax.f32 %v1797_v17, 0.0  ;;  %v1934_v43 = vmax.f32 %v1793_v38, 0.0  ;;  %v1779_v31 = vadd.f32 %v4290_v42, %v1449_v52 }
 0x281   :  { %v1802_v60 = vpop.f32.mrf.mxu0  ;;  %1219 = vmatprep.mubr.f32.mxu1 %v4990_v39  ;;  %v1769_v42 = vadd.f32 %v4282_v6, %v1439_v10 }
 0x282   :  { %v1803_v45 = vadd.f32 %v1802_v60, %v1469_v40  ;;  %v1936_v14 = vmax.f32 %v1799_v11, 0.0  ;;  %v1932_v60 = vmax.f32 %v1787_v34, 0.0  ;;  %v1419_v6 = vpop.permute.xlu1 %1418 }
 0x283   :  { %v1804_v19 = vpop.f32.mrf.mxu0 }
 0x284   :  { %1220 = vmatmul.mubr.f32.gmra.mxu1 %v1023_v21  ;;  %v1805_v25 = vadd.f32 %v1804_v19, %v1469_v40  ;;  %v1937_v20 = vmax.f32 %v1803_v45, 0.0  ;;  %v1785_v40 = vadd.f32 %v1784_v59, %v1454_v26  ;;  %v1027_v59 = vld [vmem:[%s4920_s6 + $0x40] sm:$0xff]  ;;  %v1930_v19 = vmax.f32 %v1781_v18, 0.0 }
 0x285   :  { %v1808_v24 = vpop.f32.mrf.mxu0  ;;  %1225 = vmatprep.mubr.f32.mxu1 %v4990_v39  ;;  %v1926_v45 = vmax.f32 %v1769_v42, 0.0 }
 0x286   :  { %v1809_v28 = vadd.f32 %v1808_v24, %v1474_v1  ;;  %v1938_v41 = vmax.f32 %v1805_v25, 0.0  ;;  %v1931_v21 = vmax.f32 %v1785_v40, 0.0  ;;  %v1767_v24 = vadd.f32 %v4278_v16, %v1439_v10  ;;  %v1409_v4 = vpop.permute.xlu1 %1408 }
 0x287   :  { %v1810_v2 = vpop.f32.mrf.mxu0  ;;  %v1757_v16 = vadd.f32 %v4266_v50, %v1429_v44 }
 0x288   :  { %v1811_v12 = vadd.f32 %v1810_v2, %v1474_v1  ;;  %1226 = vmatmul.mubr.f32.gmra.mxu1 %v1024_v58  ;;  %v1939_v35 = vmax.f32 %v1809_v28, 0.0  ;;  %v1434_v1 = vpop.permute.xlu0 %1433  ;;  %v1929_v58 = vmax.f32 %v1779_v31, 0.0  ;;  %v1928_v2 = vmax.f32 %v1775_v37, 0.0 }
 0x289   :  { %v4317_v47 = vpop.f32.mrf.mxu0  ;;  %1231 = vmatprep.mubr.f32.mxu1 %v4990_v39  ;;  %v1763_v49 = vadd.f32 %v4274_v30, %v1434_v1  ;;  %v1761_v25 = vadd.f32 %v4270_v48, %v1434_v1  ;;  %v1925_v11 = vmax.f32 %v1767_v24, 0.0  ;;  %v1029_v48 = vld [vmem:[%s4920_s6 + $0x50] sm:$0xff] }
 0x28a   :  { %v1940_v32 = vmax.f32 %v1811_v12, 0.0  ;;  %v1927_v12 = vmax.f32 %v1773_v46, 0.0 }
 0x28b   :  { %v4323_v33 = vpop.f32.mrf.mxu0  ;;  %v1924_v10 = vmax.f32 %v1763_v49, 0.0 }
 0x28c   :  { %1232 = vmatmul.mubr.f32.gmra.mxu1 %v1025_v13  ;;  %2101 = vmatprep.subr.mxu1 %v1940_v32  ;;  %v1424_v52 = vpop.permute.xlu0 %1423  ;;  %v1755_v13 = vadd.f32 %v4262_v63, %v1429_v44  ;;  %v1745_v63 = vadd.f32 %v4250_v5, %v1419_v6 }
 0x28d   :  { %v4325_v8 = vpop.f32.mrf.mxu0  ;;  %2102 = vmatpush1.msra.mxu1 %v1939_v35  ;;  %1237 = vmatprep.mubr.f32.mxu1 %v4990_v39  ;;  %v1751_v30 = vadd.f32 %v4258_v27, %v1424_v52  ;;  %v1749_v17 = vadd.f32 %v4254_v62, %v1424_v52  ;;  %v1923_v35 = vmax.f32 %v1761_v25, 0.0  ;;  %v1030_v62 = vld [vmem:[%s4920_s6 + $0x58] sm:$0xff]  ;;  %v1974_v25 = vld [vmem:[%s4924_s10 + $0x8] sm:$0xff] }
 0x28e   :  { %2103 = vmatprep.subr.mxu1 %v1938_v41  ;;  %v1922_v41 = vmax.f32 %v1757_v16, 0.0 }
 0x28f   :  { %v4331_v54 = vpop.f32.mrf.mxu0  ;;  %2104 = vmatpush1.msra.mxu1 %v1937_v20  ;;  %v1743_v20 = vadd.f32 %v4246_v55, %v1419_v6  ;;  %v1919_v1 = vmax.f32 %v1749_v17, 0.0  ;;  %v1733_v55 = vadd.f32 %v4240_v29, %v1409_v4  ;;  %v1399_v29 = vpop.permute.xlu1 %1398  ;;  %v1034_v6 = vld [vmem:[%s4920_s6 + $0x78] sm:$0xff] }
 0x290   :  { %1238 = vmatmul.mubr.f32.gmra.mxu1 %v1026_v57  ;;  %2105 = vmatprep.subr.mxu1 %v1936_v14  ;;  %v1414_v50 = vpop.permute.xlu0 %1413  ;;  %v1921_v57 = vmax.f32 %v1755_v13, 0.0  ;;  %v1920_v14 = vmax.f32 %v1751_v30, 0.0 }
 0x291   :  { %v4335_v9 = vpop.f32.mrf.mxu0  ;;  %2106 = vmatpush1.msra.mxu1 %v1935_v36  ;;  %1243 = vmatprep.mubr.f32.mxu1 %v4990_v39  ;;  %v1739_v27 = vadd.f32 %v4244_v7, %v1414_v50  ;;  %v1737_v5 = vadd.f32 %v4242_v51, %v1414_v50  ;;  %v1918_v36 = vmax.f32 %v1745_v63, 0.0  ;;  %v1917_v44 = vmax.f32 %v1743_v20, 0.0  ;;  %v1031_v51 = vld [vmem:[%s4920_s6 + $0x60] sm:$0xff] }
 0x292   :  { %2107 = vmatprep.subr.mxu1 %v1934_v43  ;;  %v1731_v43 = vadd.f32 %v4238_v56, %v1409_v4  ;;  %v1721_v56 = vadd.f32 %v4232_v0, %v1399_v29  ;;  %v1914_v46 = vmax.f32 %v1733_v55, 0.0 }
 0x293   :  { %v4343_v26 = vpop.f32.mrf.mxu0  ;;  %2108 = vmatpush1.msra.mxu1 %v1933_v61  ;;  %v1916_v61 = vmax.f32 %v1739_v27, 0.0  ;;  %v1915_v37 = vmax.f32 %v1737_v5, 0.0  ;;  %v1549_v30 = vpop.permute.xlu1 %1548 }
 0x294   :  { %1244 = vmatmul.mubr.f32.gmra.mxu1 %v1027_v59  ;;  %2109 = vmatprep.subr.mxu1 %v1932_v60  ;;  %v1404_v18 = vpop.permute.xlu0 %1403  ;;  %v1913_v42 = vmax.f32 %v1731_v43, 0.0  ;;  %v1910_v0 = vmax.f32 %v1721_v56, 0.0 }
 0x295   :  { %v4347_v28 = vpop.f32.mrf.mxu0  ;;  %2110 = vmatpush1.msra.mxu1 %v1931_v21  ;;  %1249 = vmatprep.mubr.f32.mxu1 %v4990_v39  ;;  %v1727_v7 = vadd.f32 %v4236_v53, %v1404_v18  ;;  %v1725_v59 = vadd.f32 %v4234_v23, %v1404_v18  ;;  %v1719_v21 = vadd.f32 %v4230_v22, %v1399_v29  ;;  %v1032_v23 = vld [vmem:[%s4920_s6 + $0x68] sm:$0xff] }
 0x296   :  { %2111 = vmatprep.subr.mxu1 %v1930_v19 }
 0x297   :  { %v4355_v15 = vpop.f32.mrf.mxu0  ;;  %2112 = vmatpush1.msra.mxu1 %v1929_v58  ;;  %v1912_v53 = vmax.f32 %v1727_v7, 0.0  ;;  %v1911_v52 = vmax.f32 %v1725_v59, 0.0  ;;  %v1909_v22 = vmax.f32 %v1719_v21, 0.0  ;;  %v1539_v63 = vpop.permute.xlu1 %1538 }
 0x298   :  { %1250 = vmatmul.mubr.f32.gmra.mxu1 %v1028_v3  ;;  %2113 = vmatprep.subr.mxu1 %v1928_v2  ;;  %v1033_v3 = vld [vmem:[%s4920_s6 + $0x70] sm:$0xff] }
 0x299   :  { %v4359_v32 = vpop.f32.mrf.mxu0  ;;  %2114 = vmatpush1.msra.mxu1 %v1927_v12  ;;  %1255 = vmatprep.mubr.f32.mxu1 %v4990_v39 }
 0x29a   :  { %2115 = vmatprep.subr.mxu1 %v1926_v45 }
 0x29b   :  { %v4367_v38 = vpop.f32.mrf.mxu0  ;;  %2116 = vmatpush1.msra.mxu1 %v1925_v11  ;;  %v1554_v11 = vpop.permute.xlu0 %1553 }
 0x29c   :  { %1256 = vmatmul.mubr.f32.gmra.mxu1 %v1029_v48  ;;  %2117 = vmatprep.subr.mxu1 %v1924_v10 }
 0x29d   :  { %v4371_v34 = vpop.f32.mrf.mxu0  ;;  %2118 = vmatpush1.msra.mxu1 %v1923_v35  ;;  %1261 = vmatprep.mubr.f32.mxu1 %v4990_v39 }
 0x29e   :  { %2119 = vmatprep.subr.mxu1 %v1922_v41 }
 0x29f   :  { %v4379_v40 = vpop.f32.mrf.mxu0  ;;  %2120 = vmatpush1.msra.mxu1 %v1921_v57  ;;  %v1544_v17 = vpop.permute.xlu0 %1543 }
 0x2a0   :  { %1262 = vmatmul.mubr.f32.gmra.mxu1 %v1030_v62  ;;  %2121 = vmatprep.subr.mxu1 %v1920_v14  ;;  %v1529_v62 = vpop.permute.xlu1 %1528 }
 0x2a1   :  { %v4383_v31 = vpop.f32.mrf.mxu0  ;;  %2122 = vmatpush1.msra.mxu1 %v1919_v1  ;;  %1267 = vmatprep.mubr.f32.mxu1 %v4990_v39 }
 0x2a2   :  { %2123 = vmatprep.subr.mxu1 %v1918_v36 }
 0x2a3   :  { %v4391_v60 = vpop.f32.mrf.mxu0  ;;  %2124 = vmatpush1.msra.mxu1 %v1917_v44  ;;  %v1534_v20 = vpop.permute.xlu0 %1533 }
 0x2a4   :  { %1268 = vmatmul.mubr.f32.gmra.mxu1 %v1031_v51  ;;  %2125 = vmatprep.subr.mxu1 %v1916_v61  ;;  %v1519_v51 = vpop.permute.xlu1 %1518 }
 0x2a5   :  { %v4395_v19 = vpop.f32.mrf.mxu0  ;;  %2126 = vmatpush1.msra.mxu1 %v1915_v37  ;;  %1273 = vmatprep.mubr.f32.mxu1 %v4990_v39 }
 0x2a6   :  { %2127 = vmatprep.subr.mxu1 %v1914_v46 }
 0x2a7   :  { %v4401_v24 = vpop.f32.mrf.mxu0  ;;  %2128 = vmatpush1.msra.mxu1 %v1913_v42  ;;  %v1524_v1 = vpop.permute.xlu0 %1523 }
 0x2a8   :  { %1274 = vmatmul.mubr.f32.gmra.mxu1 %v1032_v23  ;;  %2129 = vmatprep.subr.mxu1 %v1912_v53 }
 0x2a9   :  { %v4403_v58 = vpop.f32.mrf.mxu0  ;;  %2130 = vmatpush1.msra.mxu1 %v1911_v52  ;;  %1279 = vmatprep.mubr.f32.mxu1 %v4990_v39 }
 0x2aa   :  { %2131 = vmatprep.subr.mxu1 %v1910_v0 }
 0x2ab   :  { %v4409_v49 = vpop.f32.mrf.mxu0  ;;  %2132 = vmatpush1.msra.mxu1 %v1909_v22  ;;  %v1514_v46 = vpop.permute.xlu0 %1513 }
 0x2ac   :  { %1280 = vmatmul.mubr.f32.gmra.mxu1 %v1033_v3  ;;  %v1509_v22 = vpop.permute.xlu1 %1508 }
 0x2ad   :  { %v1868_v2 = vpop.f32.mrf.mxu0  ;;  %1285 = vmatprep.mubr.f32.mxu1 %v4990_v39 }
 0x2af   :  { %v1870_v12 = vpop.f32.mrf.mxu0 }
 0x2b0   :  { %1286 = vmatmul.mubr.f32.gmra.mxu1 %v1034_v6 }
 0x2b1   :  { %v1874_v16 = vpop.f32.mrf.mxu0  ;;  %2165 = vmatprep.mubr.f32.mxu1 %v1974_v25  ;;  %v1871_v25 = vadd.f32 %v1870_v12, %v1524_v1  ;;  %v1857_v12 = vadd.f32 %v4395_v19, %v1514_v46 }
 0x2b2   :  { %v1875_v3 = vadd.f32 %v1874_v16, %v1529_v62 }
 0x2b3   :  { %v1876_v45 = vpop.f32.mrf.mxu0  ;;  %v1960_v16 = vmax.f32 %v1871_v25, 0.0  ;;  %v1984_v25 = vld [vmem:[%s4924_s10 + $0x58] sm:$0xff] }
 0x2b4   :  { %v1877_v52 = vadd.f32 %v1876_v45, %v1529_v62  ;;  %v1961_v45 = vmax.f32 %v1875_v3, 0.0 }
 0x2b5   :  { %v1880_v13 = vpop.f32.mrf.mxu0 }
 0x2b6   :  { %v1881_v23 = vadd.f32 %v1880_v13, %v1534_v20  ;;  %v1863_v13 = vadd.f32 %v4403_v58, %v1519_v51 }
 0x2b7   :  { %v1882_v48 = vpop.f32.mrf.mxu0 }
 0x2b8   :  { %v1883_v21 = vadd.f32 %v1882_v48, %v1534_v20  ;;  %v1865_v48 = vadd.f32 %v4409_v49, %v1519_v51  ;;  %v1851_v49 = vadd.f32 %v4383_v31, %v1509_v22  ;;  %v1957_v20 = vmax.f32 %v1863_v13, 0.0  ;;  %v1987_v13 = vld [vmem:[%s4924_s10 + $0x70] sm:$0xff] }
 0x2b9   :  { %v1886_v10 = vpop.f32.mrf.mxu0 }
 0x2ba   :  { %v1887_v37 = vadd.f32 %v1886_v10, %v1539_v63  ;;  %v1963_v10 = vmax.f32 %v1881_v23, 0.0  ;;  %v1977_v23 = vld [vmem:[%s4924_s10 + $0x20] sm:$0xff] }
 0x2bb   :  { %v1888_v50 = vpop.f32.mrf.mxu0 }
 0x2bc   :  { %v1889_v29 = vadd.f32 %v1888_v50, %v1539_v63  ;;  %v1965_v6 = vmax.f32 %v1887_v37, 0.0  ;;  %v1504_v50 = vpop.permute.xlu0 %1503  ;;  %v1499_v63 = vpop.permute.xlu1 %1498 }
 0x2bd   :  { %v1892_v35 = vpop.f32.mrf.mxu0  ;;  %v1841_v19 = vadd.f32 %v4367_v38, %v1499_v63 }
 0x2be   :  { %v1893_v7 = vadd.f32 %v1892_v35, %v1544_v17  ;;  %v1966_v0 = vmax.f32 %v1889_v29, 0.0  ;;  %v1859_v35 = vadd.f32 %v4401_v24, %v1514_v46  ;;  %v1845_v24 = vadd.f32 %v4371_v34, %v1504_v50 }
 0x2bf   :  { %v1894_v41 = vpop.f32.mrf.mxu0 }
 0x2c0   :  { %v1895_v43 = vadd.f32 %v1894_v41, %v1544_v17  ;;  %v1967_v53 = vmax.f32 %v1893_v7, 0.0  ;;  %v1962_v17 = vmax.f32 %v1877_v52, 0.0  ;;  %v1494_v58 = vpop.permute.xlu0 %1493  ;;  %v1956_v62 = vmax.f32 %v1859_v35, 0.0  ;;  %v1980_v52 = vld [vmem:[%s4924_s10 + $0x38] sm:$0xff] }
 0x2c1   :  { %v1898_v4 = vpop.f32.mrf.mxu0  ;;  %v1835_v31 = vadd.f32 %v4355_v15, %v1494_v58 }
 0x2c2   :  { %v1899_v18 = vadd.f32 %v1898_v4, %v1549_v30  ;;  %v1968_v42 = vmax.f32 %v1895_v43, 0.0  ;;  %v1958_v4 = vmax.f32 %v1865_v48, 0.0  ;;  %v1950_v43 = vmax.f32 %v1841_v19, 0.0  ;;  %v1988_v48 = vld [vmem:[%s4924_s10 + $0x78] sm:$0xff]  ;;  %v1997_v19 = vld [vmem:[%s4924_s10 + $0xc0] sm:$0xff] }
 0x2c3   :  { %v1900_v57 = vpop.f32.mrf.mxu0  ;;  %v1948_v51 = vmax.f32 %v1835_v31, 0.0  ;;  %v2002_v31 = vld [vmem:[%s4924_s10 + $0xe8] sm:$0xff] }
 0x2c4   :  { %v1901_v55 = vadd.f32 %v1900_v57, %v1549_v30  ;;  %v1969_v56 = vmax.f32 %v1899_v18, 0.0  ;;  %v1869_v30 = vadd.f32 %v1868_v2, %v1524_v1  ;;  %v1853_v2 = vadd.f32 %v4391_v60, %v1509_v22  ;;  %v1489_v60 = vpop.permute.xlu1 %1488  ;;  %v1484_v34 = vpop.permute.xlu0 %1483  ;;  %v1982_v22 = vld [vmem:[%s4924_s10 + $0x48] sm:$0xff] }
 0x2c5   :  { %v1904_v27 = vpop.f32.mrf.mxu0  ;;  %v1847_v57 = vadd.f32 %v4379_v40, %v1504_v50  ;;  %v1953_v1 = vmax.f32 %v1851_v49, 0.0  ;;  %v1833_v40 = vadd.f32 %v4347_v28, %v1494_v58  ;;  %v1829_v18 = vadd.f32 %v4343_v26, %v1489_v60  ;;  %v1985_v50 = vld [vmem:[%s4924_s10 + $0x60] sm:$0xff]  ;;  %v1996_v58 = vld [vmem:[%s4924_s10 + $0xb8] sm:$0xff] }
 0x2c6   :  { %v1905_v14 = vadd.f32 %v1904_v27, %v1554_v11  ;;  %v1970_v59 = vmax.f32 %v1901_v55, 0.0  ;;  %v1959_v41 = vmax.f32 %v1869_v30, 0.0  ;;  %v1955_v27 = vmax.f32 %v1857_v12, 0.0  ;;  %v1992_v12 = vld [vmem:[%s4924_s10 + $0x98] sm:$0xff] }
 0x2c7   :  { %v1906_v5 = vpop.f32.mrf.mxu0  ;;  %v1952_v55 = vmax.f32 %v1847_v57, 0.0  ;;  %v1827_v38 = vadd.f32 %v4335_v9, %v1489_v60  ;;  %v1821_v7 = vadd.f32 %v4325_v8, %v1484_v34  ;;  %v1946_v29 = vmax.f32 %v1829_v18, 0.0  ;;  %v2000_v60 = vld [vmem:[%s4924_s10 + $0xd8] sm:$0xff]  ;;  %v2003_v18 = vld [vmem:[%s4924_s10 + $0xf0] sm:$0xff] }
 0x2c8   :  { %v1907_v36 = vadd.f32 %v1906_v5, %v1554_v11  ;;  %v1971_v61 = vmax.f32 %v1905_v14, 0.0  ;;  %v1964_v11 = vmax.f32 %v1883_v21, 0.0  ;;  %v1954_v14 = vmax.f32 %v1853_v2, 0.0  ;;  %v1479_v15 = vpop.permute.xlu1 %1478  ;;  %v4436_v9 = vpop.permute.xlu0 %2098  ;;  %v1975_v21 = vld [vmem:[%s4924_s10 + $0x10] sm:$0xff] }
 0x2c9   :  { %v1839_v5 = vadd.f32 %v4359_v32, %v1499_v63  ;;  %v1823_v32 = vadd.f32 %v4331_v54, %v1484_v34  ;;  %v1817_v28 = vadd.f32 %v4323_v33, %v1479_v15  ;;  %v1815_v26 = vadd.f32 %v4317_v47, %v1479_v15  ;;  %v1973_v33 = vld [vmem:[%s4924_s10] sm:$0xff]  ;;  %v1976_v47 = vld [vmem:[%s4924_s10 + $0x18] sm:$0xff] }
 0x2ca   :  { %v1972_v44 = vmax.f32 %v1907_v36, 0.0  ;;  %v1951_v36 = vmax.f32 %v1845_v24, 0.0  ;;  %v1943_v54 = vmax.f32 %v1821_v7, 0.0  ;;  %v2004_v34 = vld [vmem:[%s4924_s10 + $0xf8] sm:$0xff] }
 0x2cb   :  { %v1944_v37 = vmax.f32 %v1823_v32, 0.0  ;;  %v1941_v46 = vmax.f32 %v1815_v26, 0.0 }
 0x2cc   :  { %2133 = vmatprep.subr.mxu1 %v1972_v44  ;;  %v1949_v44 = vmax.f32 %v1839_v5, 0.0  ;;  %v4444_v8 = vpop.permute.xlu0 %2088  ;;  %v4496_v35 = vpop.permute.xlu1 %2093 }
 0x2cd   :  { %2134 = vmatpush2.msra.mxu1 %v1971_v61  ;;  %v1947_v61 = vmax.f32 %v1833_v40, 0.0  ;;  %v2001_v40 = vld [vmem:[%s4924_s10 + $0xe0] sm:$0xff] }
 0x2ce   :  { %2135 = vmatprep.subr.mxu1 %v1970_v59  ;;  %v1945_v59 = vmax.f32 %v1827_v38, 0.0 }
 0x2cf   :  { %2136 = vmatpush2.msra.mxu1 %v1969_v56  ;;  %v1942_v56 = vmax.f32 %v1817_v28, 0.0 }
 0x2d0   :  { %2137 = vmatprep.subr.mxu1 %v1968_v42  ;;  %v1978_v42 = vld [vmem:[%s4924_s10 + $0x28] sm:$0xff]  ;;  %v4509_v2 = vpop.permute.xlu1 %2083 }
 0x2d1   :  { %2138 = vmatpush2.msra.mxu1 %v1967_v53  ;;  %v4455_v53 = vpop.permute.xlu0 %2078 }
 0x2d2   :  { %2139 = vmatprep.subr.mxu1 %v1966_v0  ;;  %v1979_v0 = vld [vmem:[%s4924_s10 + $0x30] sm:$0xff] }
 0x2d3   :  { %2140 = vmatpush2.msra.mxu1 %v1965_v6  ;;  %v1981_v6 = vld [vmem:[%s4924_s10 + $0x40] sm:$0xff] }
 0x2d4   :  { %2141 = vmatprep.subr.mxu1 %v1964_v11  ;;  %v1983_v11 = vld [vmem:[%s4924_s10 + $0x50] sm:$0xff]  ;;  %v4522_v57 = vpop.permute.xlu1 %2073 }
 0x2d5   :  { %2142 = vmatpush2.msra.mxu1 %v1963_v10  ;;  %v4466_v3 = vpop.permute.xlu0 %2068  ;;  %v1986_v10 = vld [vmem:[%s4924_s10 + $0x68] sm:$0xff] }
 0x2d6   :  { %2143 = vmatprep.subr.mxu1 %v1962_v17 }
 0x2d7   :  { %2144 = vmatpush2.msra.mxu1 %v1961_v45  ;;  %v1990_v45 = vld [vmem:[%s4924_s10 + $0x88] sm:$0xff] }
 0x2d8   :  { %2145 = vmatprep.subr.mxu1 %v1960_v16  ;;  %v1989_v16 = vld [vmem:[%s4924_s10 + $0x80] sm:$0xff] }
 0x2d9   :  { %2146 = vmatpush2.msra.mxu1 %v1959_v41  ;;  %v4477_v30 = vpop.permute.xlu0 %2058  ;;  %v1991_v41 = vld [vmem:[%s4924_s10 + $0x90] sm:$0xff] }
 0x2da   :  { %2147 = vmatprep.subr.mxu1 %v1958_v4  ;;  %v1994_v4 = vld [vmem:[%s4924_s10 + $0xa8] sm:$0xff] }
 0x2db   :  { %2148 = vmatpush2.msra.mxu1 %v1957_v20  ;;  %v1993_v20 = vld [vmem:[%s4924_s10 + $0xa0] sm:$0xff] }
 0x2dc   :  { %2149 = vmatprep.subr.mxu1 %v1956_v62  ;;  %v1995_v62 = vld [vmem:[%s4924_s10 + $0xb0] sm:$0xff] }
 0x2dd   :  { %2150 = vmatpush2.msra.mxu1 %v1955_v27  ;;  %v4488_v17 = vpop.permute.xlu0 %2048  ;;  %v1998_v27 = vld [vmem:[%s4924_s10 + $0xc8] sm:$0xff] }
 0x2de   :  { %2151 = vmatprep.subr.mxu1 %v1954_v14  ;;  %v4533_v14 = vpop.permute.xlu1 %2063 }
 0x2df   :  { %2152 = vmatpush2.msra.mxu1 %v1953_v1  ;;  %v1999_v1 = vld [vmem:[%s4924_s10 + $0xd0] sm:$0xff] }
 0x2e0   :  { %2153 = vmatprep.subr.mxu1 %v1952_v55 }
 0x2e1   :  { %2154 = vmatpush2.msra.mxu1 %v1951_v36  ;;  %v4501_v63 = vpop.permute.xlu0 %2038 }
 0x2e2   :  { %2155 = vmatprep.subr.mxu1 %v1950_v43  ;;  %v4546_v55 = vpop.permute.xlu1 %2053 }
 0x2e3   :  { %2156 = vmatpush2.msra.mxu1 %v1949_v44 }
 0x2e4   :  { %2157 = vmatprep.subr.mxu1 %v1948_v51 }
 0x2e5   :  { %2158 = vmatpush2.msra.mxu1 %v1947_v61  ;;  %v4514_v49 = vpop.permute.xlu0 %2028 }
 0x2e6   :  { %2159 = vmatprep.subr.mxu1 %v1946_v29  ;;  %v4557_v43 = vpop.permute.xlu1 %2043 }
 0x2e7   :  { %2160 = vmatpush2.msra.mxu1 %v1945_v59 }
 0x2e8   :  { %2161 = vmatprep.subr.mxu1 %v1944_v37 }
 0x2e9   :  { %2162 = vmatpush2.msra.mxu1 %v1943_v54  ;;  %v1054_v24 = vpop.permute.xlu0 %1053 }
 0x2ea   :  { %2163 = vmatprep.subr.mxu1 %v1942_v56  ;;  %v4560_v44 = vpop.permute.xlu1 %2033 }
 0x2eb   :  { %2164 = vmatpush2.msra.mxu1 %v1941_v46 }
 0x2ec   :  { %2166 = vmatmul.mubr.f32.vlgmr.msra.gmra.mxu1 %v1973_v33 }
 0x2ed   :  { %2171 = vmatprep.mubr.f32.mxu1 %v1976_v47  ;;  %v4538_v5 = vpop.permute.xlu0 %2328 }
 0x2ee   :  { %v4562_v51 = vpop.permute.xlu1 %2023 }
 0x2f0   :  { %2172 = vmatmul.mubr.f32.gmra.mxu1 %v1975_v21 }
 0x2f1   :  { %2177 = vmatprep.mubr.f32.mxu1 %v1978_v42  ;;  %v1064_v36 = vpop.permute.xlu0 %1063 }
 0x2f2   :  { %v1059_v26 = vpop.permute.xlu1 %1058 }
 0x2f4   :  { %2178 = vmatmul.mubr.f32.gmra.mxu1 %v1977_v23 }
 0x2f5   :  { %2183 = vmatprep.mubr.f32.mxu1 %v1980_v52  ;;  %v1069_v38 = vpop.permute.xlu0 %1068 }
 0x2f8   :  { %2184 = vmatmul.mubr.f32.gmra.mxu1 %v1979_v0 }
 0x2f9   :  { %2189 = vmatprep.mubr.f32.mxu1 %v1982_v22  ;;  %v1074_v32 = vpop.permute.xlu0 %1073 }
 0x2fc   :  { %2190 = vmatmul.mubr.f32.gmra.mxu1 %v1981_v6 }
 0x2fd   :  { %2195 = vmatprep.mubr.f32.mxu1 %v1984_v25  ;;  %v1079_v15 = vpop.permute.xlu0 %1078 }
 0x300   :  { %2196 = vmatmul.mubr.f32.gmra.mxu1 %v1983_v11 }
 0x301   :  { %2201 = vmatprep.mubr.f32.mxu1 %v1986_v10  ;;  %v1084_v56 = vpop.permute.xlu0 %1083 }
 0x304   :  { %2202 = vmatmul.mubr.f32.gmra.mxu1 %v1985_v50 }
 0x305   :  { %2207 = vmatprep.mubr.f32.mxu1 %v1988_v48 }
 0x308   :  { %2208 = vmatmul.mubr.f32.gmra.mxu1 %v1987_v13  ;;  %v1089_v13 = vpop.permute.xlu0 %1088 }
 0x309   :  { %2213 = vmatprep.mubr.f32.mxu1 %v1990_v45 }
 0x30c   :  { %2214 = vmatmul.mubr.f32.gmra.mxu1 %v1989_v16 }
 0x30d   :  { %2219 = vmatprep.mubr.f32.mxu1 %v1992_v12 }
 0x310   :  { %2220 = vmatmul.mubr.f32.gmra.mxu1 %v1991_v41 }
 0x311   :  { %2225 = vmatprep.mubr.f32.mxu1 %v1994_v4 }
 0x314   :  { %2226 = vmatmul.mubr.f32.gmra.mxu1 %v1993_v20 }
 0x315   :  { %2231 = vmatprep.mubr.f32.mxu1 %v1996_v58 }
 0x318   :  { %2232 = vmatmul.mubr.f32.gmra.mxu1 %v1995_v62 }
 0x319   :  { %2237 = vmatprep.mubr.f32.mxu1 %v1998_v27 }
 0x31c   :  { %2238 = vmatmul.mubr.f32.gmra.mxu1 %v1997_v19 }
 0x31d   :  { %2243 = vmatprep.mubr.f32.mxu1 %v2000_v60 }
 0x320   :  { %2244 = vmatmul.mubr.f32.gmra.mxu1 %v1999_v1 }
 0x321   :  { %2249 = vmatprep.mubr.f32.mxu1 %v2002_v31 }
 0x324   :  { %2250 = vmatmul.mubr.f32.gmra.mxu1 %v2001_v40 }
 0x325   :  { %2255 = vmatprep.mubr.f32.mxu1 %v2004_v34 }
 0x328   :  { %2256 = vmatmul.mubr.f32.gmra.mxu1 %v2003_v18 }
 0x329   :  { %2470 = vmatprep.mubr.f32.mxu1 %v4990_v39 }
 0x334   :  { %v1197_v7 = vpop.f32.mrf.mxu1 }
 0x335   :  { %v1198_v61 = vadd.f32 %v1197_v7, %v1054_v24 }
 0x336   :  { %v1199_v28 = vpop.f32.mrf.mxu1 }
 0x337   :  { %v1200_v29 = vadd.f32 %v1199_v28, %v1054_v24  ;;  %v4564_v37 = vmax.f32 %v1198_v61, 0.0 }
 0x338   :  { %v1203_v59 = vpop.f32.mrf.mxu1 }
 0x339   :  { %v1204_v54 = vadd.f32 %v1203_v59, %v1059_v26  ;;  %v4566_v46 = vmax.f32 %v1200_v29, 0.0  ;;  %v2673_v23 = vmul.f32 %v4564_v37, %v4564_v37 }
 0x33a   :  { %v1205_v33 = vpop.f32.mrf.mxu1 }
 0x33b   :  { %4991 = vst [vmem:[#allocation5_spill] sm:$0xff] %v4566_v46  ;;  %v4568_v47 = vmax.f32 %v1204_v54, 0.0  ;;  %v1206_v21 = vadd.f32 %v1205_v33, %v1059_v26  ;;  %v2674_v6 = vmul.f32 %v4566_v46, %v4566_v46 }
 0x33c   :  { %v1209_v42 = vpop.f32.mrf.mxu1 }
 0x33d   :  { %v2675_v52 = vmul.f32 %v4568_v47, %v4568_v47  ;;  %v4574_v0 = vmax.f32 %v1206_v21, 0.0  ;;  %v1210_v22 = vadd.f32 %v1209_v42, %v1064_v36 }
 0x33e   :  { %v1211_v25 = vpop.f32.mrf.mxu1 }
 0x33f   :  { %4992 = vst [vmem:[#allocation6_spill] sm:$0xff] %v4574_v0  ;;  %v2705_v11 = vadd.f32 %v2675_v52, %v2673_v23  ;;  %v2676_v10 = vmul.f32 %v4574_v0, %v4574_v0  ;;  %v4580_v50 = vmax.f32 %v1210_v22, 0.0  ;;  %v1212_v48 = vadd.f32 %v1211_v25, %v1064_v36  ;;  %v1094_v36 = vpop.permute.xlu0 %1093 }
 0x340   :  { %v1215_v45 = vpop.f32.mrf.mxu1 }
 0x341   :  { %4993 = vst [vmem:[#allocation7_spill] sm:$0xff] %v4580_v50  ;;  %v2726_v16 = vadd.f32 %v2676_v10, %v2674_v6  ;;  %v2677_v12 = vmul.f32 %v4580_v50, %v4580_v50  ;;  %v4584_v41 = vmax.f32 %v1212_v48, 0.0  ;;  %v1216_v4 = vadd.f32 %v1215_v45, %v1069_v38 }
 0x342   :  { %v1217_v20 = vpop.f32.mrf.mxu1 }
 0x343   :  { %4994 = vst [vmem:[#allocation8_spill] sm:$0xff] %v4584_v41  ;;  %v2706_v58 = vadd.f32 %v2705_v11, %v2677_v12  ;;  %v2678_v62 = vmul.f32 %v4584_v41, %v4584_v41  ;;  %v4588_v24 = vmax.f32 %v1216_v4, 0.0  ;;  %v1218_v27 = vadd.f32 %v1217_v20, %v1069_v38  ;;  %v1099_v22 = vpop.permute.xlu0 %1098 }
 0x344   :  { %v1221_v19 = vpop.f32.mrf.mxu1 }
 0x345   :  { %4995 = vst [vmem:[#allocation9_spill] sm:$0xff] %v4588_v24  ;;  %v2727_v60 = vadd.f32 %v2726_v16, %v2678_v62  ;;  %v2679_v1 = vmul.f32 %v4588_v24, %v4588_v24  ;;  %v4592_v31 = vmax.f32 %v1218_v27, 0.0  ;;  %v1222_v40 = vadd.f32 %v1221_v19, %v1074_v32 }
 0x346   :  { %v1223_v34 = vpop.f32.mrf.mxu1 }
 0x347   :  { %4996 = vst [vmem:[#allocation10_spill] sm:$0xff] %v4592_v31  ;;  %v2707_v18 = vadd.f32 %v2706_v58, %v2679_v1  ;;  %v2680_v7 = vmul.f32 %v4592_v31, %v4592_v31  ;;  %v4596_v61 = vmax.f32 %v1222_v40, 0.0  ;;  %v1224_v28 = vadd.f32 %v1223_v34, %v1074_v32  ;;  %v1104_v19 = vpop.permute.xlu0 %1103 }
 0x348   :  { %v1227_v29 = vpop.f32.mrf.mxu1 }
 0x349   :  { %4997 = vst [vmem:[#allocation11_spill] sm:$0xff] %v4596_v61  ;;  %v2728_v26 = vadd.f32 %v2727_v60, %v2680_v7  ;;  %v2681_v38 = vmul.f32 %v4596_v61, %v4596_v61  ;;  %v4600_v59 = vmax.f32 %v1224_v28, 0.0  ;;  %v1228_v54 = vadd.f32 %v1227_v29, %v1079_v15 }
 0x34a   :  { %v1229_v33 = vpop.f32.mrf.mxu1 }
 0x34b   :  { %4998 = vst [vmem:[#allocation12_spill] sm:$0xff] %v4600_v59  ;;  %v2708_v21 = vadd.f32 %v2707_v18, %v2681_v38  ;;  %v2682_v42 = vmul.f32 %v4600_v59, %v4600_v59  ;;  %v4604_v23 = vmax.f32 %v1228_v54, 0.0  ;;  %v1230_v52 = vadd.f32 %v1229_v33, %v1079_v15 }
 0x34c   :  { %v1233_v6 = vpop.f32.mrf.mxu1 }
 0x34d   :  { %4999 = vst [vmem:[#allocation13_spill] sm:$0xff] %v4604_v23  ;;  %v2729_v25 = vadd.f32 %v2728_v26, %v2682_v42  ;;  %v2683_v32 = vmul.f32 %v4604_v23, %v4604_v23  ;;  %v4608_v11 = vmax.f32 %v1230_v52, 0.0  ;;  %v1234_v10 = vadd.f32 %v1233_v6, %v1084_v56  ;;  %v1109_v52 = vpop.permute.xlu0 %1108 }
 0x34e   :  { %v1235_v48 = vpop.f32.mrf.mxu1 }
 0x34f   :  { %5000 = vst [vmem:[#allocation14_spill] sm:$0xff] %v4608_v11  ;;  %v2709_v45 = vadd.f32 %v2708_v21, %v2683_v32  ;;  %v2684_v16 = vmul.f32 %v4608_v11, %v4608_v11  ;;  %v4612_v12 = vmax.f32 %v1234_v10, 0.0  ;;  %v1236_v4 = vadd.f32 %v1235_v48, %v1084_v56 }
 0x350   :  { %v1239_v20 = vpop.f32.mrf.mxu1 }
 0x351   :  { %5001 = vst [vmem:[#allocation15_spill] sm:$0xff] %v4612_v12  ;;  %v2730_v58 = vadd.f32 %v2729_v25, %v2684_v16  ;;  %v2685_v15 = vmul.f32 %v4612_v12, %v4612_v12  ;;  %v4616_v62 = vmax.f32 %v1236_v4, 0.0  ;;  %v1240_v27 = vadd.f32 %v1239_v20, %v1089_v13 }
 0x352   :  { %v1241_v60 = vpop.f32.mrf.mxu1 }
 0x353   :  { %5002 = vst [vmem:[#allocation16_spill] sm:$0xff] %v4616_v62  ;;  %v2710_v1 = vadd.f32 %v2709_v45, %v2685_v15  ;;  %v2686_v40 = vmul.f32 %v4616_v62, %v4616_v62  ;;  %v4620_v34 = vmax.f32 %v1240_v27, 0.0  ;;  %v1242_v18 = vadd.f32 %v1241_v60, %v1089_v13 }
 0x354   :  { %v1245_v7 = vpop.f32.mrf.mxu1 }
 0x355   :  { %5003 = vst [vmem:[#allocation17_spill] sm:$0xff] %v4620_v34  ;;  %v2731_v28 = vadd.f32 %v2730_v58, %v2686_v40  ;;  %v2687_v56 = vmul.f32 %v4620_v34, %v4620_v34  ;;  %v4624_v29 = vmax.f32 %v1242_v18, 0.0  ;;  %v1246_v26 = vadd.f32 %v1245_v7, %v1094_v36 }
 0x356   :  { %v1247_v38 = vpop.f32.mrf.mxu1 }
 0x357   :  { %5004 = vst [vmem:[#allocation18_spill] sm:$0xff] %v4624_v29  ;;  %v2711_v54 = vadd.f32 %v2710_v1, %v2687_v56  ;;  %v2688_v33 = vmul.f32 %v4624_v29, %v4624_v29  ;;  %v4628_v21 = vmax.f32 %v1246_v26, 0.0  ;;  %v1248_v42 = vadd.f32 %v1247_v38, %v1094_v36  ;;  %v1114_v1 = vpop.permute.xlu0 %1113 }
 0x358   :  { %v1251_v6 = vpop.f32.mrf.mxu1 }
 0x359   :  { %5005 = vst [vmem:[#allocation19_spill] sm:$0xff] %v4628_v21  ;;  %v2732_v25 = vadd.f32 %v2731_v28, %v2688_v33  ;;  %v2689_v13 = vmul.f32 %v4628_v21, %v4628_v21  ;;  %v4632_v32 = vmax.f32 %v1248_v42, 0.0  ;;  %v1252_v10 = vadd.f32 %v1251_v6, %v1099_v22 }
 0x35a   :  { %v1253_v48 = vpop.f32.mrf.mxu1 }
 0x35b   :  { %5006 = vst [vmem:[#allocation20_spill] sm:$0xff] %v4632_v32  ;;  %v2712_v45 = vadd.f32 %v2711_v54, %v2689_v13  ;;  %v2690_v16 = vmul.f32 %v4632_v32, %v4632_v32  ;;  %v4636_v4 = vmax.f32 %v1252_v10, 0.0  ;;  %v1254_v20 = vadd.f32 %v1253_v48, %v1099_v22  ;;  %v1119_v48 = vpop.permute.xlu0 %1118 }
 0x35c   :  { %v1257_v58 = vpop.f32.mrf.mxu1 }
 0x35d   :  { %5007 = vst [vmem:[#allocation21_spill] sm:$0xff] %v4636_v4  ;;  %v2733_v15 = vadd.f32 %v2732_v25, %v2690_v16  ;;  %v2691_v36 = vmul.f32 %v4636_v4, %v4636_v4  ;;  %v4640_v27 = vmax.f32 %v1254_v20, 0.0  ;;  %v1258_v60 = vadd.f32 %v1257_v58, %v1104_v19 }
 0x35e   :  { %v1259_v40 = vpop.f32.mrf.mxu1 }
 0x35f   :  { %5008 = vst [vmem:[#allocation22_spill] sm:$0xff] %v4640_v27  ;;  %v2713_v18 = vadd.f32 %v2712_v45, %v2691_v36  ;;  %v2692_v7 = vmul.f32 %v4640_v27, %v4640_v27  ;;  %v4644_v28 = vmax.f32 %v1258_v60, 0.0  ;;  %v1260_v56 = vadd.f32 %v1259_v40, %v1104_v19 }
 0x360   :  { %v1263_v26 = vpop.f32.mrf.mxu1 }
 0x361   :  { %5009 = vst [vmem:[#allocation23_spill] sm:$0xff] %v4644_v28  ;;  %v2734_v38 = vadd.f32 %v2733_v15, %v2692_v7  ;;  %v2693_v22 = vmul.f32 %v4644_v28, %v4644_v28  ;;  %v4648_v54 = vmax.f32 %v1260_v56, 0.0  ;;  %v1264_v33 = vadd.f32 %v1263_v26, %v1109_v52 }
 0x362   :  { %v1265_v42 = vpop.f32.mrf.mxu1 }
 0x363   :  { %5010 = vst [vmem:[#allocation24_spill] sm:$0xff] %v4648_v54  ;;  %v2714_v6 = vadd.f32 %v2713_v18, %v2693_v22  ;;  %v2694_v25 = vmul.f32 %v4648_v54, %v4648_v54  ;;  %v4652_v13 = vmax.f32 %v1264_v33, 0.0  ;;  %v1266_v10 = vadd.f32 %v1265_v42, %v1109_v52  ;;  %v1124_v22 = vpop.permute.xlu0 %1123 }
 0x364   :  { %v1269_v45 = vpop.f32.mrf.mxu1 }
 0x365   :  { %5011 = vst [vmem:[#allocation25_spill] sm:$0xff] %v4652_v13  ;;  %v2735_v16 = vadd.f32 %v2734_v38, %v2694_v25  ;;  %v2695_v19 = vmul.f32 %v4652_v13, %v4652_v13  ;;  %v4656_v20 = vmax.f32 %v1266_v10, 0.0  ;;  %v1270_v58 = vadd.f32 %v1269_v45, %v1114_v1 }
 0x366   :  { %v1271_v15 = vpop.f32.mrf.mxu1 }
 0x367   :  { %5012 = vst [vmem:[#allocation26_spill] sm:$0xff] %v4656_v20  ;;  %v2715_v36 = vadd.f32 %v2714_v6, %v2695_v19  ;;  %v2696_v60 = vmul.f32 %v4656_v20, %v4656_v20  ;;  %v4660_v40 = vmax.f32 %v1270_v58, 0.0  ;;  %v1272_v18 = vadd.f32 %v1271_v15, %v1114_v1 }
 0x368   :  { %v1275_v7 = vpop.f32.mrf.mxu1 }
 0x369   :  { %5013 = vst [vmem:[#allocation27_spill] sm:$0xff] %v4660_v40  ;;  %v2736_v56 = vadd.f32 %v2735_v16, %v2696_v60  ;;  %v2697_v52 = vmul.f32 %v4660_v40, %v4660_v40  ;;  %v4664_v26 = vmax.f32 %v1272_v18, 0.0  ;;  %v1276_v38 = vadd.f32 %v1275_v7, %v1119_v48 }
 0x36a   :  { %v1277_v33 = vpop.f32.mrf.mxu1 }
 0x36b   :  { %5014 = vst [vmem:[#allocation28_spill] sm:$0xff] %v4664_v26  ;;  %v2716_v42 = vadd.f32 %v2715_v36, %v2697_v52  ;;  %v2698_v6 = vmul.f32 %v4664_v26, %v4664_v26  ;;  %v4668_v25 = vmax.f32 %v1276_v38, 0.0  ;;  %v1278_v10 = vadd.f32 %v1277_v33, %v1119_v48  ;;  %v1129_v52 = vpop.permute.xlu0 %1128 }
 0x36c   :  { %v1281_v45 = vpop.f32.mrf.mxu1 }
 0x36d   :  { %5015 = vst [vmem:[#allocation29_spill] sm:$0xff] %v4668_v25  ;;  %v2737_v19 = vadd.f32 %v2736_v56, %v2698_v6  ;;  %v2699_v1 = vmul.f32 %v4668_v25, %v4668_v25  ;;  %v4672_v16 = vmax.f32 %v1278_v10, 0.0  ;;  %v1282_v58 = vadd.f32 %v1281_v45, %v1124_v22 }
 0x36e   :  { %v1283_v15 = vpop.f32.mrf.mxu1 }
 0x36f   :  { %5016 = vst [vmem:[#allocation30_spill] sm:$0xff] %v4672_v16  ;;  %v2717_v60 = vadd.f32 %v2716_v42, %v2699_v1  ;;  %v2700_v18 = vmul.f32 %v4672_v16, %v4672_v16  ;;  %v4676_v36 = vmax.f32 %v1282_v58, 0.0  ;;  %v1284_v7 = vadd.f32 %v1283_v15, %v1124_v22 }
 0x370   :  { %v1287_v38 = vpop.f32.mrf.mxu1 }
 0x371   :  { %5017 = vst [vmem:[#allocation31_spill] sm:$0xff] %v4676_v36  ;;  %v2738_v26 = vadd.f32 %v2737_v19, %v2700_v18  ;;  %v2701_v48 = vmul.f32 %v4676_v36, %v4676_v36  ;;  %v4680_v56 = vmax.f32 %v1284_v7, 0.0  ;;  %v1288_v33 = vadd.f32 %v1287_v38, %v1129_v52 }
 0x372   :  { %v1289_v6 = vpop.f32.mrf.mxu1 }
 0x373   :  { %5018 = vst [vmem:[#allocation32_spill] sm:$0xff] %v4680_v56  ;;  %v2718_v10 = vadd.f32 %v2717_v60, %v2701_v48  ;;  %v2702_v42 = vmul.f32 %v4680_v56, %v4680_v56  ;;  %v4684_v45 = vmax.f32 %v1288_v33, 0.0  ;;  %v1290_v1 = vadd.f32 %v1289_v6, %v1129_v52 }
 0x375   :  { %5019 = vst [vmem:[#allocation33_spill] sm:$0xff] %v4684_v45  ;;  %v2739_v58 = vadd.f32 %v2738_v26, %v2702_v42  ;;  %v2703_v22 = vmul.f32 %v4684_v45, %v4684_v45  ;;  %v4688_v15 = vmax.f32 %v1290_v1, 0.0 }
 0x377   :  { %5020 = vst [vmem:[#allocation34_spill] sm:$0xff] %v4688_v15  ;;  %v4690_v19 = vadd.f32 %v2718_v10, %v2703_v22  ;;  %v2704_v18 = vmul.f32 %v4688_v15, %v4688_v15 }
 0x379   :  { %5021 = vst [vmem:[#allocation35_spill] sm:$0xff] %v4690_v19  ;;  %v4694_v7 = vadd.f32 %v2739_v58, %v2704_v18 }
 0x37b   :  { %5022 = vst [vmem:[#allocation36_spill] sm:$0xff] %v4694_v7 }
 0x3ac   :  { %v4696_v60 = vpop.f32.mrf.mxu1 }
 0x3ae   :  { %v4698_v38 = vpop.f32.mrf.mxu1 }
 0x3b0   :  { %v4700_v48 = vpop.f32.mrf.mxu1 }
 0x3b2   :  { %v4702_v52 = vpop.f32.mrf.mxu1 }
 0x3b4   :  { %v4704_v26 = vpop.f32.mrf.mxu1 }
 0x3b6   :  { %v4706_v33 = vpop.f32.mrf.mxu1 }
 0x3b8   :  { %v4708_v6 = vpop.f32.mrf.mxu1 }
 0x3ba   :  { %v4710_v10 = vpop.f32.mrf.mxu1 }
 0x3bc   :  { %v4712_v42 = vpop.f32.mrf.mxu1 }
 0x3be   :  { %v4714_v1 = vpop.f32.mrf.mxu1 }
 0x3c0   :  { %v4716_v58 = vpop.f32.mrf.mxu1 }
 0x3c2   :  { %v4718_v22 = vpop.f32.mrf.mxu1 }
 0x3c4   :  { %v4720_v18 = vpop.f32.mrf.mxu1 }
 0x3c6   :  { %v4722_v15 = vpop.f32.mrf.mxu1 }
 0x3c8   :  { %v2209_v45 = vpop.f32.mrf.mxu1 }
 0x3ca   :  { %v2211_v56 = vpop.f32.mrf.mxu1 }
 0x3cc   :  { %v2215_v36 = vpop.f32.mrf.mxu1 }
 0x3ce   :  { %v2217_v16 = vpop.f32.mrf.mxu1 }
 0x3d0   :  { %v2221_v25 = vpop.f32.mrf.mxu1 }
 0x3d2   :  { %v2223_v40 = vpop.f32.mrf.mxu1 }
 0x3d4   :  { %v2227_v7 = vpop.f32.mrf.mxu1 }
 0x3d6   :  { %v2229_v20 = vpop.f32.mrf.mxu1 }
 0x3d8   :  { %v2233_v19 = vpop.f32.mrf.mxu1 }
 0x3da   :  { %v2235_v13 = vpop.f32.mrf.mxu1 }
 0x3dc   :  { %v2239_v54 = vpop.f32.mrf.mxu1 }
 0x3dd   :  { %v2240_v0 = vadd.f32 %v2239_v54, %v4509_v2  ;;  %v2194_v54 = vadd.f32 %v4714_v1, %v4557_v43 }
 0x3de   :  { %v2241_v28 = vpop.f32.mrf.mxu1 }
 0x3df   :  { %v2242_v41 = vadd.f32 %v2241_v28, %v4509_v2  ;;  %v2224_v2 = vadd.f32 %v2223_v40, %v4466_v3  ;;  %v2188_v40 = vadd.f32 %v4710_v10, %v4501_v63 }
 0x3e0   :  { %v2245_v27 = vpop.f32.mrf.mxu1 }
 0x3e1   :  { %v2246_v31 = vadd.f32 %v2245_v27, %v4444_v8 }
 0x3e2   :  { %v2247_v4 = vpop.f32.mrf.mxu1 }
 0x3e3   :  { %v2248_v59 = vadd.f32 %v2247_v4, %v4444_v8  ;;  %v2287_v8 = vmax.f32 %v2242_v41, 0.0 }
 0x3e4   :  { %v2251_v32 = vpop.f32.mrf.mxu1 }
 0x3e5   :  { %v2252_v23 = vadd.f32 %v2251_v32, %v4496_v35  ;;  %v2289_v46 = vmax.f32 %v2248_v59, 0.0  ;;  %v2204_v32 = vadd.f32 %v4720_v18, %v4546_v55  ;;  %v2301_v18 = vld [vmem:[%s4926_s12 + $0x38] sm:$0xff] }
 0x3e6   :  { %v2253_v21 = vpop.f32.mrf.mxu1 }
 0x3e7   :  { %v2254_v12 = vadd.f32 %v2253_v21, %v4496_v35  ;;  %v2236_v21 = vadd.f32 %v2235_v13, %v4455_v53  ;;  %v2288_v35 = vmax.f32 %v2246_v31, 0.0  ;;  %v2216_v31 = vadd.f32 %v2215_v36, %v4533_v14 }
 0x3e8   :  { %v2257_v29 = vpop.f32.mrf.mxu1  ;;  %v2182_v36 = vadd.f32 %v4706_v33, %v4560_v44  ;;  %v2170_v33 = vadd.f32 %v4698_v38, %v4562_v51  ;;  %v2297_v38 = vld [vmem:[%s4926_s12 + $0x18] sm:$0xff] }
 0x3e9   :  { %v2258_v34 = vadd.f32 %v2257_v29, %v4436_v9  ;;  %v2291_v50 = vmax.f32 %v2254_v12, 0.0  ;;  %v2290_v29 = vmax.f32 %v2252_v23, 0.0  ;;  %v2286_v12 = vmax.f32 %v2240_v0, 0.0 }
 0x3ea   :  { %v2259_v62 = vpop.f32.mrf.mxu1  ;;  %v2210_v0 = vadd.f32 %v2209_v45, %v4477_v30  ;;  %v2278_v4 = vmax.f32 %v2216_v31, 0.0 }
 0x3eb   :  { %v2260_v11 = vadd.f32 %v2259_v62, %v4436_v9  ;;  %v2292_v24 = vmax.f32 %v2258_v34, 0.0  ;;  %v2234_v9 = vadd.f32 %v2233_v19, %v4455_v53  ;;  %v2228_v62 = vadd.f32 %v2227_v7, %v4522_v57 }
 0x3ec   :  { %v2218_v53 = vadd.f32 %v2217_v16, %v4533_v14  ;;  %v2200_v14 = vadd.f32 %v4718_v22, %v4488_v17  ;;  %v2276_v28 = vmax.f32 %v2210_v0, 0.0  ;;  %v2269_v19 = vmax.f32 %v2188_v40, 0.0  ;;  %v2300_v22 = vld [vmem:[%s4926_s12 + $0x30] sm:$0xff] }
 0x3ed   :  { %v2293_v61 = vmax.f32 %v2260_v11, 0.0  ;;  %v2230_v11 = vadd.f32 %v2229_v20, %v4522_v57  ;;  %v2284_v59 = vmax.f32 %v2234_v9, 0.0  ;;  %v2282_v41 = vmax.f32 %v2228_v62, 0.0  ;;  %v2304_v9 = vld [vmem:[%s4926_s12 + $0x50] sm:$0xff] }
 0x3ee   :  { %v2212_v57 = vadd.f32 %v2211_v56, %v4477_v30  ;;  %v2279_v34 = vmax.f32 %v2218_v53, 0.0  ;;  %v2198_v30 = vadd.f32 %v4716_v58, %v4488_v17  ;;  %v2274_v20 = vmax.f32 %v2204_v32, 0.0  ;;  %v2299_v58 = vld [vmem:[%s4926_s12 + $0x28] sm:$0xff]  ;;  %v2308_v62 = vld [vmem:[%s4926_s12 + $0x70] sm:$0xff] }
 0x3ef   :  { %2406 = vmatprep.subr.mxu1 %v2293_v61  ;;  %v2285_v61 = vmax.f32 %v2236_v21, 0.0  ;;  %v2186_v17 = vadd.f32 %v4708_v6, %v4501_v63  ;;  %v2271_v56 = vmax.f32 %v2194_v54, 0.0  ;;  %v2174_v63 = vadd.f32 %v4700_v48, %v4514_v49  ;;  %v2298_v48 = vld [vmem:[%s4926_s12 + $0x20] sm:$0xff]  ;;  %v2303_v21 = vld [vmem:[%s4926_s12 + $0x48] sm:$0xff] }
 0x3f0   :  { %2407 = vmatpush1.msra.mxu1 %v2292_v24  ;;  %v2222_v24 = vadd.f32 %v2221_v25, %v4466_v3  ;;  %v2206_v3 = vadd.f32 %v4722_v15, %v4546_v55  ;;  %v2277_v27 = vmax.f32 %v2212_v57, 0.0  ;;  %v2192_v55 = vadd.f32 %v4712_v42, %v4557_v43  ;;  %v5024_v40 = vld [vmem:[#allocation6_spill] sm:$0xff] }
 0x3f1   :  { %2408 = vmatprep.subr.mxu1 %v2291_v50  ;;  %v2283_v50 = vmax.f32 %v2230_v11, 0.0  ;;  %v2273_v25 = vmax.f32 %v2200_v14, 0.0  ;;  %v2272_v16 = vmax.f32 %v2198_v30, 0.0  ;;  %v2180_v43 = vadd.f32 %v4704_v26, %v4560_v44  ;;  %v2306_v11 = vld [vmem:[%s4926_s12 + $0x60] sm:$0xff] }
 0x3f2   :  { %2409 = vmatpush1.msra.mxu1 %v2290_v29  ;;  %v2280_v23 = vmax.f32 %v2222_v24, 0.0  ;;  %v2275_v13 = vmax.f32 %v2206_v3, 0.0  ;;  %v2270_v45 = vmax.f32 %v2192_v55, 0.0  ;;  %v2176_v15 = vadd.f32 %v4702_v52, %v4514_v49  ;;  %v2294_v49 = vld [vmem:[%s4926_s12] sm:$0xff] }
 0x3f3   :  { %2410 = vmatprep.subr.mxu1 %v2289_v46  ;;  %v2281_v46 = vmax.f32 %v2224_v2, 0.0  ;;  %v2268_v7 = vmax.f32 %v2186_v17, 0.0  ;;  %v2267_v6 = vmax.f32 %v2182_v36, 0.0  ;;  %v2168_v44 = vadd.f32 %v4696_v60, %v4562_v51  ;;  %v2295_v51 = vld [vmem:[%s4926_s12 + $0x8] sm:$0xff]  ;;  %v2296_v60 = vld [vmem:[%s4926_s12 + $0x10] sm:$0xff]  ;;  %v2302_v29 = vld [vmem:[%s4926_s12 + $0x40] sm:$0xff]  ;;  %v2334_v2 = vpop.permute.xlu1 %2333 }
 0x3f4   :  { %2411 = vmatpush1.msra.mxu1 %v2288_v35  ;;  %v2266_v26 = vmax.f32 %v2180_v43, 0.0  ;;  %v2265_v10 = vmax.f32 %v2176_v15, 0.0  ;;  %v2264_v52 = vmax.f32 %v2174_v63, 0.0  ;;  %v2263_v42 = vmax.f32 %v2170_v33, 0.0  ;;  %v2305_v35 = vld [vmem:[%s4926_s12 + $0x58] sm:$0xff] }
 0x3f5   :  { %2412 = vmatprep.subr.mxu1 %v2287_v8  ;;  %v2262_v1 = vmax.f32 %v2168_v44, 0.0  ;;  %v2307_v8 = vld [vmem:[%s4926_s12 + $0x68] sm:$0xff] }
 0x3f6   :  { %2413 = vmatpush1.msra.mxu1 %v2286_v12  ;;  %v2309_v12 = vld [vmem:[%s4926_s12 + $0x78] sm:$0xff]  ;;  %s3031_s12 = smov [#allocation2]  }
 0x3f7   :  { %2414 = vmatprep.subr.mxu1 %v2285_v61  ;;  %v2339_v61 = vpop.permute.xlu1 %2338  ;;  %s2860_s29 = sshll.u32 %s3031_s12, 4  ;;  %s2861_s29 = int_to_ptr.vmem [resolvable:$true] %s2860_s29 }
 0x3f8   :  { %2415 = vmatpush1.msra.mxu1 %v2284_v59  ;;  %s3006_s30 = scalar_lea.vmem %s2861_s29, 32  ;;  %p3011_p1 = scmp.lt.s32.totalorder %s2861_s29, %s2861_s29 }
 0x3f9   :  { %2416 = vmatprep.subr.mxu1 %v2283_v50  ;;  %p3007_p0 = scmp.ne.s32.totalorder %s2861_s29, %s3006_s30  ;;  %p3012_p2 = scmp.lt.s32.totalorder %s3006_s30, %s3006_s30 }
 0x3fa   :  { %2417 = vmatpush1.msra.mxu1 %v2282_v41 }
 0x3fb   :  { %2418 = vmatprep.subr.mxu1 %v2281_v46  ;;  %v2344_v24 = vpop.permute.xlu1 %2343  ;;  %p3013_p3 = por %p3012_p2, %p3011_p1 }
 0x3fc   :  { %2419 = vmatpush1.msra.mxu1 %v2280_v23 }
 0x3fd   :  { %2420 = vmatprep.subr.mxu1 %v2279_v34  ;;  %p3014_p4 = pnand %p3013_p3, %p3007_p0 }
 0x3fe   :  { %2421 = vmatpush1.msra.mxu1 %v2278_v4 }
 0x3ff   :  { %2422 = vmatprep.subr.mxu1 %v2277_v27  ;;  %v2349_v59 = vpop.permute.xlu1 %2348 }
 0x400   :  { %2423 = vmatpush1.msra.mxu1 %v2276_v28 }
 0x401   :  { %2424 = vmatprep.subr.mxu1 %v2275_v13  ;;  %v5023_v13 = vld [vmem:[#allocation5_spill] sm:$0xff] }
 0x402   :  { %2425 = vmatpush1.msra.mxu1 %v2274_v20 }
 0x403   :  { %2426 = vmatprep.subr.mxu1 %v2273_v25  ;;  %v2354_v53 = vpop.permute.xlu1 %2353 }
 0x404   :  { %2427 = vmatpush1.msra.mxu1 %v2272_v16 }
 0x405   :  { %2428 = vmatprep.subr.mxu1 %v2271_v56 }
 0x406   :  { %2429 = vmatpush1.msra.mxu1 %v2270_v45  ;;  %v5025_v45 = vld [vmem:[#allocation7_spill] sm:$0xff] }
 0x407   :  { %2430 = vmatprep.subr.mxu1 %v2269_v19  ;;  %v2359_v23 = vpop.permute.xlu1 %2358 }
 0x408   :  { %2431 = vmatpush1.msra.mxu1 %v2268_v7 }
 0x409   :  { %2432 = vmatprep.subr.mxu1 %v2267_v6  ;;  %v5026_v6 = vld [vmem:[#allocation8_spill] sm:$0xff] }
 0x40a   :  { %2433 = vmatpush1.msra.mxu1 %v2266_v26 }
 0x40b   :  { %2434 = vmatprep.subr.mxu1 %v2265_v10  ;;  %v2364_v17 = vpop.permute.xlu1 %2363  ;;  %v5027_v10 = vld [vmem:[#allocation9_spill] sm:$0xff] }
 0x40c   :  { %2435 = vmatpush1.msra.mxu1 %v2264_v52 }
 0x40d   :  { %2436 = vmatprep.subr.mxu1 %v2263_v42 }
 0x40e   :  { %2437 = vmatpush1.msra.mxu1 %v2262_v1 }
 0x40f   :  { %2471 = vmatmul.mubr.f32.vlgmr.msra.gmra.mxu1 %v2294_v49  ;;  %v2369_v49 = vpop.permute.xlu1 %2368 }
 0x410   :  { %2476 = vmatprep.mubr.f32.mxu1 %v4990_v39 }
 0x413   :  { %2477 = vmatmul.mubr.f32.gmra.mxu1 %v2295_v51 }
 0x414   :  { %2482 = vmatprep.mubr.f32.mxu1 %v4990_v39 }
 0x417   :  { %2483 = vmatmul.mubr.f32.gmra.mxu1 %v2296_v60 }
 0x418   :  { %2488 = vmatprep.mubr.f32.mxu1 %v4990_v39 }
 0x41b   :  { %2489 = vmatmul.mubr.f32.gmra.mxu1 %v2297_v38 }
 0x41c   :  { %2494 = vmatprep.mubr.f32.mxu1 %v4990_v39 }
 0x41f   :  { %2495 = vmatmul.mubr.f32.gmra.mxu1 %v2298_v48  ;;  %v5028_v48 = vld [vmem:[#allocation10_spill] sm:$0xff] }
 0x420   :  { %2500 = vmatprep.mubr.f32.mxu1 %v4990_v39 }
 0x423   :  { %2501 = vmatmul.mubr.f32.gmra.mxu1 %v2299_v58 }
 0x424   :  { %2506 = vmatprep.mubr.f32.mxu1 %v4990_v39 }
 0x427   :  { %2507 = vmatmul.mubr.f32.gmra.mxu1 %v2300_v22 }
 0x428   :  { %2512 = vmatprep.mubr.f32.mxu1 %v4990_v39 }
 0x42b   :  { %2513 = vmatmul.mubr.f32.gmra.mxu1 %v2301_v18 }
 0x42c   :  { %2518 = vmatprep.mubr.f32.mxu1 %v4990_v39 }
 0x42f   :  { %2519 = vmatmul.mubr.f32.gmra.mxu1 %v2302_v29 }
 0x430   :  { %2524 = vmatprep.mubr.f32.mxu1 %v4990_v39 }
 0x433   :  { %2525 = vmatmul.mubr.f32.gmra.mxu1 %v2303_v21 }
 0x434   :  { %2530 = vmatprep.mubr.f32.mxu1 %v4990_v39 }
 0x437   :  { %2531 = vmatmul.mubr.f32.gmra.mxu1 %v2304_v9 }
 0x438   :  { %2536 = vmatprep.mubr.f32.mxu1 %v4990_v39 }
 0x43b   :  { %2537 = vmatmul.mubr.f32.gmra.mxu1 %v2305_v35  ;;  %v5029_v35 = vld [vmem:[#allocation11_spill] sm:$0xff] }
 0x43c   :  { %2542 = vmatprep.mubr.f32.mxu1 %v4990_v39 }
 0x43f   :  { %2543 = vmatmul.mubr.f32.gmra.mxu1 %v2306_v11 }
 0x440   :  { %2548 = vmatprep.mubr.f32.mxu1 %v4990_v39 }
 0x443   :  { %2549 = vmatmul.mubr.f32.gmra.mxu1 %v2307_v8 }
 0x444   :  { %2554 = vmatprep.mubr.f32.mxu1 %v4990_v39 }
 0x447   :  { %2555 = vmatmul.mubr.f32.gmra.mxu1 %v2308_v62 }
 0x448   :  { %2560 = vmatprep.mubr.f32.mxu1 %v4990_v39 }
 0x44b   :  { %2561 = vmatmul.mubr.f32.gmra.mxu1 %v2309_v12 }
 0x4cf   :  { %v2472_v50 = vpop.f32.mrf.mxu1 }
 0x4d0   :  { %v2473_v31 = vadd.f32 %v2472_v50, %v4538_v5  ;;  %v5030_v50 = vld [vmem:[#allocation12_spill] sm:$0xff] }
 0x4d1   :  { %v2474_v41 = vpop.f32.mrf.mxu1 }
 0x4d2   :  { %v2475_v57 = vadd.f32 %v2474_v41, %v4538_v5  ;;  %v4835_v0 = vmax.f32 %v2473_v31, 0.0 }
 0x4d3   :  { %v2478_v46 = vpop.f32.mrf.mxu1 }
 0x4d4   :  { %v2479_v39 = vadd.f32 %v2478_v46, %v2334_v2  ;;  %v4837_v34 = vmax.f32 %v2475_v57, 0.0  ;;  %v2599_v27 = vmul.f32 %v4835_v0, %v4564_v37  ;;  %v5031_v57 = vld [vmem:[#allocation13_spill] sm:$0xff] }
 0x4d5   :  { %v2480_v3 = vpop.f32.mrf.mxu1 }
 0x4d6   :  { %v4839_v32 = vmax.f32 %v2479_v39, 0.0  ;;  %v2481_v4 = vadd.f32 %v2480_v3, %v2334_v2  ;;  %v2600_v55 = vmul.f32 %v4837_v34, %v5023_v13 }
 0x4d7   :  { %v2484_v14 = vpop.f32.mrf.mxu1 }
 0x4d8   :  { %v2601_v30 = vmul.f32 %v4839_v32, %v4568_v47  ;;  %v4845_v28 = vmax.f32 %v2481_v4, 0.0  ;;  %v2485_v5 = vadd.f32 %v2484_v14, %v2339_v61 }
 0x4d9   :  { %v2486_v54 = vpop.f32.mrf.mxu1 }
 0x4da   :  { %v2631_v20 = vadd.f32 %v2601_v30, %v2599_v27  ;;  %v2602_v25 = vmul.f32 %v4845_v28, %v5024_v40  ;;  %v2571_v16 = vmax.f32 %v2485_v5, 0.0  ;;  %v2487_v36 = vadd.f32 %v2486_v54, %v2339_v61  ;;  %v2374_v61 = vpop.permute.xlu1 %2373  ;;  %v5032_v27 = vld [vmem:[#allocation14_spill] sm:$0xff]  ;;  %v5033_v40 = vld [vmem:[#allocation15_spill] sm:$0xff] }
 0x4db   :  { %v2490_v56 = vpop.f32.mrf.mxu1 }
 0x4dc   :  { %v2652_v43 = vadd.f32 %v2602_v25, %v2600_v55  ;;  %v2491_v37 = vadd.f32 %v2490_v56, %v2344_v24  ;;  %v2603_v15 = vmul.f32 %v2571_v16, %v5025_v45  ;;  %v2572_v47 = vmax.f32 %v2487_v36, 0.0 }
 0x4dd   :  { %v2492_v19 = vpop.f32.mrf.mxu1  ;;  %v2749_v45 = vmul.f32 %v4839_v32, %v4839_v32  ;;  %v2748_v32 = vmul.f32 %v4837_v34, %v4837_v34  ;;  %v5037_v34 = vld [vmem:[#allocation19_spill] sm:$0xff] }
 0x4de   :  { %v4852_v63 = vmax.f32 %v2491_v37, 0.0  ;;  %v2493_v7 = vadd.f32 %v2492_v19, %v2344_v24  ;;  %v2632_v33 = vadd.f32 %v2631_v20, %v2603_v15  ;;  %v2604_v44 = vmul.f32 %v2572_v47, %v5026_v6  ;;  %v5034_v19 = vld [vmem:[#allocation16_spill] sm:$0xff]  ;;  %v5035_v6 = vld [vmem:[#allocation17_spill] sm:$0xff] }
 0x4df   :  { %v2496_v26 = vpop.f32.mrf.mxu1 }
 0x4e0   :  { %v2605_v52 = vmul.f32 %v4852_v63, %v5027_v10  ;;  %v4857_v42 = vmax.f32 %v2493_v7, 0.0  ;;  %v2497_v1 = vadd.f32 %v2496_v26, %v2349_v59  ;;  %v2653_v51 = vadd.f32 %v2652_v43, %v2604_v44 }
 0x4e1   :  { %v2498_v60 = vpop.f32.mrf.mxu1 }
 0x4e2   :  { %v2633_v38 = vadd.f32 %v2632_v33, %v2605_v52  ;;  %v2606_v58 = vmul.f32 %v4857_v42, %v5028_v48  ;;  %v4861_v22 = vmax.f32 %v2497_v1, 0.0  ;;  %v2499_v18 = vadd.f32 %v2498_v60, %v2349_v59  ;;  %v5036_v48 = vld [vmem:[#allocation18_spill] sm:$0xff] }
 0x4e3   :  { %v2502_v29 = vpop.f32.mrf.mxu1  ;;  %v2747_v52 = vmul.f32 %v4835_v0, %v4835_v0  ;;  %v2751_v1 = vmul.f32 %v2571_v16, %v2571_v16  ;;  %v2752_v60 = vmul.f32 %v2572_v47, %v2572_v47 }
 0x4e4   :  { %v2654_v21 = vadd.f32 %v2653_v51, %v2606_v58  ;;  %v2503_v9 = vadd.f32 %v2502_v29, %v2354_v53  ;;  %v2607_v11 = vmul.f32 %v4861_v22, %v5029_v35  ;;  %v2576_v8 = vmax.f32 %v2499_v18, 0.0 }
 0x4e5   :  { %v2504_v62 = vpop.f32.mrf.mxu1  ;;  %v2753_v29 = vmul.f32 %v4852_v63, %v4852_v63 }
 0x4e6   :  { %v2577_v12 = vmax.f32 %v2503_v9, 0.0  ;;  %v2505_v2 = vadd.f32 %v2504_v62, %v2354_v53  ;;  %v2634_v24 = vadd.f32 %v2633_v38, %v2607_v11  ;;  %v2608_v31 = vmul.f32 %v2576_v8, %v5030_v50  ;;  %v2379_v53 = vpop.permute.xlu1 %2378 }
 0x4e7   :  { %v2508_v41 = vpop.f32.mrf.mxu1 }
 0x4e8   :  { %v2609_v46 = vmul.f32 %v2577_v12, %v5031_v57  ;;  %v2578_v39 = vmax.f32 %v2505_v2, 0.0  ;;  %v2509_v3 = vadd.f32 %v2508_v41, %v2359_v23  ;;  %v2655_v59 = vadd.f32 %v2654_v21, %v2608_v31 }
 0x4e9   :  { %v2510_v4 = vpop.f32.mrf.mxu1  ;;  %v2754_v2 = vmul.f32 %v4857_v42, %v4857_v42  ;;  %v2755_v41 = vmul.f32 %v4861_v22, %v4861_v22 }
 0x4ea   :  { %v2635_v14 = vadd.f32 %v2634_v24, %v2609_v46  ;;  %v2610_v30 = vmul.f32 %v2578_v39, %v5032_v27  ;;  %v2579_v5 = vmax.f32 %v2509_v3, 0.0  ;;  %v2511_v54 = vadd.f32 %v2510_v4, %v2359_v23  ;;  %v2384_v18 = vpop.permute.xlu1 %2383 }
 0x4eb   :  { %v2514_v13 = vpop.f32.mrf.mxu1  ;;  %v2750_v23 = vmul.f32 %v4845_v28, %v4845_v28  ;;  %v2779_v28 = vadd.f32 %v2749_v45, %v2747_v52  ;;  %v2757_v27 = vmul.f32 %v2577_v12, %v2577_v12 }
 0x4ec   :  { %v2656_v55 = vadd.f32 %v2655_v59, %v2610_v30  ;;  %v2515_v20 = vadd.f32 %v2514_v13, %v2364_v17  ;;  %v2611_v25 = vmul.f32 %v2579_v5, %v5033_v40  ;;  %v2580_v36 = vmax.f32 %v2511_v54, 0.0  ;;  %v5038_v59 = vld [vmem:[#allocation20_spill] sm:$0xff]  ;;  %v5039_v30 = vld [vmem:[#allocation21_spill] sm:$0xff] }
 0x4ed   :  { %v2516_v56 = vpop.f32.mrf.mxu1  ;;  %v2800_v11 = vadd.f32 %v2750_v23, %v2748_v32  ;;  %v2780_v62 = vadd.f32 %v2779_v28, %v2751_v1  ;;  %v2758_v40 = vmul.f32 %v2578_v39, %v2578_v39  ;;  %v2759_v22 = vmul.f32 %v2579_v5, %v2579_v5  ;;  %v5041_v39 = vld [vmem:[#allocation23_spill] sm:$0xff]  ;;  %v5042_v28 = vld [vmem:[#allocation24_spill] sm:$0xff] }
 0x4ee   :  { %v4869_v43 = vmax.f32 %v2515_v20, 0.0  ;;  %v2517_v37 = vadd.f32 %v2516_v56, %v2364_v17  ;;  %v2636_v15 = vadd.f32 %v2635_v14, %v2611_v25  ;;  %v2612_v7 = vmul.f32 %v2580_v36, %v5034_v19 }
 0x4ef   :  { %v2520_v33 = vpop.f32.mrf.mxu1  ;;  %v2801_v31 = vadd.f32 %v2800_v11, %v2752_v60  ;;  %v2781_v46 = vadd.f32 %v2780_v62, %v2753_v29  ;;  %v2760_v19 = vmul.f32 %v2580_v36, %v2580_v36  ;;  %v5043_v11 = vld [vmem:[#allocation25_spill] sm:$0xff]  ;;  %v5044_v62 = vld [vmem:[#allocation35_spill] sm:$0xff] }
 0x4f0   :  { %v2613_v44 = vmul.f32 %v4869_v43, %v5035_v6  ;;  %v2582_v26 = vmax.f32 %v2517_v37, 0.0  ;;  %v2521_v10 = vadd.f32 %v2520_v33, %v2369_v49  ;;  %v2657_v17 = vadd.f32 %v2656_v55, %v2612_v7  ;;  %v2389_v55 = vpop.permute.xlu1 %2388 }
 0x4f1   :  { %v2522_v51 = vpop.f32.mrf.mxu1  ;;  %v2802_v20 = vadd.f32 %v2801_v31, %v2754_v2  ;;  %v2782_v37 = vadd.f32 %v2781_v46, %v2755_v41  ;;  %v2761_v52 = vmul.f32 %v4869_v43, %v4869_v43  ;;  %v2720_v2 = vrot.slane %v5044_v62, 4 }
 0x4f2   :  { %v2637_v38 = vadd.f32 %v2636_v15, %v2613_v44  ;;  %v2614_v58 = vmul.f32 %v2582_v26, %v5036_v48  ;;  %v2583_v21 = vmax.f32 %v2521_v10, 0.0  ;;  %v2523_v9 = vadd.f32 %v2522_v51, %v2369_v49 }
 0x4f3   :  { %v2526_v35 = vpop.f32.mrf.mxu1  ;;  %v2756_v49 = vmul.f32 %v2576_v8, %v2576_v8  ;;  %v2783_v12 = vadd.f32 %v2782_v37, %v2757_v27  ;;  %v2762_v32 = vmul.f32 %v2582_v26, %v2582_v26 }
 0x4f4   :  { %v2658_v0 = vadd.f32 %v2657_v17, %v2614_v58  ;;  %v2527_v16 = vadd.f32 %v2526_v35, %v2374_v61  ;;  %v2615_v47 = vmul.f32 %v2583_v21, %v5037_v34  ;;  %v2584_v24 = vmax.f32 %v2523_v9, 0.0  ;;  %v2394_v48 = vpop.permute.xlu1 %2393 }
 0x4f5   :  { %v2528_v50 = vpop.f32.mrf.mxu1  ;;  %v2803_v8 = vadd.f32 %v2802_v20, %v2756_v49  ;;  %v2784_v5 = vadd.f32 %v2783_v12, %v2759_v22  ;;  %v2763_v58 = vmul.f32 %v2583_v21, %v2583_v21  ;;  %v5049_v12 = vld [vmem:[#allocation29_spill] sm:$0xff] }
 0x4f6   :  { %v2585_v57 = vmax.f32 %v2527_v16, 0.0  ;;  %v2529_v63 = vadd.f32 %v2528_v50, %v2374_v61  ;;  %v2638_v3 = vadd.f32 %v2637_v38, %v2615_v47  ;;  %v2616_v4 = vmul.f32 %v2584_v24, %v5038_v59  ;;  %v5040_v61 = vld [vmem:[#allocation22_spill] sm:$0xff] }
 0x4f7   :  { %v2532_v14 = vpop.f32.mrf.mxu1  ;;  %v2804_v10 = vadd.f32 %v2803_v8, %v2758_v40  ;;  %v2764_v35 = vmul.f32 %v2584_v24, %v2584_v24  ;;  %v2785_v34 = vadd.f32 %v2784_v5, %v2761_v52  ;;  %v5047_v40 = vld [vmem:[#allocation27_spill] sm:$0xff]  ;;  %v2721_v52 = vadd.f32 %v2720_v2, %v5044_v62 }
 0x4f8   :  { %v2617_v54 = vmul.f32 %v2585_v57, %v5039_v30  ;;  %v2586_v42 = vmax.f32 %v2529_v63, 0.0  ;;  %v2533_v13 = vadd.f32 %v2532_v14, %v2379_v53  ;;  %v2659_v25 = vadd.f32 %v2658_v0, %v2616_v4  ;;  %v5045_v63 = vld [vmem:[#allocation26_spill] sm:$0xff]  ;;  %v5046_v4 = vld [vmem:[#allocation36_spill] sm:$0xff]  ;;  %v5051_v62 = vld [vmem:[#allocation31_spill] sm:$0xff] }
 0x4f9   :  { %v2534_v56 = vpop.f32.mrf.mxu1  ;;  %v2805_v36 = vadd.f32 %v2804_v10, %v2760_v19  ;;  %v2765_v47 = vmul.f32 %v2585_v57, %v2585_v57  ;;  %v2786_v46 = vadd.f32 %v2785_v34, %v2763_v58  ;;  %v2741_v14 = vrot.slane %v5046_v4, 4  ;;  %v5048_v19 = vld [vmem:[#allocation28_spill] sm:$0xff] }
 0x4fa   :  { %v2639_v45 = vadd.f32 %v2638_v3, %v2617_v54  ;;  %v2618_v15 = vmul.f32 %v2586_v42, %v5040_v61  ;;  %v2587_v7 = vmax.f32 %v2533_v13, 0.0  ;;  %v2535_v33 = vadd.f32 %v2534_v56, %v2379_v53  ;;  %v2399_v13 = vpop.permute.xlu1 %2398 }
 0x4fb   :  { %v2538_v23 = vpop.f32.mrf.mxu1  ;;  %v2806_v31 = vadd.f32 %v2805_v36, %v2762_v32  ;;  %v2787_v20 = vadd.f32 %v2786_v46, %v2765_v47  ;;  %v5052_v46 = vld [vmem:[#allocation32_spill] sm:$0xff] }
 0x4fc   :  { %v2660_v6 = vadd.f32 %v2659_v25, %v2618_v15  ;;  %v2539_v44 = vadd.f32 %v2538_v23, %v2384_v18  ;;  %v2619_v1 = vmul.f32 %v2587_v7, %v5041_v39  ;;  %v2588_v17 = vmax.f32 %v2535_v33, 0.0 }
 0x4fd   :  { %v2540_v51 = vpop.f32.mrf.mxu1  ;;  %v2767_v49 = vmul.f32 %v2587_v7, %v2587_v7  ;;  %v2807_v27 = vadd.f32 %v2806_v31, %v2764_v35  ;;  %v2742_v35 = vadd.f32 %v2741_v14, %v5046_v4 }
 0x4fe   :  { %v2589_v60 = vmax.f32 %v2539_v44, 0.0  ;;  %v2541_v38 = vadd.f32 %v2540_v51, %v2384_v18  ;;  %v2640_v53 = vadd.f32 %v2639_v45, %v2619_v1  ;;  %v2620_v29 = vmul.f32 %v2588_v17, %v5042_v28  ;;  %v2404_v36 = vpop.permute.xlu1 %2403 }
 0x4ff   :  { %v2544_v9 = vpop.f32.mrf.mxu1  ;;  %v2766_v18 = vmul.f32 %v2586_v42, %v2586_v42  ;;  %v2768_v57 = vmul.f32 %v2588_v17, %v2588_v17  ;;  %v2788_v15 = vadd.f32 %v2787_v20, %v2767_v49 }
 0x500   :  { %v2621_v0 = vmul.f32 %v2589_v60, %v5043_v11  ;;  %v2590_v16 = vmax.f32 %v2541_v38, 0.0  ;;  %v2545_v43 = vadd.f32 %v2544_v9, %v2389_v55  ;;  %v2661_v50 = vadd.f32 %v2660_v6, %v2620_v29  ;;  %v5050_v38 = vld [vmem:[#allocation30_spill] sm:$0xff] }
 0x501   :  { %v2546_v26 = vpop.f32.mrf.mxu1  ;;  %v2808_v37 = vadd.f32 %v2807_v27, %v2766_v18  ;;  %v2769_v22 = vmul.f32 %v2589_v60, %v2589_v60 }
 0x502   :  { %v2641_v41 = vadd.f32 %v2640_v53, %v2621_v0  ;;  %v2622_v21 = vmul.f32 %v2590_v16, %v5045_v63  ;;  %v2591_v3 = vmax.f32 %v2545_v43, 0.0  ;;  %v2547_v59 = vadd.f32 %v2546_v26, %v2389_v55 }
 0x503   :  { %v2550_v24 = vpop.f32.mrf.mxu1  ;;  %v2770_v8 = vmul.f32 %v2590_v16, %v2590_v16  ;;  %v2809_v39 = vadd.f32 %v2808_v37, %v2768_v57  ;;  %v2789_v5 = vadd.f32 %v2788_v15, %v2769_v22  ;;  %v2722_v26 = vrot.slane %v2721_v52, 2 }
 0x504   :  { %v2662_v30 = vadd.f32 %v2661_v50, %v2622_v21  ;;  %v2551_v54 = vadd.f32 %v2550_v24, %v2394_v48  ;;  %v2623_v25 = vmul.f32 %v2591_v3, %v5047_v40  ;;  %v2592_v56 = vmax.f32 %v2547_v59, 0.0  ;;  %v5053_v24 = vld [vmem:[#allocation33_spill] sm:$0xff]  ;;  %v5054_v40 = vld [vmem:[#allocation34_spill] sm:$0xff] }
 0x505   :  { %v2552_v42 = vpop.f32.mrf.mxu1  ;;  %v2771_v23 = vmul.f32 %v2591_v3, %v2591_v3  ;;  %v2810_v58 = vadd.f32 %v2809_v39, %v2770_v8 }
 0x506   :  { %v2593_v45 = vmax.f32 %v2551_v54, 0.0  ;;  %v2553_v61 = vadd.f32 %v2552_v42, %v2394_v48  ;;  %v2642_v55 = vadd.f32 %v2641_v41, %v2623_v25  ;;  %v2624_v7 = vmul.f32 %v2592_v56, %v5048_v19 }
 0x507   :  { %v2556_v33 = vpop.f32.mrf.mxu1  ;;  %v2772_v17 = vmul.f32 %v2592_v56, %v2592_v56  ;;  %v2790_v11 = vadd.f32 %v2789_v5, %v2771_v23  ;;  %v2723_v42 = vadd.f32 %v2722_v26, %v2721_v52 }
 0x508   :  { %v2625_v6 = vmul.f32 %v2593_v45, %v5049_v12  ;;  %v2594_v44 = vmax.f32 %v2553_v61, 0.0  ;;  %v2557_v10 = vadd.f32 %v2556_v33, %v2399_v13  ;;  %v2663_v1 = vadd.f32 %v2662_v30, %v2624_v7 }
 0x509   :  { %v2558_v51 = vpop.f32.mrf.mxu1  ;;  %v2773_v60 = vmul.f32 %v2593_v45, %v2593_v45  ;;  %v2811_v43 = vadd.f32 %v2810_v58, %v2772_v17  ;;  %v2743_v30 = vrot.slane %v2742_v35, 2 }
 0x50a   :  { %v2643_v32 = vadd.f32 %v2642_v55, %v2625_v6  ;;  %v2626_v48 = vmul.f32 %v2594_v44, %v5050_v38  ;;  %v2774_v53 = vmul.f32 %v2594_v44, %v2594_v44  ;;  %v2595_v28 = vmax.f32 %v2557_v10, 0.0 }
 0x50b   :  { %v2559_v29 = vadd.f32 %v2558_v51, %v2399_v13  ;;  %v2562_v9 = vpop.f32.mrf.mxu1  ;;  %v2791_v31 = vadd.f32 %v2790_v11, %v2773_v60  ;;  %v2744_v61 = vadd.f32 %v2743_v30, %v2742_v35  ;;  %v2724_v55 = vrot.slane %v2723_v42, 1 }
 0x50c   :  { %v2664_v0 = vadd.f32 %v2663_v1, %v2626_v48  ;;  %v2563_v16 = vadd.f32 %v2562_v9, %v2404_v36  ;;  %v2627_v2 = vmul.f32 %v2595_v28, %v5051_v62  ;;  %v2775_v34 = vmul.f32 %v2595_v28, %v2595_v28 }
 0x50d   :  { %v2596_v47 = vmax.f32 %v2559_v29, 0.0  ;;  %v2564_v50 = vpop.f32.mrf.mxu1  ;;  %v2812_v63 = vadd.f32 %v2811_v43, %v2774_v53  ;;  %v2745_v33 = vrot.slane %v2744_v61, 1  ;;  %v2725_v6 = vadd.f32 %v2724_v55, %v2723_v42 }
 0x50e   :  { %v2597_v18 = vmax.f32 %v2563_v16, 0.0  ;;  %v2565_v41 = vadd.f32 %v2564_v50, %v2404_v36  ;;  %v2644_v21 = vadd.f32 %v2643_v32, %v2627_v2  ;;  %v2792_v59 = vadd.f32 %v2791_v31, %v2775_v34 }
 0x50f   :  { %v2628_v49 = vmul.f32 %v2596_v47, %v5052_v46  ;;  %v2776_v3 = vmul.f32 %v2596_v47, %v2596_v47  ;;  %v2746_v1 = vadd.f32 %v2745_v33, %v2744_v61  ;;  %v2821_v5 = vmax.f32 %v2725_v6, 1e-16 }
 0x510   :  { %v2629_v4 = vmul.f32 %v2597_v18, %v5053_v24  ;;  %v2777_v14 = vmul.f32 %v2597_v18, %v2597_v18  ;;  %v2598_v27 = vmax.f32 %v2565_v41, 0.0  ;;  %v3030_v16 = vmov 1966171168  }
 0x511   :  { %v2665_v54 = vadd.f32 %v2664_v0, %v2628_v49  ;;  %v2813_v13 = vadd.f32 %v2812_v63, %v2776_v3  ;;  %v2822_v48 = vmax.f32 %v2746_v1, 1e-16  ;;  %v2835_v43 = vunpack.c.l.s4 %v3030_v16 }
 0x512   :  { %v2645_v20 = vadd.f32 %v2644_v21, %v2629_v4  ;;  %v2793_v57 = vadd.f32 %v2792_v59, %v2777_v14  ;;  %v2630_v25 = vmul.f32 %v2598_v27, %v5054_v40  ;;  %v2778_v56 = vmul.f32 %v2598_v27, %v2598_v27 }
 0x513   :  { %v2837_v62 = vlaneseq  ;;  %v2836_v47 = vunpack.c.0.s8 %v2835_v43 }
 0x514   :  { %v2794_v37 = vrot.slane %v2793_v57, 4  ;;  %v2666_v22 = vadd.f32 %v2665_v54, %v2630_v25  ;;  %v2814_v45 = vadd.f32 %v2813_v13, %v2778_v56  ;;  %v2646_v44 = vrot.slane %v2645_v20, 4 }
 0x515   :  { %v2838_v50 = vshrl.u32 %v2837_v62, 7  ;;  %vm2851_vm1 = vcmp.lt.s32.totalorder %v2837_v62, 256 }
 0x516   :  { %v2795_v15 = vadd.f32 %v2794_v37, %v2793_v57  ;;  %v2815_v8 = vrot.slane %v2814_v45, 4  ;;  %v2667_v51 = vrot.slane %v2666_v22, 4  ;;  %v2647_v32 = vadd.f32 %v2646_v44, %v2645_v20 }
 0x517   :  { %v2839_v21 = vsub.s32 %v2836_v47, %v2838_v50 }
 0x518   :  { %v2796_v19 = vrot.slane %v2795_v15, 2  ;;  %v2816_v7 = vadd.f32 %v2815_v8, %v2814_v45  ;;  %v2668_v58 = vadd.f32 %v2667_v51, %v2666_v22  ;;  %v2648_v28 = vrot.slane %v2647_v32, 2 }
 0x51a   :  { %v2797_v23 = vadd.f32 %v2796_v19, %v2795_v15  ;;  %v2817_v12 = vrot.slane %v2816_v7, 2  ;;  %v2669_v9 = vrot.slane %v2668_v58, 2  ;;  %v2649_v35 = vadd.f32 %v2648_v28, %v2647_v32 }
 0x51c   :  { %v2798_v10 = vrot.slane %v2797_v23, 1  ;;  %v2818_v39 = vadd.f32 %v2817_v12, %v2816_v7  ;;  %v2670_v11 = vadd.f32 %v2669_v9, %v2668_v58  ;;  %v2650_v0 = vrot.slane %v2649_v35, 1 }
 0x51e   :  { %v2799_v17 = vadd.f32 %v2798_v10, %v2797_v23  ;;  %v2819_v52 = vrot.slane %v2818_v39, 1  ;;  %v2671_v2 = vrot.slane %v2670_v11, 1  ;;  %v2651_v34 = vadd.f32 %v2650_v0, %v2649_v35 }
 0x520   :  { %v2823_v60 = vmax.f32 %v2799_v17, 1e-16  ;;  %v2820_v38 = vadd.f32 %v2819_v52, %v2818_v39  ;;  %v2672_v31 = vadd.f32 %v2671_v2, %v2670_v11 }
 0x522   :  { %v2825_v36 = vmul.f32 %v2823_v60, %v2821_v5  ;;  %v2824_v53 = vmax.f32 %v2820_v38, 1e-16 }
 0x524   :  { %3002 = vrsqrt.f32 %v2825_v36  ;;  %v2826_v29 = vmul.f32 %v2824_v53, %v2822_v48 }
 0x526   :  { %3004 = vrsqrt.f32 %v2826_v29 }
 0x531   :  { %v3003_v26 = vpop.eup %3002 }
 0x532   :  { %v2829_v18 = vmul.f32 %v3003_v26, %v2651_v34 }
 0x533   :  { %v3005_v41 = vpop.eup %3004 }
 0x534   :  { %v2830_v63 = vmul.f32 %v3005_v41, %v2672_v31 }
 0x536   :  { %v2833_v46 = vcombine.low %v2829_v18, %v2830_v63 }
 0x538   :  { %v2840_v49 = vrot.slane %v2833_v46, %v2839_v21 }
 0x53a   :  { %v2847_v3 = vrot.slane %v2840_v49, %v2839_v21 }
 0x53c   :  { %2853 = vst.msk [vmem:[#allocation2] sm:$0x3] %vm2851_vm1, %v2847_v3 }
 0x53d   :  { %3017 = shalt.err (!%p3014_p4)
}
 0x53e   :  { %2863 = dma.vmem_to_hbm [thread:$0]  %s2861_s29, 32, %s4928_s14, [#allocation3]  }
 0x53f   :  { %3026 = dma.done.wait [#allocation3], 32  }
 0x540   :  { %3027 = vsyncadd [#allocation3], 4294967264 }
 0x541   :  { %2867 = vsyncpa [#allocation3], 1 }

</bundles_post_ra>
